<compile_context>
chip_gen: v7x
topology: tpu7x:2x2x1
jax: 0.10.0
libtpu: 0.0.40
codegen_flags: <defaults>
</compile_context>

<pallas_src>
import numpy as np
import jax
import jax.numpy as jnp
from jax import lax
from jax.experimental import pallas as pl
from jax.experimental.pallas import tpu as pltpu

F32 = jnp.float32
BF16 = jnp.bfloat16


# ----------------------------------------------------------------------------------
# Fused SAAN_Attention kernel (one grid step == one image of the batch)
# ----------------------------------------------------------------------------------
def _make_saan_kernel(H, W, s_state, c_state):
    M = H * W

    def kernel(*refs):
        idx = 1
        x_ref = refs[0]                                        # (1, C, M) bf16
        if s_state:
            rc_ref, wsT_ref, bs_ref, w7_ref = refs[idx:idx + 4]
            idx += 4
        if c_state:
            w3_ref, lng_ref, lnb_ref, wlin_ref = refs[idx:idx + 4]
            idx += 4
        o_ref = refs[idx]

        att = None

        if c_state:
            # AdaptiveAvg/MaxPool2d(1): global reductions over the spatial (lane) axis.
            xf = x_ref[0].astype(F32)                           # (C, M) f32
            p2 = jnp.concatenate(
                [jnp.mean(xf, axis=1, keepdims=True),
                 jnp.max(xf, axis=1, keepdims=True)], axis=1)   # (C, 2)  [avg | max]
            # Conv1d(1,1,k=3,pad=1,bias=False) along the channel (sublane) axis:
            # three shifted adds with explicit zero padding (no banded weight matrix).
            zrow = jnp.zeros((1, 2), F32)
            pm1 = jnp.concatenate([zrow, p2[:-1, :]], axis=0)   # p[c-1]
            pp1 = jnp.concatenate([p2[1:, :], zrow], axis=0)    # p[c+1]
            t = w3_ref[0] * pm1 + w3_ref[1] * p2 + w3_ref[2] * pp1
            # LayerNorm([1, C]) over the channel axis, per column.
            mu = jnp.mean(t, axis=0, keepdims=True)             # (1, 2)
            var = jnp.mean((t - mu) ** 2, axis=0, keepdims=True)
            tn = (t - mu) * lax.rsqrt(var + 1e-5) * lng_ref[...] + lnb_ref[...]
            tl = jnp.where(tn >= 0.0, tn, 0.3 * tn)             # LeakyReLU(0.3)
            # Linear(C, C, bias=False): column form -> W @ t (bf16 MXU, f32 acc).
            yc2 = jnp.dot(wlin_ref[...], tl.astype(BF16),
                          preferred_element_type=jnp.float32)   # (C, 2)
            att = jax.nn.sigmoid(yc2[:, 0:1] + yc2[:, 1:2])     # y_c  (C, 1)

        if s_state:
            # conv_s: 1x1 Conv (identity-BN folded) + SiLU.  bf16 MXU operands, f32 acc.
            xs = jnp.dot(wsT_ref[...], x_ref[0],
                         preferred_element_type=jnp.float32)    # (C4, M)
            xs = xs + bs_ref[...]
            xs = xs * jax.nn.sigmoid(xs)                        # SiLU
            # Per-pixel channel mean / max -> (2, M), lane dense, stays in VMEM.
            stats = jnp.concatenate(
                [jnp.mean(xs, axis=0, keepdims=True),
                 jnp.max(xs, axis=0, keepdims=True)], axis=0)   # (2, M) f32
            # 7x7 (2->1) conv with padding=3 on the flattened lane axis:
            # 49 lane rolls + row/col padding masks + SMEM scalar-tap FMAs.
            row = rc_ref[0:1, :]                                # (1, M) int32: m // W
            col = rc_ref[1:2, :]                                # (1, M) int32: m %  W
            row_mask = {d: None if d == 0 else
                        ((row >= -d) if d < 0 else (row < H - d)) for d in range(-3, 4)}
            col_mask = {d: None if d == 0 else
                        ((col >= -d) if d < 0 else (col < W - d)) for d in range(-3, 4)}
            s_acc = jnp.zeros((1, M), F32)
            for ki in range(7):
                di = ki - 3
                for kj in range(7):
                    dj = kj - 3
                    off = di * W + dj                           # static per tap
                    sh = stats if off == 0 else pltpu.roll(
                        stats, shift=(-off) % M, axis=1)        # sh[m] = stats[m+off]
                    masks = [m for m in (row_mask[di], col_mask[dj]) if m is not None]
                    if masks:
                        m = masks[0] if len(masks) == 1 else masks[0] & masks[1]
                        sh = jnp.where(m, sh, 0.0)              # zero padding
                    k = ki * 7 + kj
                    s_acc = (s_acc + w7_ref[0, k] * sh[0:1, :]
                                   + w7_ref[1, k] * sh[1:2, :])
            y_s = jax.nn.sigmoid(s_acc)                         # (1, M)
            att = y_s if att is None else att * y_s             # (C,1)*(1,M) -> (C,M)

        # Residual apply  y = x * att + x  (single lane-dense bf16 store).
        o_ref[0] = (x_ref[0].astype(F32) * (att + 1.0)).astype(o_ref.dtype)

    return kernel


def _vmem_limit_bytes():
    cap = 128 * 1024 * 1024
    try:
        info = pltpu.get_tpu_info()
        cap = int(getattr(info, "vmem_capacity_bytes", cap))
    except Exception:
        pass
    # ~25% headroom for the compiler; v5e/v6e -> 96 MiB, v7x (64 MiB VMEM) -> 48 MiB.
    return min((cap * 3) // 4, 100 * 1024 * 1024)


def saan_attention(params, x_nchw, *, s_state=True, c_state=True):
    """SAAN_Attention.forward.  x_nchw: (B, C, H, W); returns bfloat16 (B, C, H, W)."""
    if not (s_state or c_state):
        return x_nchw                                    # torch: y = x
    B, C, H, W = x_nchw.shape
    M = H * W
    x = x_nchw.reshape(B, C, M).astype(BF16)             # C on sublanes, M on lanes

    def _vmem_full(a):
        nd = a.ndim
        return pl.BlockSpec(a.shape, lambda b, _nd=nd: (0,) * _nd)

    smem_spec = pl.BlockSpec(memory_space=pltpu.MemorySpace.SMEM)

    args = [x]
    in_specs = [pl.BlockSpec((1, C, M), lambda b: (b, 0, 0))]
    if s_state:
        ar = np.arange(M)
        rc = np.stack([ar // W, ar % W]).astype(np.int32)        # (2, M) row / col idx
        args += [rc, params["ws_T"], params["bs"], params["w7"]]
        in_specs += [_vmem_full(rc), _vmem_full(params["ws_T"]),
                     _vmem_full(params["bs"]), smem_spec]
    if c_state:
        args += [params["w3"], params["ln_g_col"], params["ln_b_col"], params["wlin"]]
        in_specs += [smem_spec, _vmem_full(params["ln_g_col"]),
                     _vmem_full(params["ln_b_col"]), _vmem_full(params["wlin"])]

    y = pl.pallas_call(
        _make_saan_kernel(H, W, s_state, c_state),
        out_shape=jax.ShapeDtypeStruct((B, C, M), BF16),
        grid=(B,),
        in_specs=in_specs,
        out_specs=pl.BlockSpec((1, C, M), lambda b: (b, 0, 0)),
        compiler_params=pltpu.CompilerParams(
            dimension_semantics=("parallel",),
            vmem_limit_bytes=_vmem_limit_bytes()),
    )(*args)
    return y.reshape(B, C, H, W)


# ----------------------------------------------------------------------------------
# Deterministic parameters (matching SAAN_Attention(k_size=3, ch, s_state, c_state))
# ----------------------------------------------------------------------------------
def init_params(key, ch):
    c4 = ch // 4
    k1, k2, k3, k4, k5, k6 = jax.random.split(key, 6)
    # conv_s = Conv(ch, ch//4, k=1): Conv2d(bias=False) + BN + SiLU.  Identity BN
    # (gamma=1, beta=0, mean=0, var=1, eps=1e-3) folded into weight / bias.
    # TODO(synk): re-fold with real BN statistics (same eps) when loading trained weights.
    w = 0.05 * jax.random.normal(k1, (c4, ch), F32)
    ws_T = (w / jnp.sqrt(1.0 + 1e-3)).astype(BF16)        # (C4, C) bf16 MXU operand
    bs = jnp.zeros((c4, 1), F32)
    # s_attention = Conv2d(2, 1, 7, padding=3, bias=False): (2, 49) tap table (SMEM).
    w7 = 0.05 * jax.random.normal(k2, (2, 49), F32)
    # c_attention[0] = Conv1d(1, 1, 3, padding=1, bias=False): 3 scalar taps (SMEM).
    w3 = 0.2 * jax.random.normal(k3, (3,), F32)
    # c_attention[1] = LayerNorm([1, ch])  (affine slightly perturbed to exercise it)
    ln_g = 1.0 + 0.1 * jax.random.normal(k4, (ch,), F32)
    ln_b = 0.1 * jax.random.normal(k5, (ch,), F32)
    # c_attention[3] = Linear(ch, ch, bias=False), stored bf16 (f32 MXU accumulation)
    wlin = (0.05 * jax.random.normal(k6, (ch, ch), F32)).astype(BF16)
    return {
        "ws_T": ws_T, "bs": bs, "w7": w7, "w3": w3,
        "ln_g": ln_g, "ln_b": ln_b,
        "ln_g_col": ln_g.reshape(ch, 1), "ln_b_col": ln_b.reshape(ch, 1),
        "wlin": wlin,
    }


# ----------------------------------------------------------------------------------
# Pure-JAX reference of SAAN_Attention.forward (for validation only)
# ----------------------------------------------------------------------------------
def saan_reference(params, x, *, s_state, c_state):
    xf = x.astype(F32)
    y_c = y_s = None
    if c_state:
        p_avg = jnp.mean(xf, axis=(2, 3))                 # (B, C)
        p_max = jnp.max(xf, axis=(2, 3))                  # (B, C)
        w3 = params["w3"]

        def c_att(p):
            pz = jnp.pad(p, ((0, 0), (1, 1)))             # Conv1d(k=3, pad=1)
            t = w3[0] * pz[:, :-2] + w3[1] * pz[:, 1:-1] + w3[2] * pz[:, 2:]
            mu = jnp.mean(t, axis=-1, keepdims=True)
            var = jnp.mean((t - mu) ** 2, axis=-1, keepdims=True)
            tn = (t - mu) / jnp.sqrt(var + 1e-5) * params["ln_g"] + params["ln_b"]
            tl = jnp.where(tn >= 0.0, tn, 0.3 * tn)
            return jnp.dot(tl.astype(BF16), params["wlin"].T,
                           preferred_element_type=jnp.float32)

        y_c = jax.nn.sigmoid(c_att(p_avg) + c_att(p_max))[:, :, None, None]
    if s_state:
        xs = jnp.einsum("dc,bchw->bdhw", params["ws_T"], x.astype(BF16),
                        preferred_element_type=jnp.float32)
        xs = xs + params["bs"].reshape(1, -1, 1, 1)
        xs = xs * jax.nn.sigmoid(xs)                      # SiLU
        stats = jnp.concatenate(
            [jnp.mean(xs, axis=1, keepdims=True),
             jnp.max(xs, axis=1, keepdims=True)], axis=1)  # (B, 2, H, W)
        s_raw = lax.conv_general_dilated(
            stats, params["w7"].reshape(1, 2, 7, 7),
            window_strides=(1, 1), padding=((3, 3), (3, 3)),
            dimension_numbers=("NCHW", "OIHW", "NCHW"))
        y_s = jax.nn.sigmoid(s_raw)                       # (B, 1, H, W)
    if s_state and c_state:
        return xf * y_s * y_c + xf
    if c_state:
        return xf * y_c + xf
    if s_state:
        return xf * y_s + xf
    return xf


# ----------------------------------------------------------------------------------
if __name__ == "__main__":
    key = jax.random.PRNGKey(0)
    kp, kx = jax.random.split(key)
    B, C, H, W = 2, 64, 16, 16          # small NCHW input; C%8==0, (H*W)%128==0
    params = init_params(kp, C)
    x = jax.random.normal(kx, (B, C, H, W), F32).astype(BF16)

    fwd = jax.jit(saan_attention, static_argnames=("s_state", "c_state"))
    for s_state, c_state in ((True, True), (True, False), (False, True)):
        y = fwd(params, x, s_state=s_state, c_state=c_state)
        y_ref = saan_reference(params, x, s_state=s_state, c_state=c_state)
        y, y_ref = jax.block_until_ready((y, y_ref))
        assert y.shape == (B, C, H, W)
        assert y.dtype == BF16
        yf = y.astype(F32)
        assert bool(jnp.all(jnp.isfinite(yf)))
        err = float(jnp.max(jnp.abs(yf - y_ref)))
        assert err < 5e-2, f"s_state={s_state} c_state={c_state} max_err={err}"

    # s_state = c_state = False  ->  identity (torch: y = x)
    y_id = jax.block_until_ready(saan_attention(params, x, s_state=False, c_state=False))
    assert jnp.array_equal(y_id, x)
    print("KERNEL_OK")
</pallas_src>

<mosaic_0001>
module attributes {stable_mosaic.version = 11 : i64} {
  func.func @kernel(%arg0: i32, %arg1: memref<1x64x256xbf16, #tpu.memory_space<vmem>>, %arg2: memref<2x256xi32, #tpu.memory_space<vmem>>, %arg3: memref<16x64xbf16, #tpu.memory_space<vmem>>, %arg4: memref<16x1xf32, #tpu.memory_space<vmem>>, %arg5: memref<2x49xf32, #tpu.memory_space<smem>>, %arg6: memref<3xf32, #tpu.memory_space<smem>>, %arg7: memref<64x1xf32, #tpu.memory_space<vmem>>, %arg8: memref<64x1xf32, #tpu.memory_space<vmem>>, %arg9: memref<64x64xbf16, #tpu.memory_space<vmem>>, %arg10: memref<1x64x256xbf16, #tpu.memory_space<vmem>>) attributes {dimension_semantics = [#tpu.dimension_semantics<parallel>], iteration_bounds = array<i64: 2>, scalar_prefetch = 0 : i64, scratch_operands = 0 : i64, tpu.core_type = #tpu.core_type<tc>, window_params = [{transform_indices = @transform_0, window_bounds = array<i64: 1, 64, 256>}, {pipeline_mode = #tpu.pipeline_mode<synchronous>, transform_indices = @transform_1, window_bounds = array<i64: 2, 256>}, {pipeline_mode = #tpu.pipeline_mode<synchronous>, transform_indices = @transform_2, window_bounds = array<i64: 16, 64>}, {pipeline_mode = #tpu.pipeline_mode<synchronous>, transform_indices = @transform_3, window_bounds = array<i64: 16, 1>}, {transform_indices = @transform_4, window_bounds = array<i64: 2, 49>}, {transform_indices = @transform_5, window_bounds = array<i64: 3>}, {pipeline_mode = #tpu.pipeline_mode<synchronous>, transform_indices = @transform_6, window_bounds = array<i64: 64, 1>}, {pipeline_mode = #tpu.pipeline_mode<synchronous>, transform_indices = @transform_7, window_bounds = array<i64: 64, 1>}, {pipeline_mode = #tpu.pipeline_mode<synchronous>, transform_indices = @transform_8, window_bounds = array<i64: 64, 64>}, {transform_indices = @transform_9, window_bounds = array<i64: 1, 64, 256>}]} {
    %c0 = arith.constant 0 : index
    %c0_0 = arith.constant 0 : index
    %c0_1 = arith.constant 0 : index
    %0 = vector.load %arg1[%c0, %c0_0, %c0_1] : memref<1x64x256xbf16, #tpu.memory_space<vmem>>, vector<1x64x256xbf16>
    %1 = vector.shape_cast %0 : vector<1x64x256xbf16> to vector<64x256xbf16>
    %2 = arith.extf %1 : vector<64x256xbf16> to vector<64x256xf32>
    %cst = arith.constant dense<0.000000e+00> : vector<64xf32>
    %3 = vector.multi_reduction <add>, %2, %cst [1] : vector<64x256xf32> to vector<64xf32>
    %4 = vector.shape_cast %3 : vector<64xf32> to vector<64x1xf32>
    %cst_2 = arith.constant 2.560000e+02 : f32
    %5 = vector.broadcast %cst_2 : f32 to vector<64x1xf32>
    %6 = arith.divf %4, %5 : vector<64x1xf32>
    %cst_3 = arith.constant dense<0xFF800000> : vector<64xf32>
    %7 = vector.multi_reduction <maximumf>, %2, %cst_3 [1] : vector<64x256xf32> to vector<64xf32>
    %8 = vector.shape_cast %7 : vector<64xf32> to vector<64x1xf32>
    %9 = tpu.concatenate %6, %8 in 1 : vector<64x1xf32>, vector<64x1xf32> -> vector<64x2xf32>
    %cst_4 = arith.constant 0.000000e+00 : f32
    %10 = vector.broadcast %cst_4 : f32 to vector<1x2xf32>
    %11 = vector.extract_strided_slice %9 {offsets = [0, 0], sizes = [63, 2], strides = [1, 1]} : vector<64x2xf32> to vector<63x2xf32>
    %12 = tpu.concatenate %10, %11 in 0 : vector<1x2xf32>, vector<63x2xf32> -> vector<64x2xf32>
    %13 = vector.extract_strided_slice %9 {offsets = [1, 0], sizes = [63, 2], strides = [1, 1]} : vector<64x2xf32> to vector<63x2xf32>
    %14 = tpu.concatenate %13, %10 in 0 : vector<63x2xf32>, vector<1x2xf32> -> vector<64x2xf32>
    %c0_5 = arith.constant 0 : index
    %15 = memref.load %arg6[%c0_5] : memref<3xf32, #tpu.memory_space<smem>>
    %16 = vector.broadcast %15 : f32 to vector<64x2xf32>
    %17 = arith.mulf %16, %12 : vector<64x2xf32>
    %c1 = arith.constant 1 : index
    %18 = memref.load %arg6[%c1] : memref<3xf32, #tpu.memory_space<smem>>
    %19 = vector.broadcast %18 : f32 to vector<64x2xf32>
    %20 = arith.mulf %19, %9 : vector<64x2xf32>
    %21 = arith.addf %17, %20 : vector<64x2xf32>
    %c2 = arith.constant 2 : index
    %22 = memref.load %arg6[%c2] : memref<3xf32, #tpu.memory_space<smem>>
    %23 = vector.broadcast %22 : f32 to vector<64x2xf32>
    %24 = arith.mulf %23, %14 : vector<64x2xf32>
    %25 = arith.addf %21, %24 : vector<64x2xf32>
    %cst_6 = arith.constant dense<0.000000e+00> : vector<2xf32>
    %26 = vector.multi_reduction <add>, %25, %cst_6 [0] : vector<64x2xf32> to vector<2xf32>
    %27 = vector.shape_cast %26 : vector<2xf32> to vector<1x2xf32>
    %cst_7 = arith.constant 6.400000e+01 : f32
    %28 = vector.broadcast %cst_7 : f32 to vector<1x2xf32>
    %29 = arith.divf %27, %28 : vector<1x2xf32>
    %30 = vector.broadcast %29 : vector<1x2xf32> to vector<64x2xf32>
    %31 = arith.subf %25, %30 : vector<64x2xf32>
    %32 = arith.mulf %31, %31 : vector<64x2xf32>
    %cst_8 = arith.constant dense<0.000000e+00> : vector<2xf32>
    %33 = vector.multi_reduction <add>, %32, %cst_8 [0] : vector<64x2xf32> to vector<2xf32>
    %34 = vector.shape_cast %33 : vector<2xf32> to vector<1x2xf32>
    %cst_9 = arith.constant 6.400000e+01 : f32
    %35 = vector.broadcast %cst_9 : f32 to vector<1x2xf32>
    %36 = arith.divf %34, %35 : vector<1x2xf32>
    %37 = vector.broadcast %29 : vector<1x2xf32> to vector<64x2xf32>
    %38 = arith.subf %25, %37 : vector<64x2xf32>
    %cst_10 = arith.constant 9.99999974E-6 : f32
    %39 = vector.broadcast %cst_10 : f32 to vector<1x2xf32>
    %40 = arith.addf %36, %39 : vector<1x2xf32>
    %41 = math.rsqrt %40 : vector<1x2xf32>
    %42 = vector.broadcast %41 : vector<1x2xf32> to vector<64x2xf32>
    %43 = arith.mulf %38, %42 : vector<64x2xf32>
    %c0_11 = arith.constant 0 : index
    %c0_12 = arith.constant 0 : index
    %44 = vector.load %arg7[%c0_11, %c0_12] : memref<64x1xf32, #tpu.memory_space<vmem>>, vector<64x1xf32>
    %45 = vector.broadcast %44 : vector<64x1xf32> to vector<64x2xf32>
    %46 = arith.mulf %43, %45 : vector<64x2xf32>
    %c0_13 = arith.constant 0 : index
    %c0_14 = arith.constant 0 : index
    %47 = vector.load %arg8[%c0_13, %c0_14] : memref<64x1xf32, #tpu.memory_space<vmem>>, vector<64x1xf32>
    %48 = vector.broadcast %47 : vector<64x1xf32> to vector<64x2xf32>
    %49 = arith.addf %46, %48 : vector<64x2xf32>
    %cst_15 = arith.constant 0.000000e+00 : f32
    %50 = vector.broadcast %cst_15 : f32 to vector<64x2xf32>
    %51 = arith.cmpf oge, %49, %50 : vector<64x2xf32>
    %cst_16 = arith.constant 3.000000e-01 : f32
    %52 = vector.broadcast %cst_16 : f32 to vector<64x2xf32>
    %53 = arith.mulf %52, %49 : vector<64x2xf32>
    %54 = arith.select %51, %49, %53 : vector<64x2xi1>, vector<64x2xf32>
    %c0_17 = arith.constant 0 : index
    %c0_18 = arith.constant 0 : index
    %55 = vector.load %arg9[%c0_17, %c0_18] : memref<64x64xbf16, #tpu.memory_space<vmem>>, vector<64x64xbf16>
    %56 = arith.truncf %54 : vector<64x2xf32> to vector<64x2xbf16>
    %cst_19 = arith.constant dense<0.000000e+00> : vector<64x2xf32>
    %57 = tpu.matmul %55, %56, %cst_19 {dimension_numbers = #tpu.dot_dimension_numbers<[1], [0], [0], [1], [0, 0, 1, 1], [], []>} : vector<64x64xbf16>, vector<64x2xbf16>, vector<64x2xf32> -> vector<64x2xf32>
    %58 = vector.extract_strided_slice %57 {offsets = [0, 0], sizes = [64, 1], strides = [1, 1]} : vector<64x2xf32> to vector<64x1xf32>
    %59 = vector.extract_strided_slice %57 {offsets = [0, 1], sizes = [64, 1], strides = [1, 1]} : vector<64x2xf32> to vector<64x1xf32>
    %60 = arith.addf %58, %59 : vector<64x1xf32>
    %61 = arith.negf %60 : vector<64x1xf32>
    %62 = math.exp %61 : vector<64x1xf32>
    %cst_20 = arith.constant 1.000000e+00 : f32
    %63 = vector.broadcast %cst_20 : f32 to vector<64x1xf32>
    %64 = arith.addf %63, %62 : vector<64x1xf32>
    %65 = arith.divf %63, %64 : vector<64x1xf32>
    %c0_21 = arith.constant 0 : index
    %c0_22 = arith.constant 0 : index
    %66 = vector.load %arg3[%c0_21, %c0_22] : memref<16x64xbf16, #tpu.memory_space<vmem>>, vector<16x64xbf16>
    %c0_23 = arith.constant 0 : index
    %c0_24 = arith.constant 0 : index
    %c0_25 = arith.constant 0 : index
    %67 = vector.load %arg1[%c0_23, %c0_24, %c0_25] : memref<1x64x256xbf16, #tpu.memory_space<vmem>>, vector<1x64x256xbf16>
    %68 = vector.shape_cast %67 : vector<1x64x256xbf16> to vector<64x256xbf16>
    %cst_26 = arith.constant dense<0.000000e+00> : vector<16x256xf32>
    %69 = tpu.matmul %66, %68, %cst_26 {dimension_numbers = #tpu.dot_dimension_numbers<[1], [0], [0], [1], [0, 0, 1, 1], [], []>} : vector<16x64xbf16>, vector<64x256xbf16>, vector<16x256xf32> -> vector<16x256xf32>
    %c0_27 = arith.constant 0 : index
    %c0_28 = arith.constant 0 : index
    %70 = vector.load %arg4[%c0_27, %c0_28] : memref<16x1xf32, #tpu.memory_space<vmem>>, vector<16x1xf32>
    %71 = vector.broadcast %70 : vector<16x1xf32> to vector<16x256xf32>
    %72 = arith.addf %69, %71 : vector<16x256xf32>
    %73 = arith.negf %72 : vector<16x256xf32>
    %74 = math.exp %73 : vector<16x256xf32>
    %cst_29 = arith.constant 1.000000e+00 : f32
    %75 = vector.broadcast %cst_29 : f32 to vector<16x256xf32>
    %76 = arith.addf %75, %74 : vector<16x256xf32>
    %77 = arith.divf %75, %76 : vector<16x256xf32>
    %78 = arith.mulf %72, %77 : vector<16x256xf32>
    %cst_30 = arith.constant dense<0.000000e+00> : vector<256xf32>
    %79 = vector.multi_reduction <add>, %78, %cst_30 [0] : vector<16x256xf32> to vector<256xf32>
    %80 = vector.shape_cast %79 : vector<256xf32> to vector<1x256xf32>
    %cst_31 = arith.constant 1.600000e+01 : f32
    %81 = vector.broadcast %cst_31 : f32 to vector<1x256xf32>
    %82 = arith.divf %80, %81 : vector<1x256xf32>
    %cst_32 = arith.constant dense<0xFF800000> : vector<256xf32>
    %83 = vector.multi_reduction <maximumf>, %78, %cst_32 [0] : vector<16x256xf32> to vector<256xf32>
    %84 = vector.shape_cast %83 : vector<256xf32> to vector<1x256xf32>
    %85 = tpu.concatenate %82, %84 in 0 : vector<1x256xf32>, vector<1x256xf32> -> vector<2x256xf32>
    %c0_33 = arith.constant 0 : index
    %c0_34 = arith.constant 0 : index
    %86 = vector.load %arg2[%c0_33, %c0_34] : memref<2x256xi32, #tpu.memory_space<vmem>>, vector<1x256xi32>
    %c1_35 = arith.constant 1 : index
    %c0_36 = arith.constant 0 : index
    %87 = vector.load %arg2[%c1_35, %c0_36] : memref<2x256xi32, #tpu.memory_space<vmem>>, vector<1x256xi32>
    %c3_i32 = arith.constant 3 : i32
    %88 = vector.broadcast %c3_i32 : i32 to vector<1x256xi32>
    %89 = arith.cmpi sge, %86, %88 : vector<1x256xi32>
    %c2_i32 = arith.constant 2 : i32
    %90 = vector.broadcast %c2_i32 : i32 to vector<1x256xi32>
    %91 = arith.cmpi sge, %86, %90 : vector<1x256xi32>
    %c1_i32 = arith.constant 1 : i32
    %92 = vector.broadcast %c1_i32 : i32 to vector<1x256xi32>
    %93 = arith.cmpi sge, %86, %92 : vector<1x256xi32>
    %c15_i32 = arith.constant 15 : i32
    %94 = vector.broadcast %c15_i32 : i32 to vector<1x256xi32>
    %95 = arith.cmpi slt, %86, %94 : vector<1x256xi32>
    %c14_i32 = arith.constant 14 : i32
    %96 = vector.broadcast %c14_i32 : i32 to vector<1x256xi32>
    %97 = arith.cmpi slt, %86, %96 : vector<1x256xi32>
    %c13_i32 = arith.constant 13 : i32
    %98 = vector.broadcast %c13_i32 : i32 to vector<1x256xi32>
    %99 = arith.cmpi slt, %86, %98 : vector<1x256xi32>
    %c3_i32_37 = arith.constant 3 : i32
    %100 = vector.broadcast %c3_i32_37 : i32 to vector<1x256xi32>
    %101 = arith.cmpi sge, %87, %100 : vector<1x256xi32>
    %c2_i32_38 = arith.constant 2 : i32
    %102 = vector.broadcast %c2_i32_38 : i32 to vector<1x256xi32>
    %103 = arith.cmpi sge, %87, %102 : vector<1x256xi32>
    %c1_i32_39 = arith.constant 1 : i32
    %104 = vector.broadcast %c1_i32_39 : i32 to vector<1x256xi32>
    %105 = arith.cmpi sge, %87, %104 : vector<1x256xi32>
    %c15_i32_40 = arith.constant 15 : i32
    %106 = vector.broadcast %c15_i32_40 : i32 to vector<1x256xi32>
    %107 = arith.cmpi slt, %87, %106 : vector<1x256xi32>
    %c14_i32_41 = arith.constant 14 : i32
    %108 = vector.broadcast %c14_i32_41 : i32 to vector<1x256xi32>
    %109 = arith.cmpi slt, %87, %108 : vector<1x256xi32>
    %c13_i32_42 = arith.constant 13 : i32
    %110 = vector.broadcast %c13_i32_42 : i32 to vector<1x256xi32>
    %111 = arith.cmpi slt, %87, %110 : vector<1x256xi32>
    %cst_43 = arith.constant 0.000000e+00 : f32
    %112 = vector.broadcast %cst_43 : f32 to vector<1x256xf32>
    %c51_i32 = arith.constant 51 : i32
    %113 = tpu.dynamic_rotate %85 by %c51_i32 dim 1 : vector<2x256xf32>, i32 -> vector<2x256xf32>
    %114 = arith.andi %89, %101 : vector<1x256xi1>
    %cst_44 = arith.constant 0.000000e+00 : f32
    %115 = vector.shape_cast %114 : vector<1x256xi1> to vector<1x256xi1>
    %116 = vector.broadcast %115 : vector<1x256xi1> to vector<2x256xi1>
    %117 = vector.broadcast %cst_44 : f32 to vector<2x256xf32>
    %118 = arith.select %116, %113, %117 : vector<2x256xi1>, vector<2x256xf32>
    %c0_45 = arith.constant 0 : index
    %c0_46 = arith.constant 0 : index
    %119 = memref.load %arg5[%c0_45, %c0_46] : memref<2x49xf32, #tpu.memory_space<smem>>
    %120 = vector.extract_strided_slice %118 {offsets = [0, 0], sizes = [1, 256], strides = [1, 1]} : vector<2x256xf32> to vector<1x256xf32>
    %121 = vector.broadcast %119 : f32 to vector<1x256xf32>
    %122 = arith.mulf %121, %120 : vector<1x256xf32>
    %123 = arith.addf %112, %122 : vector<1x256xf32>
    %c1_47 = arith.constant 1 : index
    %c0_48 = arith.constant 0 : index
    %124 = memref.load %arg5[%c1_47, %c0_48] : memref<2x49xf32, #tpu.memory_space<smem>>
    %125 = vector.extract_strided_slice %118 {offsets = [1, 0], sizes = [1, 256], strides = [1, 1]} : vector<2x256xf32> to vector<1x256xf32>
    %126 = vector.broadcast %124 : f32 to vector<1x256xf32>
    %127 = arith.mulf %126, %125 : vector<1x256xf32>
    %128 = arith.addf %123, %127 : vector<1x256xf32>
    %c50_i32 = arith.constant 50 : i32
    %129 = tpu.dynamic_rotate %85 by %c50_i32 dim 1 : vector<2x256xf32>, i32 -> vector<2x256xf32>
    %130 = arith.andi %89, %103 : vector<1x256xi1>
    %cst_49 = arith.constant 0.000000e+00 : f32
    %131 = vector.shape_cast %130 : vector<1x256xi1> to vector<1x256xi1>
    %132 = vector.broadcast %131 : vector<1x256xi1> to vector<2x256xi1>
    %133 = vector.broadcast %cst_49 : f32 to vector<2x256xf32>
    %134 = arith.select %132, %129, %133 : vector<2x256xi1>, vector<2x256xf32>
    %c0_50 = arith.constant 0 : index
    %c1_51 = arith.constant 1 : index
    %135 = memref.load %arg5[%c0_50, %c1_51] : memref<2x49xf32, #tpu.memory_space<smem>>
    %136 = vector.extract_strided_slice %134 {offsets = [0, 0], sizes = [1, 256], strides = [1, 1]} : vector<2x256xf32> to vector<1x256xf32>
    %137 = vector.broadcast %135 : f32 to vector<1x256xf32>
    %138 = arith.mulf %137, %136 : vector<1x256xf32>
    %139 = arith.addf %128, %138 : vector<1x256xf32>
    %c1_52 = arith.constant 1 : index
    %c1_53 = arith.constant 1 : index
    %140 = memref.load %arg5[%c1_52, %c1_53] : memref<2x49xf32, #tpu.memory_space<smem>>
    %141 = vector.extract_strided_slice %134 {offsets = [1, 0], sizes = [1, 256], strides = [1, 1]} : vector<2x256xf32> to vector<1x256xf32>
    %142 = vector.broadcast %140 : f32 to vector<1x256xf32>
    %143 = arith.mulf %142, %141 : vector<1x256xf32>
    %144 = arith.addf %139, %143 : vector<1x256xf32>
    %c49_i32 = arith.constant 49 : i32
    %145 = tpu.dynamic_rotate %85 by %c49_i32 dim 1 : vector<2x256xf32>, i32 -> vector<2x256xf32>
    %146 = arith.andi %89, %105 : vector<1x256xi1>
    %cst_54 = arith.constant 0.000000e+00 : f32
    %147 = vector.shape_cast %146 : vector<1x256xi1> to vector<1x256xi1>
    %148 = vector.broadcast %147 : vector<1x256xi1> to vector<2x256xi1>
    %149 = vector.broadcast %cst_54 : f32 to vector<2x256xf32>
    %150 = arith.select %148, %145, %149 : vector<2x256xi1>, vector<2x256xf32>
    %c0_55 = arith.constant 0 : index
    %c2_56 = arith.constant 2 : index
    %151 = memref.load %arg5[%c0_55, %c2_56] : memref<2x49xf32, #tpu.memory_space<smem>>
    %152 = vector.extract_strided_slice %150 {offsets = [0, 0], sizes = [1, 256], strides = [1, 1]} : vector<2x256xf32> to vector<1x256xf32>
    %153 = vector.broadcast %151 : f32 to vector<1x256xf32>
    %154 = arith.mulf %153, %152 : vector<1x256xf32>
    %155 = arith.addf %144, %154 : vector<1x256xf32>
    %c1_57 = arith.constant 1 : index
    %c2_58 = arith.constant 2 : index
    %156 = memref.load %arg5[%c1_57, %c2_58] : memref<2x49xf32, #tpu.memory_space<smem>>
    %157 = vector.extract_strided_slice %150 {offsets = [1, 0], sizes = [1, 256], strides = [1, 1]} : vector<2x256xf32> to vector<1x256xf32>
    %158 = vector.broadcast %156 : f32 to vector<1x256xf32>
    %159 = arith.mulf %158, %157 : vector<1x256xf32>
    %160 = arith.addf %155, %159 : vector<1x256xf32>
    %c48_i32 = arith.constant 48 : i32
    %161 = tpu.dynamic_rotate %85 by %c48_i32 dim 1 : vector<2x256xf32>, i32 -> vector<2x256xf32>
    %cst_59 = arith.constant 0.000000e+00 : f32
    %162 = vector.shape_cast %89 : vector<1x256xi1> to vector<1x256xi1>
    %163 = vector.broadcast %162 : vector<1x256xi1> to vector<2x256xi1>
    %164 = vector.broadcast %cst_59 : f32 to vector<2x256xf32>
    %165 = arith.select %163, %161, %164 : vector<2x256xi1>, vector<2x256xf32>
    %c0_60 = arith.constant 0 : index
    %c3 = arith.constant 3 : index
    %166 = memref.load %arg5[%c0_60, %c3] : memref<2x49xf32, #tpu.memory_space<smem>>
    %167 = vector.extract_strided_slice %165 {offsets = [0, 0], sizes = [1, 256], strides = [1, 1]} : vector<2x256xf32> to vector<1x256xf32>
    %168 = vector.broadcast %166 : f32 to vector<1x256xf32>
    %169 = arith.mulf %168, %167 : vector<1x256xf32>
    %170 = arith.addf %160, %169 : vector<1x256xf32>
    %c1_61 = arith.constant 1 : index
    %c3_62 = arith.constant 3 : index
    %171 = memref.load %arg5[%c1_61, %c3_62] : memref<2x49xf32, #tpu.memory_space<smem>>
    %172 = vector.extract_strided_slice %165 {offsets = [1, 0], sizes = [1, 256], strides = [1, 1]} : vector<2x256xf32> to vector<1x256xf32>
    %173 = vector.broadcast %171 : f32 to vector<1x256xf32>
    %174 = arith.mulf %173, %172 : vector<1x256xf32>
    %175 = arith.addf %170, %174 : vector<1x256xf32>
    %c47_i32 = arith.constant 47 : i32
    %176 = tpu.dynamic_rotate %85 by %c47_i32 dim 1 : vector<2x256xf32>, i32 -> vector<2x256xf32>
    %177 = arith.andi %89, %107 : vector<1x256xi1>
    %cst_63 = arith.constant 0.000000e+00 : f32
    %178 = vector.shape_cast %177 : vector<1x256xi1> to vector<1x256xi1>
    %179 = vector.broadcast %178 : vector<1x256xi1> to vector<2x256xi1>
    %180 = vector.broadcast %cst_63 : f32 to vector<2x256xf32>
    %181 = arith.select %179, %176, %180 : vector<2x256xi1>, vector<2x256xf32>
    %c0_64 = arith.constant 0 : index
    %c4 = arith.constant 4 : index
    %182 = memref.load %arg5[%c0_64, %c4] : memref<2x49xf32, #tpu.memory_space<smem>>
    %183 = vector.extract_strided_slice %181 {offsets = [0, 0], sizes = [1, 256], strides = [1, 1]} : vector<2x256xf32> to vector<1x256xf32>
    %184 = vector.broadcast %182 : f32 to vector<1x256xf32>
    %185 = arith.mulf %184, %183 : vector<1x256xf32>
    %186 = arith.addf %175, %185 : vector<1x256xf32>
    %c1_65 = arith.constant 1 : index
    %c4_66 = arith.constant 4 : index
    %187 = memref.load %arg5[%c1_65, %c4_66] : memref<2x49xf32, #tpu.memory_space<smem>>
    %188 = vector.extract_strided_slice %181 {offsets = [1, 0], sizes = [1, 256], strides = [1, 1]} : vector<2x256xf32> to vector<1x256xf32>
    %189 = vector.broadcast %187 : f32 to vector<1x256xf32>
    %190 = arith.mulf %189, %188 : vector<1x256xf32>
    %191 = arith.addf %186, %190 : vector<1x256xf32>
    %c46_i32 = arith.constant 46 : i32
    %192 = tpu.dynamic_rotate %85 by %c46_i32 dim 1 : vector<2x256xf32>, i32 -> vector<2x256xf32>
    %193 = arith.andi %89, %109 : vector<1x256xi1>
    %cst_67 = arith.constant 0.000000e+00 : f32
    %194 = vector.shape_cast %193 : vector<1x256xi1> to vector<1x256xi1>
    %195 = vector.broadcast %194 : vector<1x256xi1> to vector<2x256xi1>
    %196 = vector.broadcast %cst_67 : f32 to vector<2x256xf32>
    %197 = arith.select %195, %192, %196 : vector<2x256xi1>, vector<2x256xf32>
    %c0_68 = arith.constant 0 : index
    %c5 = arith.constant 5 : index
    %198 = memref.load %arg5[%c0_68, %c5] : memref<2x49xf32, #tpu.memory_space<smem>>
    %199 = vector.extract_strided_slice %197 {offsets = [0, 0], sizes = [1, 256], strides = [1, 1]} : vector<2x256xf32> to vector<1x256xf32>
    %200 = vector.broadcast %198 : f32 to vector<1x256xf32>
    %201 = arith.mulf %200, %199 : vector<1x256xf32>
    %202 = arith.addf %191, %201 : vector<1x256xf32>
    %c1_69 = arith.constant 1 : index
    %c5_70 = arith.constant 5 : index
    %203 = memref.load %arg5[%c1_69, %c5_70] : memref<2x49xf32, #tpu.memory_space<smem>>
    %204 = vector.extract_strided_slice %197 {offsets = [1, 0], sizes = [1, 256], strides = [1, 1]} : vector<2x256xf32> to vector<1x256xf32>
    %205 = vector.broadcast %203 : f32 to vector<1x256xf32>
    %206 = arith.mulf %205, %204 : vector<1x256xf32>
    %207 = arith.addf %202, %206 : vector<1x256xf32>
    %c45_i32 = arith.constant 45 : i32
    %208 = tpu.dynamic_rotate %85 by %c45_i32 dim 1 : vector<2x256xf32>, i32 -> vector<2x256xf32>
    %209 = arith.andi %89, %111 : vector<1x256xi1>
    %cst_71 = arith.constant 0.000000e+00 : f32
    %210 = vector.shape_cast %209 : vector<1x256xi1> to vector<1x256xi1>
    %211 = vector.broadcast %210 : vector<1x256xi1> to vector<2x256xi1>
    %212 = vector.broadcast %cst_71 : f32 to vector<2x256xf32>
    %213 = arith.select %211, %208, %212 : vector<2x256xi1>, vector<2x256xf32>
    %c0_72 = arith.constant 0 : index
    %c6 = arith.constant 6 : index
    %214 = memref.load %arg5[%c0_72, %c6] : memref<2x49xf32, #tpu.memory_space<smem>>
    %215 = vector.extract_strided_slice %213 {offsets = [0, 0], sizes = [1, 256], strides = [1, 1]} : vector<2x256xf32> to vector<1x256xf32>
    %216 = vector.broadcast %214 : f32 to vector<1x256xf32>
    %217 = arith.mulf %216, %215 : vector<1x256xf32>
    %218 = arith.addf %207, %217 : vector<1x256xf32>
    %c1_73 = arith.constant 1 : index
    %c6_74 = arith.constant 6 : index
    %219 = memref.load %arg5[%c1_73, %c6_74] : memref<2x49xf32, #tpu.memory_space<smem>>
    %220 = vector.extract_strided_slice %213 {offsets = [1, 0], sizes = [1, 256], strides = [1, 1]} : vector<2x256xf32> to vector<1x256xf32>
    %221 = vector.broadcast %219 : f32 to vector<1x256xf32>
    %222 = arith.mulf %221, %220 : vector<1x256xf32>
    %223 = arith.addf %218, %222 : vector<1x256xf32>
    %c35_i32 = arith.constant 35 : i32
    %224 = tpu.dynamic_rotate %85 by %c35_i32 dim 1 : vector<2x256xf32>, i32 -> vector<2x256xf32>
    %225 = arith.andi %91, %101 : vector<1x256xi1>
    %cst_75 = arith.constant 0.000000e+00 : f32
    %226 = vector.shape_cast %225 : vector<1x256xi1> to vector<1x256xi1>
    %227 = vector.broadcast %226 : vector<1x256xi1> to vector<2x256xi1>
    %228 = vector.broadcast %cst_75 : f32 to vector<2x256xf32>
    %229 = arith.select %227, %224, %228 : vector<2x256xi1>, vector<2x256xf32>
    %c0_76 = arith.constant 0 : index
    %c7 = arith.constant 7 : index
    %230 = memref.load %arg5[%c0_76, %c7] : memref<2x49xf32, #tpu.memory_space<smem>>
    %231 = vector.extract_strided_slice %229 {offsets = [0, 0], sizes = [1, 256], strides = [1, 1]} : vector<2x256xf32> to vector<1x256xf32>
    %232 = vector.broadcast %230 : f32 to vector<1x256xf32>
    %233 = arith.mulf %232, %231 : vector<1x256xf32>
    %234 = arith.addf %223, %233 : vector<1x256xf32>
    %c1_77 = arith.constant 1 : index
    %c7_78 = arith.constant 7 : index
    %235 = memref.load %arg5[%c1_77, %c7_78] : memref<2x49xf32, #tpu.memory_space<smem>>
    %236 = vector.extract_strided_slice %229 {offsets = [1, 0], sizes = [1, 256], strides = [1, 1]} : vector<2x256xf32> to vector<1x256xf32>
    %237 = vector.broadcast %235 : f32 to vector<1x256xf32>
    %238 = arith.mulf %237, %236 : vector<1x256xf32>
    %239 = arith.addf %234, %238 : vector<1x256xf32>
    %c34_i32 = arith.constant 34 : i32
    %240 = tpu.dynamic_rotate %85 by %c34_i32 dim 1 : vector<2x256xf32>, i32 -> vector<2x256xf32>
    %241 = arith.andi %91, %103 : vector<1x256xi1>
    %cst_79 = arith.constant 0.000000e+00 : f32
    %242 = vector.shape_cast %241 : vector<1x256xi1> to vector<1x256xi1>
    %243 = vector.broadcast %242 : vector<1x256xi1> to vector<2x256xi1>
    %244 = vector.broadcast %cst_79 : f32 to vector<2x256xf32>
    %245 = arith.select %243, %240, %244 : vector<2x256xi1>, vector<2x256xf32>
    %c0_80 = arith.constant 0 : index
    %c8 = arith.constant 8 : index
    %246 = memref.load %arg5[%c0_80, %c8] : memref<2x49xf32, #tpu.memory_space<smem>>
    %247 = vector.extract_strided_slice %245 {offsets = [0, 0], sizes = [1, 256], strides = [1, 1]} : vector<2x256xf32> to vector<1x256xf32>
    %248 = vector.broadcast %246 : f32 to vector<1x256xf32>
    %249 = arith.mulf %248, %247 : vector<1x256xf32>
    %250 = arith.addf %239, %249 : vector<1x256xf32>
    %c1_81 = arith.constant 1 : index
    %c8_82 = arith.constant 8 : index
    %251 = memref.load %arg5[%c1_81, %c8_82] : memref<2x49xf32, #tpu.memory_space<smem>>
    %252 = vector.extract_strided_slice %245 {offsets = [1, 0], sizes = [1, 256], strides = [1, 1]} : vector<2x256xf32> to vector<1x256xf32>
    %253 = vector.broadcast %251 : f32 to vector<1x256xf32>
    %254 = arith.mulf %253, %252 : vector<1x256xf32>
    %255 = arith.addf %250, %254 : vector<1x256xf32>
    %c33_i32 = arith.constant 33 : i32
    %256 = tpu.dynamic_rotate %85 by %c33_i32 dim 1 : vector<2x256xf32>, i32 -> vector<2x256xf32>
    %257 = arith.andi %91, %105 : vector<1x256xi1>
    %cst_83 = arith.constant 0.000000e+00 : f32
    %258 = vector.shape_cast %257 : vector<1x256xi1> to vector<1x256xi1>
    %259 = vector.broadcast %258 : vector<1x256xi1> to vector<2x256xi1>
    %260 = vector.broadcast %cst_83 : f32 to vector<2x256xf32>
    %261 = arith.select %259, %256, %260 : vector<2x256xi1>, vector<2x256xf32>
    %c0_84 = arith.constant 0 : index
    %c9 = arith.constant 9 : index
    %262 = memref.load %arg5[%c0_84, %c9] : memref<2x49xf32, #tpu.memory_space<smem>>
    %263 = vector.extract_strided_slice %261 {offsets = [0, 0], sizes = [1, 256], strides = [1, 1]} : vector<2x256xf32> to vector<1x256xf32>
    %264 = vector.broadcast %262 : f32 to vector<1x256xf32>
    %265 = arith.mulf %264, %263 : vector<1x256xf32>
    %266 = arith.addf %255, %265 : vector<1x256xf32>
    %c1_85 = arith.constant 1 : index
    %c9_86 = arith.constant 9 : index
    %267 = memref.load %arg5[%c1_85, %c9_86] : memref<2x49xf32, #tpu.memory_space<smem>>
    %268 = vector.extract_strided_slice %261 {offsets = [1, 0], sizes = [1, 256], strides = [1, 1]} : vector<2x256xf32> to vector<1x256xf32>
    %269 = vector.broadcast %267 : f32 to vector<1x256xf32>
    %270 = arith.mulf %269, %268 : vector<1x256xf32>
    %271 = arith.addf %266, %270 : vector<1x256xf32>
    %c32_i32 = arith.constant 32 : i32
    %272 = tpu.dynamic_rotate %85 by %c32_i32 dim 1 : vector<2x256xf32>, i32 -> vector<2x256xf32>
    %cst_87 = arith.constant 0.000000e+00 : f32
    %273 = vector.shape_cast %91 : vector<1x256xi1> to vector<1x256xi1>
    %274 = vector.broadcast %273 : vector<1x256xi1> to vector<2x256xi1>
    %275 = vector.broadcast %cst_87 : f32 to vector<2x256xf32>
    %276 = arith.select %274, %272, %275 : vector<2x256xi1>, vector<2x256xf32>
    %c0_88 = arith.constant 0 : index
    %c10 = arith.constant 10 : index
    %277 = memref.load %arg5[%c0_88, %c10] : memref<2x49xf32, #tpu.memory_space<smem>>
    %278 = vector.extract_strided_slice %276 {offsets = [0, 0], sizes = [1, 256], strides = [1, 1]} : vector<2x256xf32> to vector<1x256xf32>
    %279 = vector.broadcast %277 : f32 to vector<1x256xf32>
    %280 = arith.mulf %279, %278 : vector<1x256xf32>
    %281 = arith.addf %271, %280 : vector<1x256xf32>
    %c1_89 = arith.constant 1 : index
    %c10_90 = arith.constant 10 : index
    %282 = memref.load %arg5[%c1_89, %c10_90] : memref<2x49xf32, #tpu.memory_space<smem>>
    %283 = vector.extract_strided_slice %276 {offsets = [1, 0], sizes = [1, 256], strides = [1, 1]} : vector<2x256xf32> to vector<1x256xf32>
    %284 = vector.broadcast %282 : f32 to vector<1x256xf32>
    %285 = arith.mulf %284, %283 : vector<1x256xf32>
    %286 = arith.addf %281, %285 : vector<1x256xf32>
    %c31_i32 = arith.constant 31 : i32
    %287 = tpu.dynamic_rotate %85 by %c31_i32 dim 1 : vector<2x256xf32>, i32 -> vector<2x256xf32>
    %288 = arith.andi %91, %107 : vector<1x256xi1>
    %cst_91 = arith.constant 0.000000e+00 : f32
    %289 = vector.shape_cast %288 : vector<1x256xi1> to vector<1x256xi1>
    %290 = vector.broadcast %289 : vector<1x256xi1> to vector<2x256xi1>
    %291 = vector.broadcast %cst_91 : f32 to vector<2x256xf32>
    %292 = arith.select %290, %287, %291 : vector<2x256xi1>, vector<2x256xf32>
    %c0_92 = arith.constant 0 : index
    %c11 = arith.constant 11 : index
    %293 = memref.load %arg5[%c0_92, %c11] : memref<2x49xf32, #tpu.memory_space<smem>>
    %294 = vector.extract_strided_slice %292 {offsets = [0, 0], sizes = [1, 256], strides = [1, 1]} : vector<2x256xf32> to vector<1x256xf32>
    %295 = vector.broadcast %293 : f32 to vector<1x256xf32>
    %296 = arith.mulf %295, %294 : vector<1x256xf32>
    %297 = arith.addf %286, %296 : vector<1x256xf32>
    %c1_93 = arith.constant 1 : index
    %c11_94 = arith.constant 11 : index
    %298 = memref.load %arg5[%c1_93, %c11_94] : memref<2x49xf32, #tpu.memory_space<smem>>
    %299 = vector.extract_strided_slice %292 {offsets = [1, 0], sizes = [1, 256], strides = [1, 1]} : vector<2x256xf32> to vector<1x256xf32>
    %300 = vector.broadcast %298 : f32 to vector<1x256xf32>
    %301 = arith.mulf %300, %299 : vector<1x256xf32>
    %302 = arith.addf %297, %301 : vector<1x256xf32>
    %c30_i32 = arith.constant 30 : i32
    %303 = tpu.dynamic_rotate %85 by %c30_i32 dim 1 : vector<2x256xf32>, i32 -> vector<2x256xf32>
    %304 = arith.andi %91, %109 : vector<1x256xi1>
    %cst_95 = arith.constant 0.000000e+00 : f32
    %305 = vector.shape_cast %304 : vector<1x256xi1> to vector<1x256xi1>
    %306 = vector.broadcast %305 : vector<1x256xi1> to vector<2x256xi1>
    %307 = vector.broadcast %cst_95 : f32 to vector<2x256xf32>
    %308 = arith.select %306, %303, %307 : vector<2x256xi1>, vector<2x256xf32>
    %c0_96 = arith.constant 0 : index
    %c12 = arith.constant 12 : index
    %309 = memref.load %arg5[%c0_96, %c12] : memref<2x49xf32, #tpu.memory_space<smem>>
    %310 = vector.extract_strided_slice %308 {offsets = [0, 0], sizes = [1, 256], strides = [1, 1]} : vector<2x256xf32> to vector<1x256xf32>
    %311 = vector.broadcast %309 : f32 to vector<1x256xf32>
    %312 = arith.mulf %311, %310 : vector<1x256xf32>
    %313 = arith.addf %302, %312 : vector<1x256xf32>
    %c1_97 = arith.constant 1 : index
    %c12_98 = arith.constant 12 : index
    %314 = memref.load %arg5[%c1_97, %c12_98] : memref<2x49xf32, #tpu.memory_space<smem>>
    %315 = vector.extract_strided_slice %308 {offsets = [1, 0], sizes = [1, 256], strides = [1, 1]} : vector<2x256xf32> to vector<1x256xf32>
    %316 = vector.broadcast %314 : f32 to vector<1x256xf32>
    %317 = arith.mulf %316, %315 : vector<1x256xf32>
    %318 = arith.addf %313, %317 : vector<1x256xf32>
    %c29_i32 = arith.constant 29 : i32
    %319 = tpu.dynamic_rotate %85 by %c29_i32 dim 1 : vector<2x256xf32>, i32 -> vector<2x256xf32>
    %320 = arith.andi %91, %111 : vector<1x256xi1>
    %cst_99 = arith.constant 0.000000e+00 : f32
    %321 = vector.shape_cast %320 : vector<1x256xi1> to vector<1x256xi1>
    %322 = vector.broadcast %321 : vector<1x256xi1> to vector<2x256xi1>
    %323 = vector.broadcast %cst_99 : f32 to vector<2x256xf32>
    %324 = arith.select %322, %319, %323 : vector<2x256xi1>, vector<2x256xf32>
    %c0_100 = arith.constant 0 : index
    %c13 = arith.constant 13 : index
    %325 = memref.load %arg5[%c0_100, %c13] : memref<2x49xf32, #tpu.memory_space<smem>>
    %326 = vector.extract_strided_slice %324 {offsets = [0, 0], sizes = [1, 256], strides = [1, 1]} : vector<2x256xf32> to vector<1x256xf32>
    %327 = vector.broadcast %325 : f32 to vector<1x256xf32>
    %328 = arith.mulf %327, %326 : vector<1x256xf32>
    %329 = arith.addf %318, %328 : vector<1x256xf32>
    %c1_101 = arith.constant 1 : index
    %c13_102 = arith.constant 13 : index
    %330 = memref.load %arg5[%c1_101, %c13_102] : memref<2x49xf32, #tpu.memory_space<smem>>
    %331 = vector.extract_strided_slice %324 {offsets = [1, 0], sizes = [1, 256], strides = [1, 1]} : vector<2x256xf32> to vector<1x256xf32>
    %332 = vector.broadcast %330 : f32 to vector<1x256xf32>
    %333 = arith.mulf %332, %331 : vector<1x256xf32>
    %334 = arith.addf %329, %333 : vector<1x256xf32>
    %c19_i32 = arith.constant 19 : i32
    %335 = tpu.dynamic_rotate %85 by %c19_i32 dim 1 : vector<2x256xf32>, i32 -> vector<2x256xf32>
    %336 = arith.andi %93, %101 : vector<1x256xi1>
    %cst_103 = arith.constant 0.000000e+00 : f32
    %337 = vector.shape_cast %336 : vector<1x256xi1> to vector<1x256xi1>
    %338 = vector.broadcast %337 : vector<1x256xi1> to vector<2x256xi1>
    %339 = vector.broadcast %cst_103 : f32 to vector<2x256xf32>
    %340 = arith.select %338, %335, %339 : vector<2x256xi1>, vector<2x256xf32>
    %c0_104 = arith.constant 0 : index
    %c14 = arith.constant 14 : index
    %341 = memref.load %arg5[%c0_104, %c14] : memref<2x49xf32, #tpu.memory_space<smem>>
    %342 = vector.extract_strided_slice %340 {offsets = [0, 0], sizes = [1, 256], strides = [1, 1]} : vector<2x256xf32> to vector<1x256xf32>
    %343 = vector.broadcast %341 : f32 to vector<1x256xf32>
    %344 = arith.mulf %343, %342 : vector<1x256xf32>
    %345 = arith.addf %334, %344 : vector<1x256xf32>
    %c1_105 = arith.constant 1 : index
    %c14_106 = arith.constant 14 : index
    %346 = memref.load %arg5[%c1_105, %c14_106] : memref<2x49xf32, #tpu.memory_space<smem>>
    %347 = vector.extract_strided_slice %340 {offsets = [1, 0], sizes = [1, 256], strides = [1, 1]} : vector<2x256xf32> to vector<1x256xf32>
    %348 = vector.broadcast %346 : f32 to vector<1x256xf32>
    %349 = arith.mulf %348, %347 : vector<1x256xf32>
    %350 = arith.addf %345, %349 : vector<1x256xf32>
    %c18_i32 = arith.constant 18 : i32
    %351 = tpu.dynamic_rotate %85 by %c18_i32 dim 1 : vector<2x256xf32>, i32 -> vector<2x256xf32>
    %352 = arith.andi %93, %103 : vector<1x256xi1>
    %cst_107 = arith.constant 0.000000e+00 : f32
    %353 = vector.shape_cast %352 : vector<1x256xi1> to vector<1x256xi1>
    %354 = vector.broadcast %353 : vector<1x256xi1> to vector<2x256xi1>
    %355 = vector.broadcast %cst_107 : f32 to vector<2x256xf32>
    %356 = arith.select %354, %351, %355 : vector<2x256xi1>, vector<2x256xf32>
    %c0_108 = arith.constant 0 : index
    %c15 = arith.constant 15 : index
    %357 = memref.load %arg5[%c0_108, %c15] : memref<2x49xf32, #tpu.memory_space<smem>>
    %358 = vector.extract_strided_slice %356 {offsets = [0, 0], sizes = [1, 256], strides = [1, 1]} : vector<2x256xf32> to vector<1x256xf32>
    %359 = vector.broadcast %357 : f32 to vector<1x256xf32>
    %360 = arith.mulf %359, %358 : vector<1x256xf32>
    %361 = arith.addf %350, %360 : vector<1x256xf32>
    %c1_109 = arith.constant 1 : index
    %c15_110 = arith.constant 15 : index
    %362 = memref.load %arg5[%c1_109, %c15_110] : memref<2x49xf32, #tpu.memory_space<smem>>
    %363 = vector.extract_strided_slice %356 {offsets = [1, 0], sizes = [1, 256], strides = [1, 1]} : vector<2x256xf32> to vector<1x256xf32>
    %364 = vector.broadcast %362 : f32 to vector<1x256xf32>
    %365 = arith.mulf %364, %363 : vector<1x256xf32>
    %366 = arith.addf %361, %365 : vector<1x256xf32>
    %c17_i32 = arith.constant 17 : i32
    %367 = tpu.dynamic_rotate %85 by %c17_i32 dim 1 : vector<2x256xf32>, i32 -> vector<2x256xf32>
    %368 = arith.andi %93, %105 : vector<1x256xi1>
    %cst_111 = arith.constant 0.000000e+00 : f32
    %369 = vector.shape_cast %368 : vector<1x256xi1> to vector<1x256xi1>
    %370 = vector.broadcast %369 : vector<1x256xi1> to vector<2x256xi1>
    %371 = vector.broadcast %cst_111 : f32 to vector<2x256xf32>
    %372 = arith.select %370, %367, %371 : vector<2x256xi1>, vector<2x256xf32>
    %c0_112 = arith.constant 0 : index
    %c16 = arith.constant 16 : index
    %373 = memref.load %arg5[%c0_112, %c16] : memref<2x49xf32, #tpu.memory_space<smem>>
    %374 = vector.extract_strided_slice %372 {offsets = [0, 0], sizes = [1, 256], strides = [1, 1]} : vector<2x256xf32> to vector<1x256xf32>
    %375 = vector.broadcast %373 : f32 to vector<1x256xf32>
    %376 = arith.mulf %375, %374 : vector<1x256xf32>
    %377 = arith.addf %366, %376 : vector<1x256xf32>
    %c1_113 = arith.constant 1 : index
    %c16_114 = arith.constant 16 : index
    %378 = memref.load %arg5[%c1_113, %c16_114] : memref<2x49xf32, #tpu.memory_space<smem>>
    %379 = vector.extract_strided_slice %372 {offsets = [1, 0], sizes = [1, 256], strides = [1, 1]} : vector<2x256xf32> to vector<1x256xf32>
    %380 = vector.broadcast %378 : f32 to vector<1x256xf32>
    %381 = arith.mulf %380, %379 : vector<1x256xf32>
    %382 = arith.addf %377, %381 : vector<1x256xf32>
    %c16_i32 = arith.constant 16 : i32
    %383 = tpu.dynamic_rotate %85 by %c16_i32 dim 1 : vector<2x256xf32>, i32 -> vector<2x256xf32>
    %cst_115 = arith.constant 0.000000e+00 : f32
    %384 = vector.shape_cast %93 : vector<1x256xi1> to vector<1x256xi1>
    %385 = vector.broadcast %384 : vector<1x256xi1> to vector<2x256xi1>
    %386 = vector.broadcast %cst_115 : f32 to vector<2x256xf32>
    %387 = arith.select %385, %383, %386 : vector<2x256xi1>, vector<2x256xf32>
    %c0_116 = arith.constant 0 : index
    %c17 = arith.constant 17 : index
    %388 = memref.load %arg5[%c0_116, %c17] : memref<2x49xf32, #tpu.memory_space<smem>>
    %389 = vector.extract_strided_slice %387 {offsets = [0, 0], sizes = [1, 256], strides = [1, 1]} : vector<2x256xf32> to vector<1x256xf32>
    %390 = vector.broadcast %388 : f32 to vector<1x256xf32>
    %391 = arith.mulf %390, %389 : vector<1x256xf32>
    %392 = arith.addf %382, %391 : vector<1x256xf32>
    %c1_117 = arith.constant 1 : index
    %c17_118 = arith.constant 17 : index
    %393 = memref.load %arg5[%c1_117, %c17_118] : memref<2x49xf32, #tpu.memory_space<smem>>
    %394 = vector.extract_strided_slice %387 {offsets = [1, 0], sizes = [1, 256], strides = [1, 1]} : vector<2x256xf32> to vector<1x256xf32>
    %395 = vector.broadcast %393 : f32 to vector<1x256xf32>
    %396 = arith.mulf %395, %394 : vector<1x256xf32>
    %397 = arith.addf %392, %396 : vector<1x256xf32>
    %c15_i32_119 = arith.constant 15 : i32
    %398 = tpu.dynamic_rotate %85 by %c15_i32_119 dim 1 : vector<2x256xf32>, i32 -> vector<2x256xf32>
    %399 = arith.andi %93, %107 : vector<1x256xi1>
    %cst_120 = arith.constant 0.000000e+00 : f32
    %400 = vector.shape_cast %399 : vector<1x256xi1> to vector<1x256xi1>
    %401 = vector.broadcast %400 : vector<1x256xi1> to vector<2x256xi1>
    %402 = vector.broadcast %cst_120 : f32 to vector<2x256xf32>
    %403 = arith.select %401, %398, %402 : vector<2x256xi1>, vector<2x256xf32>
    %c0_121 = arith.constant 0 : index
    %c18 = arith.constant 18 : index
    %404 = memref.load %arg5[%c0_121, %c18] : memref<2x49xf32, #tpu.memory_space<smem>>
    %405 = vector.extract_strided_slice %403 {offsets = [0, 0], sizes = [1, 256], strides = [1, 1]} : vector<2x256xf32> to vector<1x256xf32>
    %406 = vector.broadcast %404 : f32 to vector<1x256xf32>
    %407 = arith.mulf %406, %405 : vector<1x256xf32>
    %408 = arith.addf %397, %407 : vector<1x256xf32>
    %c1_122 = arith.constant 1 : index
    %c18_123 = arith.constant 18 : index
    %409 = memref.load %arg5[%c1_122, %c18_123] : memref<2x49xf32, #tpu.memory_space<smem>>
    %410 = vector.extract_strided_slice %403 {offsets = [1, 0], sizes = [1, 256], strides = [1, 1]} : vector<2x256xf32> to vector<1x256xf32>
    %411 = vector.broadcast %409 : f32 to vector<1x256xf32>
    %412 = arith.mulf %411, %410 : vector<1x256xf32>
    %413 = arith.addf %408, %412 : vector<1x256xf32>
    %c14_i32_124 = arith.constant 14 : i32
    %414 = tpu.dynamic_rotate %85 by %c14_i32_124 dim 1 : vector<2x256xf32>, i32 -> vector<2x256xf32>
    %415 = arith.andi %93, %109 : vector<1x256xi1>
    %cst_125 = arith.constant 0.000000e+00 : f32
    %416 = vector.shape_cast %415 : vector<1x256xi1> to vector<1x256xi1>
    %417 = vector.broadcast %416 : vector<1x256xi1> to vector<2x256xi1>
    %418 = vector.broadcast %cst_125 : f32 to vector<2x256xf32>
    %419 = arith.select %417, %414, %418 : vector<2x256xi1>, vector<2x256xf32>
    %c0_126 = arith.constant 0 : index
    %c19 = arith.constant 19 : index
    %420 = memref.load %arg5[%c0_126, %c19] : memref<2x49xf32, #tpu.memory_space<smem>>
    %421 = vector.extract_strided_slice %419 {offsets = [0, 0], sizes = [1, 256], strides = [1, 1]} : vector<2x256xf32> to vector<1x256xf32>
    %422 = vector.broadcast %420 : f32 to vector<1x256xf32>
    %423 = arith.mulf %422, %421 : vector<1x256xf32>
    %424 = arith.addf %413, %423 : vector<1x256xf32>
    %c1_127 = arith.constant 1 : index
    %c19_128 = arith.constant 19 : index
    %425 = memref.load %arg5[%c1_127, %c19_128] : memref<2x49xf32, #tpu.memory_space<smem>>
    %426 = vector.extract_strided_slice %419 {offsets = [1, 0], sizes = [1, 256], strides = [1, 1]} : vector<2x256xf32> to vector<1x256xf32>
    %427 = vector.broadcast %425 : f32 to vector<1x256xf32>
    %428 = arith.mulf %427, %426 : vector<1x256xf32>
    %429 = arith.addf %424, %428 : vector<1x256xf32>
    %c13_i32_129 = arith.constant 13 : i32
    %430 = tpu.dynamic_rotate %85 by %c13_i32_129 dim 1 : vector<2x256xf32>, i32 -> vector<2x256xf32>
    %431 = arith.andi %93, %111 : vector<1x256xi1>
    %cst_130 = arith.constant 0.000000e+00 : f32
    %432 = vector.shape_cast %431 : vector<1x256xi1> to vector<1x256xi1>
    %433 = vector.broadcast %432 : vector<1x256xi1> to vector<2x256xi1>
    %434 = vector.broadcast %cst_130 : f32 to vector<2x256xf32>
    %435 = arith.select %433, %430, %434 : vector<2x256xi1>, vector<2x256xf32>
    %c0_131 = arith.constant 0 : index
    %c20 = arith.constant 20 : index
    %436 = memref.load %arg5[%c0_131, %c20] : memref<2x49xf32, #tpu.memory_space<smem>>
    %437 = vector.extract_strided_slice %435 {offsets = [0, 0], sizes = [1, 256], strides = [1, 1]} : vector<2x256xf32> to vector<1x256xf32>
    %438 = vector.broadcast %436 : f32 to vector<1x256xf32>
    %439 = arith.mulf %438, %437 : vector<1x256xf32>
    %440 = arith.addf %429, %439 : vector<1x256xf32>
    %c1_132 = arith.constant 1 : index
    %c20_133 = arith.constant 20 : index
    %441 = memref.load %arg5[%c1_132, %c20_133] : memref<2x49xf32, #tpu.memory_space<smem>>
    %442 = vector.extract_strided_slice %435 {offsets = [1, 0], sizes = [1, 256], strides = [1, 1]} : vector<2x256xf32> to vector<1x256xf32>
    %443 = vector.broadcast %441 : f32 to vector<1x256xf32>
    %444 = arith.mulf %443, %442 : vector<1x256xf32>
    %445 = arith.addf %440, %444 : vector<1x256xf32>
    %c3_i32_134 = arith.constant 3 : i32
    %446 = tpu.dynamic_rotate %85 by %c3_i32_134 dim 1 : vector<2x256xf32>, i32 -> vector<2x256xf32>
    %cst_135 = arith.constant 0.000000e+00 : f32
    %447 = vector.shape_cast %101 : vector<1x256xi1> to vector<1x256xi1>
    %448 = vector.broadcast %447 : vector<1x256xi1> to vector<2x256xi1>
    %449 = vector.broadcast %cst_135 : f32 to vector<2x256xf32>
    %450 = arith.select %448, %446, %449 : vector<2x256xi1>, vector<2x256xf32>
    %c0_136 = arith.constant 0 : index
    %c21 = arith.constant 21 : index
    %451 = memref.load %arg5[%c0_136, %c21] : memref<2x49xf32, #tpu.memory_space<smem>>
    %452 = vector.extract_strided_slice %450 {offsets = [0, 0], sizes = [1, 256], strides = [1, 1]} : vector<2x256xf32> to vector<1x256xf32>
    %453 = vector.broadcast %451 : f32 to vector<1x256xf32>
    %454 = arith.mulf %453, %452 : vector<1x256xf32>
    %455 = arith.addf %445, %454 : vector<1x256xf32>
    %c1_137 = arith.constant 1 : index
    %c21_138 = arith.constant 21 : index
    %456 = memref.load %arg5[%c1_137, %c21_138] : memref<2x49xf32, #tpu.memory_space<smem>>
    %457 = vector.extract_strided_slice %450 {offsets = [1, 0], sizes = [1, 256], strides = [1, 1]} : vector<2x256xf32> to vector<1x256xf32>
    %458 = vector.broadcast %456 : f32 to vector<1x256xf32>
    %459 = arith.mulf %458, %457 : vector<1x256xf32>
    %460 = arith.addf %455, %459 : vector<1x256xf32>
    %c2_i32_139 = arith.constant 2 : i32
    %461 = tpu.dynamic_rotate %85 by %c2_i32_139 dim 1 : vector<2x256xf32>, i32 -> vector<2x256xf32>
    %cst_140 = arith.constant 0.000000e+00 : f32
    %462 = vector.shape_cast %103 : vector<1x256xi1> to vector<1x256xi1>
    %463 = vector.broadcast %462 : vector<1x256xi1> to vector<2x256xi1>
    %464 = vector.broadcast %cst_140 : f32 to vector<2x256xf32>
    %465 = arith.select %463, %461, %464 : vector<2x256xi1>, vector<2x256xf32>
    %c0_141 = arith.constant 0 : index
    %c22 = arith.constant 22 : index
    %466 = memref.load %arg5[%c0_141, %c22] : memref<2x49xf32, #tpu.memory_space<smem>>
    %467 = vector.extract_strided_slice %465 {offsets = [0, 0], sizes = [1, 256], strides = [1, 1]} : vector<2x256xf32> to vector<1x256xf32>
    %468 = vector.broadcast %466 : f32 to vector<1x256xf32>
    %469 = arith.mulf %468, %467 : vector<1x256xf32>
    %470 = arith.addf %460, %469 : vector<1x256xf32>
    %c1_142 = arith.constant 1 : index
    %c22_143 = arith.constant 22 : index
    %471 = memref.load %arg5[%c1_142, %c22_143] : memref<2x49xf32, #tpu.memory_space<smem>>
    %472 = vector.extract_strided_slice %465 {offsets = [1, 0], sizes = [1, 256], strides = [1, 1]} : vector<2x256xf32> to vector<1x256xf32>
    %473 = vector.broadcast %471 : f32 to vector<1x256xf32>
    %474 = arith.mulf %473, %472 : vector<1x256xf32>
    %475 = arith.addf %470, %474 : vector<1x256xf32>
    %c1_i32_144 = arith.constant 1 : i32
    %476 = tpu.dynamic_rotate %85 by %c1_i32_144 dim 1 : vector<2x256xf32>, i32 -> vector<2x256xf32>
    %cst_145 = arith.constant 0.000000e+00 : f32
    %477 = vector.shape_cast %105 : vector<1x256xi1> to vector<1x256xi1>
    %478 = vector.broadcast %477 : vector<1x256xi1> to vector<2x256xi1>
    %479 = vector.broadcast %cst_145 : f32 to vector<2x256xf32>
    %480 = arith.select %478, %476, %479 : vector<2x256xi1>, vector<2x256xf32>
    %c0_146 = arith.constant 0 : index
    %c23 = arith.constant 23 : index
    %481 = memref.load %arg5[%c0_146, %c23] : memref<2x49xf32, #tpu.memory_space<smem>>
    %482 = vector.extract_strided_slice %480 {offsets = [0, 0], sizes = [1, 256], strides = [1, 1]} : vector<2x256xf32> to vector<1x256xf32>
    %483 = vector.broadcast %481 : f32 to vector<1x256xf32>
    %484 = arith.mulf %483, %482 : vector<1x256xf32>
    %485 = arith.addf %475, %484 : vector<1x256xf32>
    %c1_147 = arith.constant 1 : index
    %c23_148 = arith.constant 23 : index
    %486 = memref.load %arg5[%c1_147, %c23_148] : memref<2x49xf32, #tpu.memory_space<smem>>
    %487 = vector.extract_strided_slice %480 {offsets = [1, 0], sizes = [1, 256], strides = [1, 1]} : vector<2x256xf32> to vector<1x256xf32>
    %488 = vector.broadcast %486 : f32 to vector<1x256xf32>
    %489 = arith.mulf %488, %487 : vector<1x256xf32>
    %490 = arith.addf %485, %489 : vector<1x256xf32>
    %c0_149 = arith.constant 0 : index
    %c24 = arith.constant 24 : index
    %491 = memref.load %arg5[%c0_149, %c24] : memref<2x49xf32, #tpu.memory_space<smem>>
    %492 = vector.extract_strided_slice %85 {offsets = [0, 0], sizes = [1, 256], strides = [1, 1]} : vector<2x256xf32> to vector<1x256xf32>
    %493 = vector.broadcast %491 : f32 to vector<1x256xf32>
    %494 = arith.mulf %493, %492 : vector<1x256xf32>
    %495 = arith.addf %490, %494 : vector<1x256xf32>
    %c1_150 = arith.constant 1 : index
    %c24_151 = arith.constant 24 : index
    %496 = memref.load %arg5[%c1_150, %c24_151] : memref<2x49xf32, #tpu.memory_space<smem>>
    %497 = vector.extract_strided_slice %85 {offsets = [1, 0], sizes = [1, 256], strides = [1, 1]} : vector<2x256xf32> to vector<1x256xf32>
    %498 = vector.broadcast %496 : f32 to vector<1x256xf32>
    %499 = arith.mulf %498, %497 : vector<1x256xf32>
    %500 = arith.addf %495, %499 : vector<1x256xf32>
    %c255_i32 = arith.constant 255 : i32
    %501 = tpu.dynamic_rotate %85 by %c255_i32 dim 1 : vector<2x256xf32>, i32 -> vector<2x256xf32>
    %cst_152 = arith.constant 0.000000e+00 : f32
    %502 = vector.shape_cast %107 : vector<1x256xi1> to vector<1x256xi1>
    %503 = vector.broadcast %502 : vector<1x256xi1> to vector<2x256xi1>
    %504 = vector.broadcast %cst_152 : f32 to vector<2x256xf32>
    %505 = arith.select %503, %501, %504 : vector<2x256xi1>, vector<2x256xf32>
    %c0_153 = arith.constant 0 : index
    %c25 = arith.constant 25 : index
    %506 = memref.load %arg5[%c0_153, %c25] : memref<2x49xf32, #tpu.memory_space<smem>>
    %507 = vector.extract_strided_slice %505 {offsets = [0, 0], sizes = [1, 256], strides = [1, 1]} : vector<2x256xf32> to vector<1x256xf32>
    %508 = vector.broadcast %506 : f32 to vector<1x256xf32>
    %509 = arith.mulf %508, %507 : vector<1x256xf32>
    %510 = arith.addf %500, %509 : vector<1x256xf32>
    %c1_154 = arith.constant 1 : index
    %c25_155 = arith.constant 25 : index
    %511 = memref.load %arg5[%c1_154, %c25_155] : memref<2x49xf32, #tpu.memory_space<smem>>
    %512 = vector.extract_strided_slice %505 {offsets = [1, 0], sizes = [1, 256], strides = [1, 1]} : vector<2x256xf32> to vector<1x256xf32>
    %513 = vector.broadcast %511 : f32 to vector<1x256xf32>
    %514 = arith.mulf %513, %512 : vector<1x256xf32>
    %515 = arith.addf %510, %514 : vector<1x256xf32>
    %c254_i32 = arith.constant 254 : i32
    %516 = tpu.dynamic_rotate %85 by %c254_i32 dim 1 : vector<2x256xf32>, i32 -> vector<2x256xf32>
    %cst_156 = arith.constant 0.000000e+00 : f32
    %517 = vector.shape_cast %109 : vector<1x256xi1> to vector<1x256xi1>
    %518 = vector.broadcast %517 : vector<1x256xi1> to vector<2x256xi1>
    %519 = vector.broadcast %cst_156 : f32 to vector<2x256xf32>
    %520 = arith.select %518, %516, %519 : vector<2x256xi1>, vector<2x256xf32>
    %c0_157 = arith.constant 0 : index
    %c26 = arith.constant 26 : index
    %521 = memref.load %arg5[%c0_157, %c26] : memref<2x49xf32, #tpu.memory_space<smem>>
    %522 = vector.extract_strided_slice %520 {offsets = [0, 0], sizes = [1, 256], strides = [1, 1]} : vector<2x256xf32> to vector<1x256xf32>
    %523 = vector.broadcast %521 : f32 to vector<1x256xf32>
    %524 = arith.mulf %523, %522 : vector<1x256xf32>
    %525 = arith.addf %515, %524 : vector<1x256xf32>
    %c1_158 = arith.constant 1 : index
    %c26_159 = arith.constant 26 : index
    %526 = memref.load %arg5[%c1_158, %c26_159] : memref<2x49xf32, #tpu.memory_space<smem>>
    %527 = vector.extract_strided_slice %520 {offsets = [1, 0], sizes = [1, 256], strides = [1, 1]} : vector<2x256xf32> to vector<1x256xf32>
    %528 = vector.broadcast %526 : f32 to vector<1x256xf32>
    %529 = arith.mulf %528, %527 : vector<1x256xf32>
    %530 = arith.addf %525, %529 : vector<1x256xf32>
    %c253_i32 = arith.constant 253 : i32
    %531 = tpu.dynamic_rotate %85 by %c253_i32 dim 1 : vector<2x256xf32>, i32 -> vector<2x256xf32>
    %cst_160 = arith.constant 0.000000e+00 : f32
    %532 = vector.shape_cast %111 : vector<1x256xi1> to vector<1x256xi1>
    %533 = vector.broadcast %532 : vector<1x256xi1> to vector<2x256xi1>
    %534 = vector.broadcast %cst_160 : f32 to vector<2x256xf32>
    %535 = arith.select %533, %531, %534 : vector<2x256xi1>, vector<2x256xf32>
    %c0_161 = arith.constant 0 : index
    %c27 = arith.constant 27 : index
    %536 = memref.load %arg5[%c0_161, %c27] : memref<2x49xf32, #tpu.memory_space<smem>>
    %537 = vector.extract_strided_slice %535 {offsets = [0, 0], sizes = [1, 256], strides = [1, 1]} : vector<2x256xf32> to vector<1x256xf32>
    %538 = vector.broadcast %536 : f32 to vector<1x256xf32>
    %539 = arith.mulf %538, %537 : vector<1x256xf32>
    %540 = arith.addf %530, %539 : vector<1x256xf32>
    %c1_162 = arith.constant 1 : index
    %c27_163 = arith.constant 27 : index
    %541 = memref.load %arg5[%c1_162, %c27_163] : memref<2x49xf32, #tpu.memory_space<smem>>
    %542 = vector.extract_strided_slice %535 {offsets = [1, 0], sizes = [1, 256], strides = [1, 1]} : vector<2x256xf32> to vector<1x256xf32>
    %543 = vector.broadcast %541 : f32 to vector<1x256xf32>
    %544 = arith.mulf %543, %542 : vector<1x256xf32>
    %545 = arith.addf %540, %544 : vector<1x256xf32>
    %c243_i32 = arith.constant 243 : i32
    %546 = tpu.dynamic_rotate %85 by %c243_i32 dim 1 : vector<2x256xf32>, i32 -> vector<2x256xf32>
    %547 = arith.andi %95, %101 : vector<1x256xi1>
    %cst_164 = arith.constant 0.000000e+00 : f32
    %548 = vector.shape_cast %547 : vector<1x256xi1> to vector<1x256xi1>
    %549 = vector.broadcast %548 : vector<1x256xi1> to vector<2x256xi1>
    %550 = vector.broadcast %cst_164 : f32 to vector<2x256xf32>
    %551 = arith.select %549, %546, %550 : vector<2x256xi1>, vector<2x256xf32>
    %c0_165 = arith.constant 0 : index
    %c28 = arith.constant 28 : index
    %552 = memref.load %arg5[%c0_165, %c28] : memref<2x49xf32, #tpu.memory_space<smem>>
    %553 = vector.extract_strided_slice %551 {offsets = [0, 0], sizes = [1, 256], strides = [1, 1]} : vector<2x256xf32> to vector<1x256xf32>
    %554 = vector.broadcast %552 : f32 to vector<1x256xf32>
    %555 = arith.mulf %554, %553 : vector<1x256xf32>
    %556 = arith.addf %545, %555 : vector<1x256xf32>
    %c1_166 = arith.constant 1 : index
    %c28_167 = arith.constant 28 : index
    %557 = memref.load %arg5[%c1_166, %c28_167] : memref<2x49xf32, #tpu.memory_space<smem>>
    %558 = vector.extract_strided_slice %551 {offsets = [1, 0], sizes = [1, 256], strides = [1, 1]} : vector<2x256xf32> to vector<1x256xf32>
    %559 = vector.broadcast %557 : f32 to vector<1x256xf32>
    %560 = arith.mulf %559, %558 : vector<1x256xf32>
    %561 = arith.addf %556, %560 : vector<1x256xf32>
    %c242_i32 = arith.constant 242 : i32
    %562 = tpu.dynamic_rotate %85 by %c242_i32 dim 1 : vector<2x256xf32>, i32 -> vector<2x256xf32>
    %563 = arith.andi %95, %103 : vector<1x256xi1>
    %cst_168 = arith.constant 0.000000e+00 : f32
    %564 = vector.shape_cast %563 : vector<1x256xi1> to vector<1x256xi1>
    %565 = vector.broadcast %564 : vector<1x256xi1> to vector<2x256xi1>
    %566 = vector.broadcast %cst_168 : f32 to vector<2x256xf32>
    %567 = arith.select %565, %562, %566 : vector<2x256xi1>, vector<2x256xf32>
    %c0_169 = arith.constant 0 : index
    %c29 = arith.constant 29 : index
    %568 = memref.load %arg5[%c0_169, %c29] : memref<2x49xf32, #tpu.memory_space<smem>>
    %569 = vector.extract_strided_slice %567 {offsets = [0, 0], sizes = [1, 256], strides = [1, 1]} : vector<2x256xf32> to vector<1x256xf32>
    %570 = vector.broadcast %568 : f32 to vector<1x256xf32>
    %571 = arith.mulf %570, %569 : vector<1x256xf32>
    %572 = arith.addf %561, %571 : vector<1x256xf32>
    %c1_170 = arith.constant 1 : index
    %c29_171 = arith.constant 29 : index
    %573 = memref.load %arg5[%c1_170, %c29_171] : memref<2x49xf32, #tpu.memory_space<smem>>
    %574 = vector.extract_strided_slice %567 {offsets = [1, 0], sizes = [1, 256], strides = [1, 1]} : vector<2x256xf32> to vector<1x256xf32>
    %575 = vector.broadcast %573 : f32 to vector<1x256xf32>
    %576 = arith.mulf %575, %574 : vector<1x256xf32>
    %577 = arith.addf %572, %576 : vector<1x256xf32>
    %c241_i32 = arith.constant 241 : i32
    %578 = tpu.dynamic_rotate %85 by %c241_i32 dim 1 : vector<2x256xf32>, i32 -> vector<2x256xf32>
    %579 = arith.andi %95, %105 : vector<1x256xi1>
    %cst_172 = arith.constant 0.000000e+00 : f32
    %580 = vector.shape_cast %579 : vector<1x256xi1> to vector<1x256xi1>
    %581 = vector.broadcast %580 : vector<1x256xi1> to vector<2x256xi1>
    %582 = vector.broadcast %cst_172 : f32 to vector<2x256xf32>
    %583 = arith.select %581, %578, %582 : vector<2x256xi1>, vector<2x256xf32>
    %c0_173 = arith.constant 0 : index
    %c30 = arith.constant 30 : index
    %584 = memref.load %arg5[%c0_173, %c30] : memref<2x49xf32, #tpu.memory_space<smem>>
    %585 = vector.extract_strided_slice %583 {offsets = [0, 0], sizes = [1, 256], strides = [1, 1]} : vector<2x256xf32> to vector<1x256xf32>
    %586 = vector.broadcast %584 : f32 to vector<1x256xf32>
    %587 = arith.mulf %586, %585 : vector<1x256xf32>
    %588 = arith.addf %577, %587 : vector<1x256xf32>
    %c1_174 = arith.constant 1 : index
    %c30_175 = arith.constant 30 : index
    %589 = memref.load %arg5[%c1_174, %c30_175] : memref<2x49xf32, #tpu.memory_space<smem>>
    %590 = vector.extract_strided_slice %583 {offsets = [1, 0], sizes = [1, 256], strides = [1, 1]} : vector<2x256xf32> to vector<1x256xf32>
    %591 = vector.broadcast %589 : f32 to vector<1x256xf32>
    %592 = arith.mulf %591, %590 : vector<1x256xf32>
    %593 = arith.addf %588, %592 : vector<1x256xf32>
    %c240_i32 = arith.constant 240 : i32
    %594 = tpu.dynamic_rotate %85 by %c240_i32 dim 1 : vector<2x256xf32>, i32 -> vector<2x256xf32>
    %cst_176 = arith.constant 0.000000e+00 : f32
    %595 = vector.shape_cast %95 : vector<1x256xi1> to vector<1x256xi1>
    %596 = vector.broadcast %595 : vector<1x256xi1> to vector<2x256xi1>
    %597 = vector.broadcast %cst_176 : f32 to vector<2x256xf32>
    %598 = arith.select %596, %594, %597 : vector<2x256xi1>, vector<2x256xf32>
    %c0_177 = arith.constant 0 : index
    %c31 = arith.constant 31 : index
    %599 = memref.load %arg5[%c0_177, %c31] : memref<2x49xf32, #tpu.memory_space<smem>>
    %600 = vector.extract_strided_slice %598 {offsets = [0, 0], sizes = [1, 256], strides = [1, 1]} : vector<2x256xf32> to vector<1x256xf32>
    %601 = vector.broadcast %599 : f32 to vector<1x256xf32>
    %602 = arith.mulf %601, %600 : vector<1x256xf32>
    %603 = arith.addf %593, %602 : vector<1x256xf32>
    %c1_178 = arith.constant 1 : index
    %c31_179 = arith.constant 31 : index
    %604 = memref.load %arg5[%c1_178, %c31_179] : memref<2x49xf32, #tpu.memory_space<smem>>
    %605 = vector.extract_strided_slice %598 {offsets = [1, 0], sizes = [1, 256], strides = [1, 1]} : vector<2x256xf32> to vector<1x256xf32>
    %606 = vector.broadcast %604 : f32 to vector<1x256xf32>
    %607 = arith.mulf %606, %605 : vector<1x256xf32>
    %608 = arith.addf %603, %607 : vector<1x256xf32>
    %c239_i32 = arith.constant 239 : i32
    %609 = tpu.dynamic_rotate %85 by %c239_i32 dim 1 : vector<2x256xf32>, i32 -> vector<2x256xf32>
    %610 = arith.andi %95, %107 : vector<1x256xi1>
    %cst_180 = arith.constant 0.000000e+00 : f32
    %611 = vector.shape_cast %610 : vector<1x256xi1> to vector<1x256xi1>
    %612 = vector.broadcast %611 : vector<1x256xi1> to vector<2x256xi1>
    %613 = vector.broadcast %cst_180 : f32 to vector<2x256xf32>
    %614 = arith.select %612, %609, %613 : vector<2x256xi1>, vector<2x256xf32>
    %c0_181 = arith.constant 0 : index
    %c32 = arith.constant 32 : index
    %615 = memref.load %arg5[%c0_181, %c32] : memref<2x49xf32, #tpu.memory_space<smem>>
    %616 = vector.extract_strided_slice %614 {offsets = [0, 0], sizes = [1, 256], strides = [1, 1]} : vector<2x256xf32> to vector<1x256xf32>
    %617 = vector.broadcast %615 : f32 to vector<1x256xf32>
    %618 = arith.mulf %617, %616 : vector<1x256xf32>
    %619 = arith.addf %608, %618 : vector<1x256xf32>
    %c1_182 = arith.constant 1 : index
    %c32_183 = arith.constant 32 : index
    %620 = memref.load %arg5[%c1_182, %c32_183] : memref<2x49xf32, #tpu.memory_space<smem>>
    %621 = vector.extract_strided_slice %614 {offsets = [1, 0], sizes = [1, 256], strides = [1, 1]} : vector<2x256xf32> to vector<1x256xf32>
    %622 = vector.broadcast %620 : f32 to vector<1x256xf32>
    %623 = arith.mulf %622, %621 : vector<1x256xf32>
    %624 = arith.addf %619, %623 : vector<1x256xf32>
    %c238_i32 = arith.constant 238 : i32
    %625 = tpu.dynamic_rotate %85 by %c238_i32 dim 1 : vector<2x256xf32>, i32 -> vector<2x256xf32>
    %626 = arith.andi %95, %109 : vector<1x256xi1>
    %cst_184 = arith.constant 0.000000e+00 : f32
    %627 = vector.shape_cast %626 : vector<1x256xi1> to vector<1x256xi1>
    %628 = vector.broadcast %627 : vector<1x256xi1> to vector<2x256xi1>
    %629 = vector.broadcast %cst_184 : f32 to vector<2x256xf32>
    %630 = arith.select %628, %625, %629 : vector<2x256xi1>, vector<2x256xf32>
    %c0_185 = arith.constant 0 : index
    %c33 = arith.constant 33 : index
    %631 = memref.load %arg5[%c0_185, %c33] : memref<2x49xf32, #tpu.memory_space<smem>>
    %632 = vector.extract_strided_slice %630 {offsets = [0, 0], sizes = [1, 256], strides = [1, 1]} : vector<2x256xf32> to vector<1x256xf32>
    %633 = vector.broadcast %631 : f32 to vector<1x256xf32>
    %634 = arith.mulf %633, %632 : vector<1x256xf32>
    %635 = arith.addf %624, %634 : vector<1x256xf32>
    %c1_186 = arith.constant 1 : index
    %c33_187 = arith.constant 33 : index
    %636 = memref.load %arg5[%c1_186, %c33_187] : memref<2x49xf32, #tpu.memory_space<smem>>
    %637 = vector.extract_strided_slice %630 {offsets = [1, 0], sizes = [1, 256], strides = [1, 1]} : vector<2x256xf32> to vector<1x256xf32>
    %638 = vector.broadcast %636 : f32 to vector<1x256xf32>
    %639 = arith.mulf %638, %637 : vector<1x256xf32>
    %640 = arith.addf %635, %639 : vector<1x256xf32>
    %c237_i32 = arith.constant 237 : i32
    %641 = tpu.dynamic_rotate %85 by %c237_i32 dim 1 : vector<2x256xf32>, i32 -> vector<2x256xf32>
    %642 = arith.andi %95, %111 : vector<1x256xi1>
    %cst_188 = arith.constant 0.000000e+00 : f32
    %643 = vector.shape_cast %642 : vector<1x256xi1> to vector<1x256xi1>
    %644 = vector.broadcast %643 : vector<1x256xi1> to vector<2x256xi1>
    %645 = vector.broadcast %cst_188 : f32 to vector<2x256xf32>
    %646 = arith.select %644, %641, %645 : vector<2x256xi1>, vector<2x256xf32>
    %c0_189 = arith.constant 0 : index
    %c34 = arith.constant 34 : index
    %647 = memref.load %arg5[%c0_189, %c34] : memref<2x49xf32, #tpu.memory_space<smem>>
    %648 = vector.extract_strided_slice %646 {offsets = [0, 0], sizes = [1, 256], strides = [1, 1]} : vector<2x256xf32> to vector<1x256xf32>
    %649 = vector.broadcast %647 : f32 to vector<1x256xf32>
    %650 = arith.mulf %649, %648 : vector<1x256xf32>
    %651 = arith.addf %640, %650 : vector<1x256xf32>
    %c1_190 = arith.constant 1 : index
    %c34_191 = arith.constant 34 : index
    %652 = memref.load %arg5[%c1_190, %c34_191] : memref<2x49xf32, #tpu.memory_space<smem>>
    %653 = vector.extract_strided_slice %646 {offsets = [1, 0], sizes = [1, 256], strides = [1, 1]} : vector<2x256xf32> to vector<1x256xf32>
    %654 = vector.broadcast %652 : f32 to vector<1x256xf32>
    %655 = arith.mulf %654, %653 : vector<1x256xf32>
    %656 = arith.addf %651, %655 : vector<1x256xf32>
    %c227_i32 = arith.constant 227 : i32
    %657 = tpu.dynamic_rotate %85 by %c227_i32 dim 1 : vector<2x256xf32>, i32 -> vector<2x256xf32>
    %658 = arith.andi %97, %101 : vector<1x256xi1>
    %cst_192 = arith.constant 0.000000e+00 : f32
    %659 = vector.shape_cast %658 : vector<1x256xi1> to vector<1x256xi1>
    %660 = vector.broadcast %659 : vector<1x256xi1> to vector<2x256xi1>
    %661 = vector.broadcast %cst_192 : f32 to vector<2x256xf32>
    %662 = arith.select %660, %657, %661 : vector<2x256xi1>, vector<2x256xf32>
    %c0_193 = arith.constant 0 : index
    %c35 = arith.constant 35 : index
    %663 = memref.load %arg5[%c0_193, %c35] : memref<2x49xf32, #tpu.memory_space<smem>>
    %664 = vector.extract_strided_slice %662 {offsets = [0, 0], sizes = [1, 256], strides = [1, 1]} : vector<2x256xf32> to vector<1x256xf32>
    %665 = vector.broadcast %663 : f32 to vector<1x256xf32>
    %666 = arith.mulf %665, %664 : vector<1x256xf32>
    %667 = arith.addf %656, %666 : vector<1x256xf32>
    %c1_194 = arith.constant 1 : index
    %c35_195 = arith.constant 35 : index
    %668 = memref.load %arg5[%c1_194, %c35_195] : memref<2x49xf32, #tpu.memory_space<smem>>
    %669 = vector.extract_strided_slice %662 {offsets = [1, 0], sizes = [1, 256], strides = [1, 1]} : vector<2x256xf32> to vector<1x256xf32>
    %670 = vector.broadcast %668 : f32 to vector<1x256xf32>
    %671 = arith.mulf %670, %669 : vector<1x256xf32>
    %672 = arith.addf %667, %671 : vector<1x256xf32>
    %c226_i32 = arith.constant 226 : i32
    %673 = tpu.dynamic_rotate %85 by %c226_i32 dim 1 : vector<2x256xf32>, i32 -> vector<2x256xf32>
    %674 = arith.andi %97, %103 : vector<1x256xi1>
    %cst_196 = arith.constant 0.000000e+00 : f32
    %675 = vector.shape_cast %674 : vector<1x256xi1> to vector<1x256xi1>
    %676 = vector.broadcast %675 : vector<1x256xi1> to vector<2x256xi1>
    %677 = vector.broadcast %cst_196 : f32 to vector<2x256xf32>
    %678 = arith.select %676, %673, %677 : vector<2x256xi1>, vector<2x256xf32>
    %c0_197 = arith.constant 0 : index
    %c36 = arith.constant 36 : index
    %679 = memref.load %arg5[%c0_197, %c36] : memref<2x49xf32, #tpu.memory_space<smem>>
    %680 = vector.extract_strided_slice %678 {offsets = [0, 0], sizes = [1, 256], strides = [1, 1]} : vector<2x256xf32> to vector<1x256xf32>
    %681 = vector.broadcast %679 : f32 to vector<1x256xf32>
    %682 = arith.mulf %681, %680 : vector<1x256xf32>
    %683 = arith.addf %672, %682 : vector<1x256xf32>
    %c1_198 = arith.constant 1 : index
    %c36_199 = arith.constant 36 : index
    %684 = memref.load %arg5[%c1_198, %c36_199] : memref<2x49xf32, #tpu.memory_space<smem>>
    %685 = vector.extract_strided_slice %678 {offsets = [1, 0], sizes = [1, 256], strides = [1, 1]} : vector<2x256xf32> to vector<1x256xf32>
    %686 = vector.broadcast %684 : f32 to vector<1x256xf32>
    %687 = arith.mulf %686, %685 : vector<1x256xf32>
    %688 = arith.addf %683, %687 : vector<1x256xf32>
    %c225_i32 = arith.constant 225 : i32
    %689 = tpu.dynamic_rotate %85 by %c225_i32 dim 1 : vector<2x256xf32>, i32 -> vector<2x256xf32>
    %690 = arith.andi %97, %105 : vector<1x256xi1>
    %cst_200 = arith.constant 0.000000e+00 : f32
    %691 = vector.shape_cast %690 : vector<1x256xi1> to vector<1x256xi1>
    %692 = vector.broadcast %691 : vector<1x256xi1> to vector<2x256xi1>
    %693 = vector.broadcast %cst_200 : f32 to vector<2x256xf32>
    %694 = arith.select %692, %689, %693 : vector<2x256xi1>, vector<2x256xf32>
    %c0_201 = arith.constant 0 : index
    %c37 = arith.constant 37 : index
    %695 = memref.load %arg5[%c0_201, %c37] : memref<2x49xf32, #tpu.memory_space<smem>>
    %696 = vector.extract_strided_slice %694 {offsets = [0, 0], sizes = [1, 256], strides = [1, 1]} : vector<2x256xf32> to vector<1x256xf32>
    %697 = vector.broadcast %695 : f32 to vector<1x256xf32>
    %698 = arith.mulf %697, %696 : vector<1x256xf32>
    %699 = arith.addf %688, %698 : vector<1x256xf32>
    %c1_202 = arith.constant 1 : index
    %c37_203 = arith.constant 37 : index
    %700 = memref.load %arg5[%c1_202, %c37_203] : memref<2x49xf32, #tpu.memory_space<smem>>
    %701 = vector.extract_strided_slice %694 {offsets = [1, 0], sizes = [1, 256], strides = [1, 1]} : vector<2x256xf32> to vector<1x256xf32>
    %702 = vector.broadcast %700 : f32 to vector<1x256xf32>
    %703 = arith.mulf %702, %701 : vector<1x256xf32>
    %704 = arith.addf %699, %703 : vector<1x256xf32>
    %c224_i32 = arith.constant 224 : i32
    %705 = tpu.dynamic_rotate %85 by %c224_i32 dim 1 : vector<2x256xf32>, i32 -> vector<2x256xf32>
    %cst_204 = arith.constant 0.000000e+00 : f32
    %706 = vector.shape_cast %97 : vector<1x256xi1> to vector<1x256xi1>
    %707 = vector.broadcast %706 : vector<1x256xi1> to vector<2x256xi1>
    %708 = vector.broadcast %cst_204 : f32 to vector<2x256xf32>
    %709 = arith.select %707, %705, %708 : vector<2x256xi1>, vector<2x256xf32>
    %c0_205 = arith.constant 0 : index
    %c38 = arith.constant 38 : index
    %710 = memref.load %arg5[%c0_205, %c38] : memref<2x49xf32, #tpu.memory_space<smem>>
    %711 = vector.extract_strided_slice %709 {offsets = [0, 0], sizes = [1, 256], strides = [1, 1]} : vector<2x256xf32> to vector<1x256xf32>
    %712 = vector.broadcast %710 : f32 to vector<1x256xf32>
    %713 = arith.mulf %712, %711 : vector<1x256xf32>
    %714 = arith.addf %704, %713 : vector<1x256xf32>
    %c1_206 = arith.constant 1 : index
    %c38_207 = arith.constant 38 : index
    %715 = memref.load %arg5[%c1_206, %c38_207] : memref<2x49xf32, #tpu.memory_space<smem>>
    %716 = vector.extract_strided_slice %709 {offsets = [1, 0], sizes = [1, 256], strides = [1, 1]} : vector<2x256xf32> to vector<1x256xf32>
    %717 = vector.broadcast %715 : f32 to vector<1x256xf32>
    %718 = arith.mulf %717, %716 : vector<1x256xf32>
    %719 = arith.addf %714, %718 : vector<1x256xf32>
    %c223_i32 = arith.constant 223 : i32
    %720 = tpu.dynamic_rotate %85 by %c223_i32 dim 1 : vector<2x256xf32>, i32 -> vector<2x256xf32>
    %721 = arith.andi %97, %107 : vector<1x256xi1>
    %cst_208 = arith.constant 0.000000e+00 : f32
    %722 = vector.shape_cast %721 : vector<1x256xi1> to vector<1x256xi1>
    %723 = vector.broadcast %722 : vector<1x256xi1> to vector<2x256xi1>
    %724 = vector.broadcast %cst_208 : f32 to vector<2x256xf32>
    %725 = arith.select %723, %720, %724 : vector<2x256xi1>, vector<2x256xf32>
    %c0_209 = arith.constant 0 : index
    %c39 = arith.constant 39 : index
    %726 = memref.load %arg5[%c0_209, %c39] : memref<2x49xf32, #tpu.memory_space<smem>>
    %727 = vector.extract_strided_slice %725 {offsets = [0, 0], sizes = [1, 256], strides = [1, 1]} : vector<2x256xf32> to vector<1x256xf32>
    %728 = vector.broadcast %726 : f32 to vector<1x256xf32>
    %729 = arith.mulf %728, %727 : vector<1x256xf32>
    %730 = arith.addf %719, %729 : vector<1x256xf32>
    %c1_210 = arith.constant 1 : index
    %c39_211 = arith.constant 39 : index
    %731 = memref.load %arg5[%c1_210, %c39_211] : memref<2x49xf32, #tpu.memory_space<smem>>
    %732 = vector.extract_strided_slice %725 {offsets = [1, 0], sizes = [1, 256], strides = [1, 1]} : vector<2x256xf32> to vector<1x256xf32>
    %733 = vector.broadcast %731 : f32 to vector<1x256xf32>
    %734 = arith.mulf %733, %732 : vector<1x256xf32>
    %735 = arith.addf %730, %734 : vector<1x256xf32>
    %c222_i32 = arith.constant 222 : i32
    %736 = tpu.dynamic_rotate %85 by %c222_i32 dim 1 : vector<2x256xf32>, i32 -> vector<2x256xf32>
    %737 = arith.andi %97, %109 : vector<1x256xi1>
    %cst_212 = arith.constant 0.000000e+00 : f32
    %738 = vector.shape_cast %737 : vector<1x256xi1> to vector<1x256xi1>
    %739 = vector.broadcast %738 : vector<1x256xi1> to vector<2x256xi1>
    %740 = vector.broadcast %cst_212 : f32 to vector<2x256xf32>
    %741 = arith.select %739, %736, %740 : vector<2x256xi1>, vector<2x256xf32>
    %c0_213 = arith.constant 0 : index
    %c40 = arith.constant 40 : index
    %742 = memref.load %arg5[%c0_213, %c40] : memref<2x49xf32, #tpu.memory_space<smem>>
    %743 = vector.extract_strided_slice %741 {offsets = [0, 0], sizes = [1, 256], strides = [1, 1]} : vector<2x256xf32> to vector<1x256xf32>
    %744 = vector.broadcast %742 : f32 to vector<1x256xf32>
    %745 = arith.mulf %744, %743 : vector<1x256xf32>
    %746 = arith.addf %735, %745 : vector<1x256xf32>
    %c1_214 = arith.constant 1 : index
    %c40_215 = arith.constant 40 : index
    %747 = memref.load %arg5[%c1_214, %c40_215] : memref<2x49xf32, #tpu.memory_space<smem>>
    %748 = vector.extract_strided_slice %741 {offsets = [1, 0], sizes = [1, 256], strides = [1, 1]} : vector<2x256xf32> to vector<1x256xf32>
    %749 = vector.broadcast %747 : f32 to vector<1x256xf32>
    %750 = arith.mulf %749, %748 : vector<1x256xf32>
    %751 = arith.addf %746, %750 : vector<1x256xf32>
    %c221_i32 = arith.constant 221 : i32
    %752 = tpu.dynamic_rotate %85 by %c221_i32 dim 1 : vector<2x256xf32>, i32 -> vector<2x256xf32>
    %753 = arith.andi %97, %111 : vector<1x256xi1>
    %cst_216 = arith.constant 0.000000e+00 : f32
    %754 = vector.shape_cast %753 : vector<1x256xi1> to vector<1x256xi1>
    %755 = vector.broadcast %754 : vector<1x256xi1> to vector<2x256xi1>
    %756 = vector.broadcast %cst_216 : f32 to vector<2x256xf32>
    %757 = arith.select %755, %752, %756 : vector<2x256xi1>, vector<2x256xf32>
    %c0_217 = arith.constant 0 : index
    %c41 = arith.constant 41 : index
    %758 = memref.load %arg5[%c0_217, %c41] : memref<2x49xf32, #tpu.memory_space<smem>>
    %759 = vector.extract_strided_slice %757 {offsets = [0, 0], sizes = [1, 256], strides = [1, 1]} : vector<2x256xf32> to vector<1x256xf32>
    %760 = vector.broadcast %758 : f32 to vector<1x256xf32>
    %761 = arith.mulf %760, %759 : vector<1x256xf32>
    %762 = arith.addf %751, %761 : vector<1x256xf32>
    %c1_218 = arith.constant 1 : index
    %c41_219 = arith.constant 41 : index
    %763 = memref.load %arg5[%c1_218, %c41_219] : memref<2x49xf32, #tpu.memory_space<smem>>
    %764 = vector.extract_strided_slice %757 {offsets = [1, 0], sizes = [1, 256], strides = [1, 1]} : vector<2x256xf32> to vector<1x256xf32>
    %765 = vector.broadcast %763 : f32 to vector<1x256xf32>
    %766 = arith.mulf %765, %764 : vector<1x256xf32>
    %767 = arith.addf %762, %766 : vector<1x256xf32>
    %c211_i32 = arith.constant 211 : i32
    %768 = tpu.dynamic_rotate %85 by %c211_i32 dim 1 : vector<2x256xf32>, i32 -> vector<2x256xf32>
    %769 = arith.andi %99, %101 : vector<1x256xi1>
    %cst_220 = arith.constant 0.000000e+00 : f32
    %770 = vector.shape_cast %769 : vector<1x256xi1> to vector<1x256xi1>
    %771 = vector.broadcast %770 : vector<1x256xi1> to vector<2x256xi1>
    %772 = vector.broadcast %cst_220 : f32 to vector<2x256xf32>
    %773 = arith.select %771, %768, %772 : vector<2x256xi1>, vector<2x256xf32>
    %c0_221 = arith.constant 0 : index
    %c42 = arith.constant 42 : index
    %774 = memref.load %arg5[%c0_221, %c42] : memref<2x49xf32, #tpu.memory_space<smem>>
    %775 = vector.extract_strided_slice %773 {offsets = [0, 0], sizes = [1, 256], strides = [1, 1]} : vector<2x256xf32> to vector<1x256xf32>
    %776 = vector.broadcast %774 : f32 to vector<1x256xf32>
    %777 = arith.mulf %776, %775 : vector<1x256xf32>
    %778 = arith.addf %767, %777 : vector<1x256xf32>
    %c1_222 = arith.constant 1 : index
    %c42_223 = arith.constant 42 : index
    %779 = memref.load %arg5[%c1_222, %c42_223] : memref<2x49xf32, #tpu.memory_space<smem>>
    %780 = vector.extract_strided_slice %773 {offsets = [1, 0], sizes = [1, 256], strides = [1, 1]} : vector<2x256xf32> to vector<1x256xf32>
    %781 = vector.broadcast %779 : f32 to vector<1x256xf32>
    %782 = arith.mulf %781, %780 : vector<1x256xf32>
    %783 = arith.addf %778, %782 : vector<1x256xf32>
    %c210_i32 = arith.constant 210 : i32
    %784 = tpu.dynamic_rotate %85 by %c210_i32 dim 1 : vector<2x256xf32>, i32 -> vector<2x256xf32>
    %785 = arith.andi %99, %103 : vector<1x256xi1>
    %cst_224 = arith.constant 0.000000e+00 : f32
    %786 = vector.shape_cast %785 : vector<1x256xi1> to vector<1x256xi1>
    %787 = vector.broadcast %786 : vector<1x256xi1> to vector<2x256xi1>
    %788 = vector.broadcast %cst_224 : f32 to vector<2x256xf32>
    %789 = arith.select %787, %784, %788 : vector<2x256xi1>, vector<2x256xf32>
    %c0_225 = arith.constant 0 : index
    %c43 = arith.constant 43 : index
    %790 = memref.load %arg5[%c0_225, %c43] : memref<2x49xf32, #tpu.memory_space<smem>>
    %791 = vector.extract_strided_slice %789 {offsets = [0, 0], sizes = [1, 256], strides = [1, 1]} : vector<2x256xf32> to vector<1x256xf32>
    %792 = vector.broadcast %790 : f32 to vector<1x256xf32>
    %793 = arith.mulf %792, %791 : vector<1x256xf32>
    %794 = arith.addf %783, %793 : vector<1x256xf32>
    %c1_226 = arith.constant 1 : index
    %c43_227 = arith.constant 43 : index
    %795 = memref.load %arg5[%c1_226, %c43_227] : memref<2x49xf32, #tpu.memory_space<smem>>
    %796 = vector.extract_strided_slice %789 {offsets = [1, 0], sizes = [1, 256], strides = [1, 1]} : vector<2x256xf32> to vector<1x256xf32>
    %797 = vector.broadcast %795 : f32 to vector<1x256xf32>
    %798 = arith.mulf %797, %796 : vector<1x256xf32>
    %799 = arith.addf %794, %798 : vector<1x256xf32>
    %c209_i32 = arith.constant 209 : i32
    %800 = tpu.dynamic_rotate %85 by %c209_i32 dim 1 : vector<2x256xf32>, i32 -> vector<2x256xf32>
    %801 = arith.andi %99, %105 : vector<1x256xi1>
    %cst_228 = arith.constant 0.000000e+00 : f32
    %802 = vector.shape_cast %801 : vector<1x256xi1> to vector<1x256xi1>
    %803 = vector.broadcast %802 : vector<1x256xi1> to vector<2x256xi1>
    %804 = vector.broadcast %cst_228 : f32 to vector<2x256xf32>
    %805 = arith.select %803, %800, %804 : vector<2x256xi1>, vector<2x256xf32>
    %c0_229 = arith.constant 0 : index
    %c44 = arith.constant 44 : index
    %806 = memref.load %arg5[%c0_229, %c44] : memref<2x49xf32, #tpu.memory_space<smem>>
    %807 = vector.extract_strided_slice %805 {offsets = [0, 0], sizes = [1, 256], strides = [1, 1]} : vector<2x256xf32> to vector<1x256xf32>
    %808 = vector.broadcast %806 : f32 to vector<1x256xf32>
    %809 = arith.mulf %808, %807 : vector<1x256xf32>
    %810 = arith.addf %799, %809 : vector<1x256xf32>
    %c1_230 = arith.constant 1 : index
    %c44_231 = arith.constant 44 : index
    %811 = memref.load %arg5[%c1_230, %c44_231] : memref<2x49xf32, #tpu.memory_space<smem>>
    %812 = vector.extract_strided_slice %805 {offsets = [1, 0], sizes = [1, 256], strides = [1, 1]} : vector<2x256xf32> to vector<1x256xf32>
    %813 = vector.broadcast %811 : f32 to vector<1x256xf32>
    %814 = arith.mulf %813, %812 : vector<1x256xf32>
    %815 = arith.addf %810, %814 : vector<1x256xf32>
    %c208_i32 = arith.constant 208 : i32
    %816 = tpu.dynamic_rotate %85 by %c208_i32 dim 1 : vector<2x256xf32>, i32 -> vector<2x256xf32>
    %cst_232 = arith.constant 0.000000e+00 : f32
    %817 = vector.shape_cast %99 : vector<1x256xi1> to vector<1x256xi1>
    %818 = vector.broadcast %817 : vector<1x256xi1> to vector<2x256xi1>
    %819 = vector.broadcast %cst_232 : f32 to vector<2x256xf32>
    %820 = arith.select %818, %816, %819 : vector<2x256xi1>, vector<2x256xf32>
    %c0_233 = arith.constant 0 : index
    %c45 = arith.constant 45 : index
    %821 = memref.load %arg5[%c0_233, %c45] : memref<2x49xf32, #tpu.memory_space<smem>>
    %822 = vector.extract_strided_slice %820 {offsets = [0, 0], sizes = [1, 256], strides = [1, 1]} : vector<2x256xf32> to vector<1x256xf32>
    %823 = vector.broadcast %821 : f32 to vector<1x256xf32>
    %824 = arith.mulf %823, %822 : vector<1x256xf32>
    %825 = arith.addf %815, %824 : vector<1x256xf32>
    %c1_234 = arith.constant 1 : index
    %c45_235 = arith.constant 45 : index
    %826 = memref.load %arg5[%c1_234, %c45_235] : memref<2x49xf32, #tpu.memory_space<smem>>
    %827 = vector.extract_strided_slice %820 {offsets = [1, 0], sizes = [1, 256], strides = [1, 1]} : vector<2x256xf32> to vector<1x256xf32>
    %828 = vector.broadcast %826 : f32 to vector<1x256xf32>
    %829 = arith.mulf %828, %827 : vector<1x256xf32>
    %830 = arith.addf %825, %829 : vector<1x256xf32>
    %c207_i32 = arith.constant 207 : i32
    %831 = tpu.dynamic_rotate %85 by %c207_i32 dim 1 : vector<2x256xf32>, i32 -> vector<2x256xf32>
    %832 = arith.andi %99, %107 : vector<1x256xi1>
    %cst_236 = arith.constant 0.000000e+00 : f32
    %833 = vector.shape_cast %832 : vector<1x256xi1> to vector<1x256xi1>
    %834 = vector.broadcast %833 : vector<1x256xi1> to vector<2x256xi1>
    %835 = vector.broadcast %cst_236 : f32 to vector<2x256xf32>
    %836 = arith.select %834, %831, %835 : vector<2x256xi1>, vector<2x256xf32>
    %c0_237 = arith.constant 0 : index
    %c46 = arith.constant 46 : index
    %837 = memref.load %arg5[%c0_237, %c46] : memref<2x49xf32, #tpu.memory_space<smem>>
    %838 = vector.extract_strided_slice %836 {offsets = [0, 0], sizes = [1, 256], strides = [1, 1]} : vector<2x256xf32> to vector<1x256xf32>
    %839 = vector.broadcast %837 : f32 to vector<1x256xf32>
    %840 = arith.mulf %839, %838 : vector<1x256xf32>
    %841 = arith.addf %830, %840 : vector<1x256xf32>
    %c1_238 = arith.constant 1 : index
    %c46_239 = arith.constant 46 : index
    %842 = memref.load %arg5[%c1_238, %c46_239] : memref<2x49xf32, #tpu.memory_space<smem>>
    %843 = vector.extract_strided_slice %836 {offsets = [1, 0], sizes = [1, 256], strides = [1, 1]} : vector<2x256xf32> to vector<1x256xf32>
    %844 = vector.broadcast %842 : f32 to vector<1x256xf32>
    %845 = arith.mulf %844, %843 : vector<1x256xf32>
    %846 = arith.addf %841, %845 : vector<1x256xf32>
    %c206_i32 = arith.constant 206 : i32
    %847 = tpu.dynamic_rotate %85 by %c206_i32 dim 1 : vector<2x256xf32>, i32 -> vector<2x256xf32>
    %848 = arith.andi %99, %109 : vector<1x256xi1>
    %cst_240 = arith.constant 0.000000e+00 : f32
    %849 = vector.shape_cast %848 : vector<1x256xi1> to vector<1x256xi1>
    %850 = vector.broadcast %849 : vector<1x256xi1> to vector<2x256xi1>
    %851 = vector.broadcast %cst_240 : f32 to vector<2x256xf32>
    %852 = arith.select %850, %847, %851 : vector<2x256xi1>, vector<2x256xf32>
    %c0_241 = arith.constant 0 : index
    %c47 = arith.constant 47 : index
    %853 = memref.load %arg5[%c0_241, %c47] : memref<2x49xf32, #tpu.memory_space<smem>>
    %854 = vector.extract_strided_slice %852 {offsets = [0, 0], sizes = [1, 256], strides = [1, 1]} : vector<2x256xf32> to vector<1x256xf32>
    %855 = vector.broadcast %853 : f32 to vector<1x256xf32>
    %856 = arith.mulf %855, %854 : vector<1x256xf32>
    %857 = arith.addf %846, %856 : vector<1x256xf32>
    %c1_242 = arith.constant 1 : index
    %c47_243 = arith.constant 47 : index
    %858 = memref.load %arg5[%c1_242, %c47_243] : memref<2x49xf32, #tpu.memory_space<smem>>
    %859 = vector.extract_strided_slice %852 {offsets = [1, 0], sizes = [1, 256], strides = [1, 1]} : vector<2x256xf32> to vector<1x256xf32>
    %860 = vector.broadcast %858 : f32 to vector<1x256xf32>
    %861 = arith.mulf %860, %859 : vector<1x256xf32>
    %862 = arith.addf %857, %861 : vector<1x256xf32>
    %c205_i32 = arith.constant 205 : i32
    %863 = tpu.dynamic_rotate %85 by %c205_i32 dim 1 : vector<2x256xf32>, i32 -> vector<2x256xf32>
    %864 = arith.andi %99, %111 : vector<1x256xi1>
    %cst_244 = arith.constant 0.000000e+00 : f32
    %865 = vector.shape_cast %864 : vector<1x256xi1> to vector<1x256xi1>
    %866 = vector.broadcast %865 : vector<1x256xi1> to vector<2x256xi1>
    %867 = vector.broadcast %cst_244 : f32 to vector<2x256xf32>
    %868 = arith.select %866, %863, %867 : vector<2x256xi1>, vector<2x256xf32>
    %c0_245 = arith.constant 0 : index
    %c48 = arith.constant 48 : index
    %869 = memref.load %arg5[%c0_245, %c48] : memref<2x49xf32, #tpu.memory_space<smem>>
    %870 = vector.extract_strided_slice %868 {offsets = [0, 0], sizes = [1, 256], strides = [1, 1]} : vector<2x256xf32> to vector<1x256xf32>
    %871 = vector.broadcast %869 : f32 to vector<1x256xf32>
    %872 = arith.mulf %871, %870 : vector<1x256xf32>
    %873 = arith.addf %862, %872 : vector<1x256xf32>
    %c1_246 = arith.constant 1 : index
    %c48_247 = arith.constant 48 : index
    %874 = memref.load %arg5[%c1_246, %c48_247] : memref<2x49xf32, #tpu.memory_space<smem>>
    %875 = vector.extract_strided_slice %868 {offsets = [1, 0], sizes = [1, 256], strides = [1, 1]} : vector<2x256xf32> to vector<1x256xf32>
    %876 = vector.broadcast %874 : f32 to vector<1x256xf32>
    %877 = arith.mulf %876, %875 : vector<1x256xf32>
    %878 = arith.addf %873, %877 : vector<1x256xf32>
    %879 = arith.negf %878 : vector<1x256xf32>
    %880 = math.exp %879 : vector<1x256xf32>
    %cst_248 = arith.constant 1.000000e+00 : f32
    %881 = vector.broadcast %cst_248 : f32 to vector<1x256xf32>
    %882 = arith.addf %881, %880 : vector<1x256xf32>
    %883 = arith.divf %881, %882 : vector<1x256xf32>
    %884 = vector.broadcast %65 : vector<64x1xf32> to vector<64x256xf32>
    %885 = vector.broadcast %883 : vector<1x256xf32> to vector<64x256xf32>
    %886 = arith.mulf %884, %885 : vector<64x256xf32>
    %c0_249 = arith.constant 0 : index
    %c0_250 = arith.constant 0 : index
    %c0_251 = arith.constant 0 : index
    %887 = vector.load %arg1[%c0_249, %c0_250, %c0_251] : memref<1x64x256xbf16, #tpu.memory_space<vmem>>, vector<1x64x256xbf16>
    %888 = vector.shape_cast %887 : vector<1x64x256xbf16> to vector<64x256xbf16>
    %889 = arith.extf %888 : vector<64x256xbf16> to vector<64x256xf32>
    %cst_252 = arith.constant 1.000000e+00 : f32
    %890 = vector.broadcast %cst_252 : f32 to vector<64x256xf32>
    %891 = arith.addf %886, %890 : vector<64x256xf32>
    %892 = arith.mulf %889, %891 : vector<64x256xf32>
    %893 = arith.truncf %892 : vector<64x256xf32> to vector<64x256xbf16>
    %c0_253 = arith.constant 0 : index
    %c0_254 = arith.constant 0 : index
    %c0_255 = arith.constant 0 : index
    %894 = vector.load %arg10[%c0_253, %c0_254, %c0_255] : memref<1x64x256xbf16, #tpu.memory_space<vmem>>, vector<1x64x256xbf16>
    %895 = vector.shape_cast %894 : vector<1x64x256xbf16> to vector<64x256xbf16>
    %896 = vector.shape_cast %893 : vector<64x256xbf16> to vector<1x64x256xbf16>
    tpu.vector_store %arg10[%c0_253, %c0_254, %c0_255], %896 {strides = array<i32>} : memref<1x64x256xbf16, #tpu.memory_space<vmem>>, vector<1x64x256xbf16>,
    return
  }
  func.func @transform_0(%arg0: i32) -> (i32, i32, i32) {
    %c0_i32 = arith.constant 0 : i32
    %c0_i32_0 = arith.constant 0 : i32
    %c0_i32_1 = arith.constant 0 : i32
    return %arg0, %c0_i32, %c0_i32_0 : i32, i32, i32
  }
  func.func @transform_1(%arg0: i32) -> (i32, i32) {
    %c0_i32 = arith.constant 0 : i32
    %c0_i32_0 = arith.constant 0 : i32
    %c0_i32_1 = arith.constant 0 : i32
    return %c0_i32, %c0_i32_0 : i32, i32
  }
  func.func @transform_2(%arg0: i32) -> (i32, i32) {
    %c0_i32 = arith.constant 0 : i32
    %c0_i32_0 = arith.constant 0 : i32
    %c0_i32_1 = arith.constant 0 : i32
    return %c0_i32, %c0_i32_0 : i32, i32
  }
  func.func @transform_3(%arg0: i32) -> (i32, i32) {
    %c0_i32 = arith.constant 0 : i32
    %c0_i32_0 = arith.constant 0 : i32
    %c0_i32_1 = arith.constant 0 : i32
    return %c0_i32, %c0_i32_0 : i32, i32
  }
  func.func @transform_4(%arg0: i32) -> (i32, i32) {
    %c0_i32 = arith.constant 0 : i32
    %c0_i32_0 = arith.constant 0 : i32
    %c0_i32_1 = arith.constant 0 : i32
    return %c0_i32, %c0_i32_0 : i32, i32
  }
  func.func @transform_5(%arg0: i32) -> i32 {
    %c0_i32 = arith.constant 0 : i32
    %c0_i32_0 = arith.constant 0 : i32
    return %c0_i32 : i32
  }
  func.func @transform_6(%arg0: i32) -> (i32, i32) {
    %c0_i32 = arith.constant 0 : i32
    %c0_i32_0 = arith.constant 0 : i32
    %c0_i32_1 = arith.constant 0 : i32
    return %c0_i32, %c0_i32_0 : i32, i32
  }
  func.func @transform_7(%arg0: i32) -> (i32, i32) {
    %c0_i32 = arith.constant 0 : i32
    %c0_i32_0 = arith.constant 0 : i32
    %c0_i32_1 = arith.constant 0 : i32
    return %c0_i32, %c0_i32_0 : i32, i32
  }
  func.func @transform_8(%arg0: i32) -> (i32, i32) {
    %c0_i32 = arith.constant 0 : i32
    %c0_i32_0 = arith.constant 0 : i32
    %c0_i32_1 = arith.constant 0 : i32
    return %c0_i32, %c0_i32_0 : i32, i32
  }
  func.func @transform_9(%arg0: i32) -> (i32, i32, i32) {
    %c0_i32 = arith.constant 0 : i32
    %c0_i32_0 = arith.constant 0 : i32
    %c0_i32_1 = arith.constant 0 : i32
    return %arg0, %c0_i32, %c0_i32_0 : i32, i32, i32
  }
}

</mosaic_0001>

<bundles_post_ra>
// kernel: saan_attention.1
= control target key start
LH: loop header
LB: loop body
LE: loop exit
PB: predicated region body
PF: predicated region fallthrough
CT: control target
= control target key end

     0   :  { %s7347_s0 = inlined_call_operand.hbm [shape: bf16[2,64,256], index: 0, kind: input, shape index: {}]   ;;  %s7348_s1 = inlined_call_operand.hbm [shape: s32[2,256], index: 1, kind: input, shape index: {}]   ;;  %s7349_s2 = inlined_call_operand.hbm [shape: bf16[16,64], index: 2, kind: input, shape index: {}]   ;;  %s7350_s3 = inlined_call_operand.hbm [shape: f32[16,1], index: 3, kind: input, shape index: {}]   ;;  %s7351_s4 = inlined_call_operand.hbm [shape: f32[2,49], index: 4, kind: input, shape index: {}]   ;;  %s7352_s5 = inlined_call_operand.hbm [shape: f32[3], index: 5, kind: input, shape index: {}]   ;;  %s7353_s6 = inlined_call_operand.hbm [shape: f32[64,1], index: 6, kind: input, shape index: {}]   ;;  %s7354_s7 = inlined_call_operand.hbm [shape: f32[64,1], index: 7, kind: input, shape index: {}]   ;;  %s7355_s8 = inlined_call_operand.hbm [shape: bf16[64,64], index: 8, kind: input, shape index: {}]   ;;  %s7356_s9 = inlined_call_operand.hbm [shape: bf16[2,64,256], index: 9, kind: output, shape index: {}]  }
   0x1   :  { %7410 = sst [smem:[#allocation53_spill]] %s7347_s0 }
   0x2   :  { %7411 = sst [smem:[#allocation54_spill]] %s7348_s1 }
   0x3   :  { %7412 = sst [smem:[#allocation55_spill]] %s7349_s2 }
   0x4   :  { %7413 = sst [smem:[#allocation56_spill]] %s7350_s3 }
   0x5   :  { %7414 = sst [smem:[#allocation57_spill]] %s7351_s4 }
   0x6   :  { %7415 = sst [smem:[#allocation58_spill]] %s7352_s5 }
   0x7   :  { %7416 = sst [smem:[#allocation59_spill]] %s7353_s6 }
   0x8   :  { %7417 = sst [smem:[#allocation60_spill]] %s7354_s7 }
   0x9   :  { %7418 = sst [smem:[#allocation61_spill]] %s7355_s8 }
   0xa   :  { %7419 = sst [smem:[#allocation62_spill]] %s7356_s9 }
   0xb   :  { %14 = vsyncpa [#allocation3], 0 }
   0xc   :  { %16 = vsyncpa [#allocation3 + $0x1], 0 }
   0xd   :  { %17 = vsyncpa [#allocation7], 0 }
   0xe   :  { %18 = vsyncpa [#allocation10], 0 }
   0xf   :  { %19 = vsyncpa [#allocation5], 0 }
  0x10   :  { %20 = vsyncpa [#allocation13], 0 }
  0x11   :  { %21 = vsyncpa [#allocation16], 0 }
  0x12   :  { %22 = vsyncpa [#allocation4], 0 }
  0x13   :  { %24 = vsyncpa [#allocation4 + $0x1], 0  ;;  %s4342_s30 = smov 0   ;;  %s4344_s10 = smov 0  }
  0x14   :  { %s4346_s11 = smov 0   ;;  %s4348_s12 = smov 0  }
  0x15 LB: > { %7420 = sst [smem:[#allocation27_spill]] %s4213_s30  ;;  %s4227_s13 = smov [#allocation6]   ;;  %s4225_s12 = sphi %s4348_s12, %s7880_s12   ;;  %s4221_s11 = sphi %s4346_s11, %s7883_s11   ;;  %s4217_s10 = sphi %s4344_s10, %s7882_s10   ;;  %s4213_s30 = sphi %s4342_s30, %s7881_s30  }
  0x16   : > { %7421 = sst [smem:[#allocation28_spill]] %s4217_s10  ;;  %s268_s14 = sshll.u32 %s4227_s13, 4  ;;  %s269_s14 = int_to_ptr.vmem [resolvable:$true] %s268_s14 }
  0x17   : > { %7422 = sst [smem:[#allocation29_spill]] %s4221_s11  ;;  %s4363_s15 = sadd.s32 4294967295, %s4225_s12  }
  0x18   : > { %7423 = sst [smem:[#allocation30_spill]] %s4225_s12  ;;  %p3452_p0 = scmp.ge.s32.totalorder %s4225_s12, 1 }
  0x19   : > { %7424 = sst [smem:[#allocation31_spill]] %s4363_s15  ;;  %p7357_p1 = scmp.eq.s32.totalorder %s4363_s15, 0 }
  0x1a   : > { %p255_p2 = scmp.lt.s32.totalorder %s4225_s12, 3  ;;  %s4228_s17 = smov [#allocation9]  }
  0x1b   : > { %s291_s18 = sshll.u32 %s4228_s17, 4  ;;  %s4229_s20 = smov [#allocation15]   ;;  %s4375_s18 = int_to_ptr.vmem [resolvable:$true] %s291_s18 }
  0x1c   : > { %p4368_p3 = pnand %p3452_p0, %p255_p2  ;;  %s335_s21 = sshll.u32 %s4229_s20, 4  ;;  %s4383_s21 = int_to_ptr.vmem [resolvable:$true] %s335_s21 }
  0x1d   : > { %s7427_s1 = sld [smem:[#allocation54_spill]] }
  0x1e   : > { %s7425_s16 = scalar_select %p4368_p3, 1, 0 }
  0x1f   : > { %p3690_p5 = pneg %p4368_p3 }
  0x21   : > { %p4379_p6 = pnand %p3690_p5, %p7357_p1 }
  0x23   : > { %s3911_s24 = scalar_lea.hbm %s7427_s1, 64  ;;  %p4393_p8 = pneg %p4379_p6 }
  0x24   : > { %p3912_p7 = scmp.ne.s32.totalorder %s7427_s1, %s3911_s24  ;;  %p3918_p11 = scmp.lt.u32.totalorder %s3911_s24, %s7427_s1 }
  0x26   : > { %p3914_p9 = pnand %p4393_p8, %p3912_p7 }
  0x28   : > { %p3915_p10 = pneg %p3914_p9 }
  0x2a   : > { %p3920_p12 = pnand %p3918_p11, %p3915_p10 }
  0x2c   : > { %3923 = shalt.err (!%p3920_p12)
}
  0x2d   : > { %s3924_s13 = scalar_lea.vmem %s269_s14, 64  ;;  %p3932_p5 = scmp.lt.s32.totalorder %s269_s14, %s269_s14 }
  0x2e   : > { %p3925_p13 = scmp.ne.s32.totalorder %s269_s14, %s3924_s13  ;;  %p3933_p4 = scmp.lt.s32.totalorder %s3924_s13, %s3924_s13 }
  0x30   : > { %p3927_p0 = pnand %p3925_p13, %p4393_p8  ;;  %p3934_p1 = por %p3933_p4, %p3932_p5 }
  0x32   : > { %p3928_p2 = pneg %p3927_p0 }
  0x34   : > { %p3935_p3 = pnand %p3934_p1, %p3928_p2 }
  0x36   : > { %3938 = shalt.err (!%p3935_p3)
}
  0x37   : > { %3693 = dma.hbm_to_vmem [thread:$0]  (!%p4379_p6), %s7427_s1, 64, %s269_s14, [#allocation7]  }
  0x38   : > { %s7429_s3 = sld [smem:[#allocation56_spill]] }
  0x3e   : > { %s3939_s24 = scalar_lea.hbm %s7429_s3, 256 }
  0x3f   : > { %p3940_p7 = scmp.ne.s32.totalorder %s7429_s3, %s3939_s24  ;;  %p3946_p1 = scmp.lt.u32.totalorder %s3939_s24, %s7429_s3 }
  0x41   : > { %p3942_p9 = pnand %p3940_p7, %p4393_p8 }
  0x43   : > { %p3943_p4 = pneg %p3942_p9 }
  0x45   : > { %p3948_p3 = pnand %p3946_p1, %p3943_p4 }
  0x47   : > { %3951 = shalt.err (!%p3948_p3)
}
  0x48   : > { %s3952_s14 = scalar_lea.vmem %s4375_s18, 256  ;;  %p3960_p13 = scmp.lt.s32.totalorder %s4375_s18, %s4375_s18 }
  0x49   : > { %p3953_p10 = scmp.ne.s32.totalorder %s4375_s18, %s3952_s14  ;;  %p3961_p0 = scmp.lt.s32.totalorder %s3952_s14, %s3952_s14 }
  0x4b   : > { %p3955_p11 = pnand %p3953_p10, %p4393_p8  ;;  %p3962_p2 = por %p3961_p0, %p3960_p13 }
  0x4d   : > { %p3956_p12 = pneg %p3955_p11 }
  0x4f   : > { %p3963_p5 = pnand %p3962_p2, %p3956_p12 }
  0x51   : > { %3966 = shalt.err (!%p3963_p5)
}
  0x52   : > { %s7359_s13 = smov 128   ;;  %s7362_s17 = smov 8  }
  0x53   : > { %3699 = dma.hbm_to_vmem [thread:$0]  (!%p4379_p6), %s7429_s3, 256, %s4375_s18, [#allocation10], %s7359_s13, %s7359_s13, %s7362_s17  }
  0x54   : > { %s7430_s7 = sld [smem:[#allocation60_spill]] }
  0x5a   : > { %s3967_s25 = scalar_lea.hbm %s7430_s7, 1024 }
  0x5b   : > { %p3968_p7 = scmp.ne.s32.totalorder %s7430_s7, %s3967_s25  ;;  %p3974_p1 = scmp.lt.u32.totalorder %s3967_s25, %s7430_s7 }
  0x5d   : > { %p3970_p9 = pnand %p3968_p7, %p4393_p8 }
  0x5f   : > { %p3971_p4 = pneg %p3970_p9 }
  0x61   : > { %p3976_p3 = pnand %p3974_p1, %p3971_p4 }
  0x63   : > { %3979 = shalt.err (!%p3976_p3)
}
  0x64   : > { %s3980_s18 = scalar_lea.vmem %s4383_s21, 1024  ;;  %p3988_p13 = scmp.lt.s32.totalorder %s4383_s21, %s4383_s21 }
  0x65   : > { %p3981_p10 = scmp.ne.s32.totalorder %s4383_s21, %s3980_s18  ;;  %p3989_p0 = scmp.lt.s32.totalorder %s3980_s18, %s3980_s18 }
  0x67   : > { %p3983_p11 = pnand %p3981_p10, %p4393_p8  ;;  %p3990_p2 = por %p3989_p0, %p3988_p13 }
  0x69   : > { %p3984_p12 = pneg %p3983_p11 }
  0x6b   : > { %p3991_p5 = pnand %p3990_p2, %p3984_p12 }
  0x6d   : > { %3994 = shalt.err (!%p3991_p5)
}
  0x6e   : > { %3711 = dma.hbm_to_vmem [thread:$0]  (!%p4379_p6), %s7430_s7, 1024, %s4383_s21, [#allocation16], %s7359_s13, %s7359_s13, %s7362_s17  }
  0x6f   : > { %s4232_s23 = smov [#allocation8]   ;;  %s7431_s2 = sld [smem:[#allocation55_spill]] }
  0x70   : > { %s278_s24 = sshll.u32 %s4232_s23, 4  ;;  %s279_s24 = int_to_ptr.vmem [resolvable:$true] %s278_s24 }
  0x75   : > { %s3995_s28 = scalar_lea.hbm %s7431_s2, 128 }
  0x76   : > { %p3996_p7 = scmp.ne.s32.totalorder %s7431_s2, %s3995_s28  ;;  %p4002_p1 = scmp.lt.u32.totalorder %s3995_s28, %s7431_s2 }
  0x78   : > { %p3998_p9 = pnand %p3996_p7, %p4393_p8 }
  0x7a   : > { %p3999_p4 = pneg %p3998_p9 }
  0x7c   : > { %p4004_p3 = pnand %p4002_p1, %p3999_p4 }
  0x7e   : > { %4007 = shalt.err (!%p4004_p3)
}
  0x7f   : > { %s4008_s21 = scalar_lea.vmem %s279_s24, 128  ;;  %p4016_p13 = scmp.lt.s32.totalorder %s279_s24, %s279_s24 }
  0x80   : > { %p4009_p10 = scmp.ne.s32.totalorder %s279_s24, %s4008_s21  ;;  %p4017_p0 = scmp.lt.s32.totalorder %s4008_s21, %s4008_s21 }
  0x82   : > { %p4011_p11 = pnand %p4009_p10, %p4393_p8  ;;  %p4018_p2 = por %p4017_p0, %p4016_p13 }
  0x84   : > { %p4012_p12 = pneg %p4011_p11 }
  0x86   : > { %p4019_p5 = pnand %p4018_p2, %p4012_p12 }
  0x88   : > { %4022 = shalt.err (!%p4019_p5)
}
  0x89   : > { %s7361_s20 = smov 64   ;;  %s4234_s22 = smov 4  }
  0x8a   : > { %3696 = dma.hbm_to_vmem [thread:$0]  (!%p4379_p6), %s7431_s2, 128, %s279_s24, [#allocation7], %s7361_s20, %s7361_s20, %s4234_s22  }
  0x8b   : > { %s7432_s4 = sld [smem:[#allocation57_spill]] }
  0x91   : > { %s4023_s28 = scalar_lea.hbm %s7432_s4, 32 }
  0x92   : > { %p4024_p7 = scmp.ne.s32.totalorder %s7432_s4, %s4023_s28  ;;  %p4030_p1 = scmp.lt.u32.totalorder %s4023_s28, %s7432_s4 }
  0x94   : > { %p4026_p9 = pnand %p4024_p7, %p4393_p8 }
  0x96   : > { %p4027_p4 = pneg %p4026_p9 }
  0x98   : > { %p4032_p3 = pnand %p4030_p1, %p4027_p4 }
  0x9a   : > { %4035 = shalt.err (!%p4032_p3)
}
  0x9b   : > { %s4235_s13 = smov [#allocation11]   ;;  %s7433_s5 = sld [smem:[#allocation58_spill]] }
  0x9c   : > { %3702 = dma.hbm_to_smem (!%p4379_p6), %s7432_s4, 32, %s4235_s13, [#allocation5]  }
  0xa1   : > { %s4036_s26 = scalar_lea.hbm %s7433_s5, 16 }
  0xa2   : > { %p4037_p10 = scmp.ne.s32.totalorder %s7433_s5, %s4036_s26  ;;  %p4043_p13 = scmp.lt.u32.totalorder %s4036_s26, %s7433_s5 }
  0xa4   : > { %p4039_p11 = pnand %p4037_p10, %p4393_p8 }
  0xa6   : > { %p4040_p12 = pneg %p4039_p11 }
  0xa8   : > { %p4045_p0 = pnand %p4043_p13, %p4040_p12 }
  0xaa   : > { %4048 = shalt.err (!%p4045_p0)
}
  0xab   : > { %s4236_s21 = smov [#allocation12]   ;;  %s4237_s1 = smov [#allocation14]  }
  0xac   : > { %3705 = dma.hbm_to_smem (!%p4379_p6), %s7433_s5, 16, %s4236_s21, [#allocation13]  }
  0xad   : > { %s322_s23 = sshll.u32 %s4237_s1, 4  ;;  %s4238_s25 = smov [#allocation17]   ;;  %s323_s23 = int_to_ptr.vmem [resolvable:$true] %s322_s23 }
  0xae   : > { %s348_s29 = sshll.u32 %s4238_s25, 4  ;;  %s7434_s6 = sld [smem:[#allocation59_spill]]  ;;  %s4514_s29 = int_to_ptr.vmem [resolvable:$true] %s348_s29 }
  0xb4   : > { %s4049_s26 = scalar_lea.hbm %s7434_s6, 1024 }
  0xb5   : > { %p4050_p2 = scmp.ne.s32.totalorder %s7434_s6, %s4049_s26  ;;  %p4056_p9 = scmp.lt.u32.totalorder %s4049_s26, %s7434_s6 }
  0xb7   : > { %p4052_p5 = pnand %p4050_p2, %p4393_p8 }
  0xb9   : > { %p4053_p7 = pneg %p4052_p5 }
  0xbb   : > { %p4058_p4 = pnand %p4056_p9, %p4053_p7 }
  0xbd   : > { %4061 = shalt.err (!%p4058_p4)
}
  0xbe   : > { %s4062_s24 = scalar_lea.vmem %s323_s23, 1024  ;;  %p4070_p11 = scmp.lt.s32.totalorder %s323_s23, %s323_s23 }
  0xbf   : > { %p4063_p1 = scmp.ne.s32.totalorder %s323_s23, %s4062_s24  ;;  %p4071_p12 = scmp.lt.s32.totalorder %s4062_s24, %s4062_s24 }
  0xc1   : > { %p4065_p3 = pnand %p4063_p1, %p4393_p8  ;;  %p4072_p13 = por %p4071_p12, %p4070_p11 }
  0xc3   : > { %p4066_p10 = pneg %p4065_p3 }
  0xc5   : > { %p4073_p0 = pnand %p4072_p13, %p4066_p10 }
  0xc7   : > { %4076 = shalt.err (!%p4073_p0)
}
  0xc8   : > { %s7435_s20 = smov 128   ;;  %s7436_s8 = sld [smem:[#allocation61_spill]] }
  0xc9   : > { %3708 = dma.hbm_to_vmem [thread:$0]  (!%p4379_p6), %s7434_s6, 1024, %s323_s23, [#allocation10], %s7435_s20, %s7435_s20, %s7362_s17  }
  0xce   : > { %s4077_s26 = scalar_lea.hbm %s7436_s8, 512 }
  0xcf   : > { %p4078_p2 = scmp.ne.s32.totalorder %s7436_s8, %s4077_s26  ;;  %p4084_p9 = scmp.lt.u32.totalorder %s4077_s26, %s7436_s8 }
  0xd1   : > { %p4080_p5 = pnand %p4078_p2, %p4393_p8 }
  0xd3   : > { %p4081_p7 = pneg %p4080_p5 }
  0xd5   : > { %p4086_p4 = pnand %p4084_p9, %p4081_p7 }
  0xd7   : > { %4089 = shalt.err (!%p4086_p4)
}
  0xd8   : > { %s4090_s23 = scalar_lea.vmem %s4514_s29, 512  ;;  %p4098_p11 = scmp.lt.s32.totalorder %s4514_s29, %s4514_s29 }
  0xd9   : > { %p4091_p1 = scmp.ne.s32.totalorder %s4514_s29, %s4090_s23  ;;  %p4099_p12 = scmp.lt.s32.totalorder %s4090_s23, %s4090_s23 }
  0xdb   : > { %p4093_p3 = pnand %p4091_p1, %p4393_p8  ;;  %p4100_p13 = por %p4099_p12, %p4098_p11 }
  0xdd   : > { %p4094_p10 = pneg %p4093_p3 }
  0xdf   : > { %p4101_p0 = pnand %p4100_p13, %p4094_p10 }
  0xe1   : > { %4104 = shalt.err (!%p4101_p0)
}
  0xe2   : > { %s7437_s1 = smov 64   ;;  %s3451_s19 = sadd.s32 4294967294, %s4225_s12  }
  0xe3   : > { %3714 = dma.hbm_to_vmem [thread:$0]  (!%p4379_p6), %s7436_s8, 512, %s4514_s29, [#allocation16], %s7437_s1, %s7437_s1, %s4234_s22  }
  0xe4   : > { %s4565_s27 = sadd.s32 1, %s4225_s12   ;;  %s37_s26 = sadd.s32 1, %s4221_s11 }
  0xe5   : > { %7438 = sst [smem:[#allocation32_spill]] %s4565_s27  ;;  %s34_s28 = ssub.s32 %s4225_s12, %s4565_s27 }
  0xe6   : > { %p35_p8 = scmp.eq.s32.totalorder %s34_s28, 0  ;;  %p44_p2 = scmp.ne.s32.totalorder %s4221_s11, %s4217_s10 }
  0xe7   : > { %p45_p5 = scmp.eq.s32.totalorder %s4225_s12, 0  ;;  %p50_p7 = scmp.ne.s32.totalorder %s4217_s10, %s4213_s30 }
  0xe8   : > { %s4576_s18 = scalar_select %p35_p8, %s4221_s11, %s37_s26  }
  0xe9   : > { %p4578_p9 = por %p45_p5, %p44_p2  ;;  %p7441_p4 = scmp.eq.s32.totalorder %s4363_s15, 0 }
  0xea   : > { %7439 = sst [smem:[#allocation33_spill]] %s4576_s18  ;;  %p242_p1 = scmp.eq.s32.totalorder %s4363_s15, 1 }
  0xeb   : > { %p4584_p6 = por %p7441_p4, %p50_p7  ;;  %p248_p3 = scmp.eq.s32.totalorder %s3451_s19, 1 }
  0xec   : > { %p3731_p10 = scmp.lt.s32.totalorder %s4225_s12, 2  ;;  %s362_s29 = sand.u32 1, %s4221_s11  }
  0xed   : > { %p4591_p11 = por %p242_p1, %p44_p2  ;;  %p4595_p12 = por %p248_p3, %p50_p7 }
  0xee   : > { %s3462_s23 = sshll.u32 %s362_s29, 6  ;;  %s3620_s1 = sshll.u32 %s4225_s12, 10 }
  0xef   : > { %s7443_s21 = scalar_select %p4591_p11, 1, 0 }
  0xf0   : > { %s7445_s24 = scalar_select %p4595_p12, 1, 0 }
  0xf1   : > { %7444 = sst [smem:[#allocation34_spill]] %s7443_s21  ;;  %s7447_s0 = sld [smem:[#allocation53_spill]] }
  0xf2   : > { %7446 = sst [smem:[#allocation35_spill]] %s7445_s24  ;;  %s366_s19 = scalar_lea.vmem [#allocation2], %s3462_s23 }
  0xf3   : > { %s373_s26 = sshll.u32 %s366_s19, 4  ;;  %p4609_p13 = pnand %p3731_p10, %p4578_p9  ;;  %s4605_s26 = int_to_ptr.vmem [resolvable:$true] %s373_s26 }
  0xf4   : > { %s4613_s2 = scalar_lea.sflag [#allocation3], %s362_s29 }
  0xf5   : > { %p4107_p8 = pneg %p4609_p13 }
  0xf7   : > { %s4603_s28 = scalar_lea.hbm %s7447_s0, %s3620_s1  ;;  %s4110_s13 = scalar_lea.hbm %s7447_s0, 2048 }
  0xf8   : > { %s4105_s25 = scalar_lea.hbm %s4603_s28, 1024  ;;  %p4111_p7 = scmp.lt.u32.totalorder %s4603_s28, %s7447_s0 }
  0xf9   : > { %p4106_p0 = scmp.ne.s32.totalorder %s4603_s28, %s4105_s25  ;;  %p4112_p9 = scmp.lt.u32.totalorder %s4110_s13, %s4105_s25 }
  0xfa   : > { %p4114_p1 = scmp.lt.u32.totalorder %s4105_s25, %s4603_s28 }
  0xfb   : > { %p4108_p2 = pnand %p4107_p8, %p4106_p0  ;;  %p4113_p4 = por %p4112_p9, %p4111_p7 }
  0xfd   : > { %p4109_p5 = pneg %p4108_p2  ;;  %p4115_p3 = por %p4114_p1, %p4113_p4 }
  0xff   : > { %p4116_p10 = pnand %p4115_p3, %p4109_p5 }
 0x101   : > { %4119 = shalt.err (!%p4116_p10)
}
 0x102   : > { %s4120_s29 = scalar_lea.vmem %s4605_s26, 1024  ;;  %s4239_s23 = smov [#allocation2]  }
 0x103   : > { %p4121_p0 = scmp.ne.s32.totalorder %s4605_s26, %s4120_s29  ;;  %s4125_s1 = sshll.u32 %s4239_s23, 4  ;;  %s4126_s1 = int_to_ptr.vmem [resolvable:$false] %s4125_s1 }
 0x104   : > { %s4127_s14 = scalar_lea.vmem %s4126_s1, 2048  ;;  %p4128_p11 = scmp.lt.s32.totalorder %s4605_s26, %s4126_s1 }
 0x105   : > { %p4123_p2 = pnand %p4121_p0, %p4107_p8  ;;  %p4129_p7 = scmp.lt.s32.totalorder %s4127_s14, %s4120_s29 }
 0x107   : > { %p4124_p12 = pneg %p4123_p2  ;;  %p4130_p9 = por %p4129_p7, %p4128_p11 }
 0x109   : > { %p4131_p4 = pnand %p4130_p9, %p4124_p12 }
 0x10b   : > { %4134 = shalt.err (!%p4131_p4)
}
 0x10c   : > { %s7449_s25 = smov 8   ;;  %p7450_p8 = scmp.ne.s32.totalorder %s7425_s16, 0 }
 0x10d   : > { %3718 = dma.hbm_to_vmem [thread:$0]  (!%p4609_p13), %s4603_s28, 1024, %s4605_s26, %s4613_s2, %s7435_s20, %s7435_s20, %s7449_s25  }
 0x10e   : > { %385 = sbr.rel (%p7450_p8) target bundleno = 1156 (0x484), region = 56 }
 0x115   : > { %s4647_s13 = sand.u32 1, %s4217_s10  }
 0x116   : > { %7451 = sst [smem:[#allocation36_spill]] %s4647_s13  ;;  %s7364_s19 = sshll.u32 %s4647_s13, 6 }
 0x117   : > { %s388_s29 = scalar_lea.sflag [#allocation3], %s4647_s13  ;;  %s4653_s17 = scalar_lea.vmem [#allocation2], %s7364_s19 }
 0x118   : > { %4180 = dma.done.wait (%p4584_p6), %s388_s29, 1024  }
 0x119   : > { %4182 = vsyncadd (%p4584_p6), %s388_s29, 4294966272  ;;  %p7452_p11 = scmp.eq.s32.totalorder %s4363_s15, 0 }
 0x11b   : > { %4184 = dma.done.wait (%p7452_p11), [#allocation7], 192   ;;  %p7453_p12 = pmov %p7452_p11 }
 0x11c   : > { %p7454_p13 = pmov %p7452_p11 }
 0x11d   : > { %4186 = vsyncadd (%p7453_p12), [#allocation7], 4294967104 }
 0x11e   : > { %4188 = dma.done.wait (%p7454_p13), [#allocation10], 256   ;;  %p7455_p5 = pmov %p7452_p11 }
 0x120   : > { %4190 = vsyncadd (%p7455_p5), [#allocation10], 4294967040  ;;  %p7456_p1 = pmov %p7455_p5 }
 0x122   : > { %4192 = dma.done.wait (%p7456_p1), [#allocation5], 32   ;;  %p7457_p3 = pmov %p7456_p1 }
 0x123   : > { %p7458_p6 = pmov %p7456_p1 }
 0x124   : > { %4194 = vsyncadd (%p7457_p3), [#allocation5], 4294967264 }
 0x125   : > { %4196 = dma.done.wait (%p7458_p6), [#allocation13], 16   ;;  %p7459_p10 = pmov %p7456_p1 }
 0x126   : > { %p7460_p0 = pmov %p7456_p1 }
 0x127   : > { %4198 = vsyncadd (%p7459_p10), [#allocation13], 4294967280 }
 0x128   : > { %4200 = dma.done.wait (%p7460_p0), [#allocation10], 1024   ;;  %p7461_p2 = pmov %p7460_p0 }
 0x129   : > { %p7462_p7 = pmov %p7460_p0 }
 0x12a   : > { %4202 = vsyncadd (%p7461_p2), [#allocation10], 4294966272 }
 0x12b   : > { %4204 = dma.done.wait (%p7462_p7), [#allocation16], 1536   ;;  %p7463_p9 = pmov %p7460_p0 }
 0x12d   : > { %4206 = vsyncadd (%p7463_p9), [#allocation16], 4294965760 }
 0x12e   : > { %428 = sfence }
 0x12f   : > { %v460_v0 = vld [vmem:[%s4653_s17] sm:$0xff]  ;;  %v461_v1 = vld [vmem:[%s4653_s17 + $0x8] sm:$0xff]  ;;  %v462_v2 = vld [vmem:[%s4653_s17 + $0x10] sm:$0xff]  ;;  %v7400_v8 = vmov 0   ;;  %vm894_vm0 = vcmask 523264   ;;  %vm541_vm1 = vcmask 7168  }
 0x130   : > { %v3496_v3 = vcombine.high %v460_v0, %v461_v1  ;;  %v3495_v4 = vcombine.low %v460_v0, %v461_v1  ;;  %v4686_v5 = vunpack.c.l.bf16 %v462_v2  ;;  %v4688_v6 = vunpack.c.h.bf16 %v462_v2  ;;  %v463_v7 = vld [vmem:[%s4653_s17 + $0x18] sm:$0xff]  ;;  %1154 = vmatprep.mubr.bf16.mxu1 %v7400_v8  ;;  %3837 = vset.pattern.permute.xlu1 %v7400_v8  ;;  %v464_v12 = vld [vmem:[%s4653_s17 + $0x20] sm:$0xff]  ;;  %v465_v13 = vld [vmem:[%s4653_s17 + $0x28] sm:$0xff]  ;;  %s608_s2 = sld [smem:[#allocation12]]  ;;  %s3476_s16 = sld [smem:[#allocation12 + $0x1]] }
 0x131   : > { %v4693_v9 = vunpack.c.l.bf16 %v460_v0  ;;  %v4695_v10 = vunpack.c.h.bf16 %v460_v0  ;;  %v3498_v11 = vcombine.high %v462_v2, %v463_v7  ;;  %3836 = vset.pattern.permute.xlu0 %v7400_v8  ;;  %v4702_v15 = vunpack.c.l.bf16 %v461_v1  ;;  %v466_v24 = vld [vmem:[%s4653_s17 + $0x30] sm:$0xff]  ;;  %v467_v25 = vld [vmem:[%s4653_s17 + $0x38] sm:$0xff]  ;;  %v3846_v37 = vld [vmem:[#allocation8] sm:$0xff]   ;;  %s3477_s20 = sld [smem:[#allocation12 + $0x2]]  ;;  %s4241_s22 = smov 51  }
 0x132   : > { %1122 = vmatprep.subr.bf16.mxu1 %v3496_v3  ;;  %v490_v14 = vadd.f32 %v4688_v6, %v4686_v5  ;;  %v4704_v16 = vunpack.c.h.bf16 %v461_v1  ;;  %v3497_v18 = vcombine.low %v462_v2, %v463_v7  ;;  %v3500_v20 = vcombine.high %v464_v12, %v465_v13  ;;  %v727_v50 = vld [vmem:[#allocation14 + $0x8] sm:$0xff]  ;;  %v782_v51 = vld [vmem:[#allocation15] sm:$0xff]  ;;  %v728_v55 = vld [vmem:[#allocation14 + $0x10] sm:$0xff]  ;;  %s4242_s28 = smov 50   ;;  %s4243_s26 = smov 49  }
 0x133   : > { %1123 = vmatpush1.bf16.msra.mxu1 %v3495_v4  ;;  %v484_v17 = vadd.f32 %v4695_v10, %v4693_v9  ;;  %v517_v19 = vmax.f32 %v4693_v9, %v4695_v10  ;;  %v4710_v21 = vunpack.c.l.bf16 %v463_v7  ;;  %v4712_v22 = vunpack.c.h.bf16 %v463_v7  ;;  %v726_v52 = vld [vmem:[#allocation14] sm:$0xff]  ;;  %v783_v53 = vld [vmem:[#allocation15 + $0x8] sm:$0xff]  ;;  %v729_v57 = vld [vmem:[#allocation14 + $0x18] sm:$0xff]  ;;  %s4244_s23 = smov 48   ;;  %s4245_s1 = smov 47  }
 0x134   : > { %491 = vadd.xlane.f32.xlu1 %v490_v14  ;;  %1124 = vmatprep.subr.bf16.mxu1 %v3498_v11  ;;  %v487_v23 = vadd.f32 %v4704_v16, %v4702_v15  ;;  %v3499_v26 = vcombine.low %v464_v12, %v465_v13  ;;  %v3502_v28 = vcombine.high %v466_v24, %v467_v25  ;;  %v4720_v29 = vunpack.c.l.bf16 %v464_v12  ;;  %v731_v54 = vld [vmem:[#allocation14 + $0x28] sm:$0xff]  ;;  %v733_v58 = vld [vmem:[#allocation14 + $0x38] sm:$0xff]  ;;  %v784_v59 = vld [vmem:[#allocation15 + $0x10] sm:$0xff]  ;;  %s4246_s14 = smov 46   ;;  %s4247_s25 = smov 45  }
 0x135   : > { %485 = vadd.xlane.f32.xlu0 %v484_v17  ;;  %v493_v27 = vadd.f32 %v4712_v22, %v4710_v21  ;;  %v4722_v30 = vunpack.c.h.bf16 %v464_v12  ;;  %v520_v31 = vmax.f32 %v4702_v15, %v4704_v16  ;;  %v3501_v32 = vcombine.low %v466_v24, %v467_v25  ;;  %v787_v56 = vld [vmem:[#allocation15 + $0x28] sm:$0xff]  ;;  %v789_v60 = vld [vmem:[#allocation15 + $0x38] sm:$0xff]  ;;  %v730_v63 = vld [vmem:[#allocation14 + $0x20] sm:$0xff]  ;;  %s4248_s29 = smov 35   ;;  %s4249_s17 = smov 34  }
 0x136   : > { %v4728_v34 = vunpack.c.l.bf16 %v465_v13  ;;  %v4730_v35 = vunpack.c.h.bf16 %v465_v13  ;;  %v523_v36 = vmax.f32 %v4686_v5, %v4688_v6  ;;  %v4736_v39 = vunpack.c.l.bf16 %v466_v24  ;;  %v785_v61 = vld [vmem:[#allocation15 + $0x18] sm:$0xff]  ;;  %v786_v0 = vld [vmem:[#allocation15 + $0x20] sm:$0xff]  ;;  %v732_v1 = vld [vmem:[#allocation14 + $0x30] sm:$0xff]  ;;  %s4264_s19 = smov 1   ;;  %s5126_s0 = sld [smem:[#allocation11 + $0x86]] }
 0x137   : > { %1125 = vmatpush1.bf16.msra.mxu1 %v3497_v18  ;;  %7464 = vst [vmem:[#allocation37_spill] sm:$0xff] %v4722_v30  ;;  %v496_v33 = vadd.f32 %v4722_v30, %v4720_v29  ;;  %v4738_v40 = vunpack.c.h.bf16 %v466_v24  ;;  %v526_v41 = vmax.f32 %v4710_v21, %v4712_v22  ;;  %v4745_v43 = vunpack.c.l.bf16 %v467_v25  ;;  %v1063_v62 = vld [vmem:[#allocation9 + $0x8] sm:$0xff]  ;;  %v788_v2 = vld [vmem:[#allocation15 + $0x30] sm:$0xff]  ;;  %s5147_s3 = sld [smem:[#allocation11 + $0x7]]  ;;  %s7365_s5 = smov 127  }
 0x138   : > { %518 = vmax.xlane.f32.xlu1 %v517_v19  ;;  %1126 = vmatprep.subr.bf16.mxu1 %v3500_v20  ;;  %7465 = vst [vmem:[#allocation38_spill] sm:$0xff] %v4728_v34  ;;  %7466 = vst [vmem:[#allocation39_spill] sm:$0xff] %v4730_v35  ;;  %v499_v38 = vadd.f32 %v4730_v35, %v4728_v34  ;;  %v4747_v44 = vunpack.c.h.bf16 %v467_v25  ;;  %v529_v45 = vmax.f32 %v4720_v29, %v4722_v30  ;;  %v1062_v3 = vld [vmem:[#allocation9] sm:$0xff]  ;;  %v3847_v19 = vld [vmem:[#allocation17] sm:$0xff]   ;;  %vm558_vm2 = vcmask 1040384   ;;  %s5149_s4 = sld [smem:[#allocation11 + $0x87]] }
 0x139   : > { %488 = vadd.xlane.f32.xlu0 %v487_v23  ;;  %7467 = vst [vmem:[#allocation40_spill] sm:$0xff] %v4736_v39  ;;  %7468 = vst [vmem:[#allocation41_spill] sm:$0xff] %v4738_v40  ;;  %v502_v42 = vadd.f32 %v4738_v40, %v4736_v39  ;;  %v532_v47 = vmax.f32 %v4728_v34, %v4730_v35  ;;  %v535_v49 = vmax.f32 %v4736_v39, %v4738_v40  ;;  %vm583_vm3 = vcmask 1046528   ;;  %s7483_s6 = smov 127   ;;  %s5189_s7 = sld [smem:[#allocation11 + $0x88]] }
 0x13a   : > { %7469 = vst [vmem:[#allocation42_spill] sm:$0xff] %v4745_v43  ;;  %7470 = vst [vmem:[#allocation43_spill] sm:$0xff] %v4747_v44  ;;  %v505_v46 = vadd.f32 %v4747_v44, %v4745_v43  ;;  %v538_v48 = vmax.f32 %v4745_v43, %v4747_v44  ;;  %3646 = vmatprep.mubr.msk.bf16.mxu0 %vm894_vm0, %v3847_v19  ;;  %vm654_vm4 = vcmask 15360   ;;  %s5210_s8 = sld [smem:[#allocation11 + $0x9]]  ;;  %s5220_s11 = sld [smem:[#allocation11 + $0xa]] }
 0x13b   : > { %1127 = vmatpush1.bf16.msra.mxu1 %v3499_v26  ;;  %s5212_s18 = sld [smem:[#allocation11 + $0x89]]  ;;  %s5222_s10 = sld [smem:[#allocation11 + $0x8a]] }
 0x13c   : > { %494 = vadd.xlane.f32.xlu1 %v493_v27  ;;  %1128 = vmatprep.subr.bf16.mxu1 %v3502_v28  ;;  %s4266_s27 = smov 126   ;;  %s5234_s12 = sld [smem:[#allocation11 + $0xb]] }
 0x13d   : > { %521 = vmax.xlane.f32.xlu0 %v520_v31  ;;  %s5236_s24 = sld [smem:[#allocation11 + $0x8b]]  ;;  %s5270_s30 = sld [smem:[#allocation11 + $0x8c]] }
 0x13e   : > { %7479 = sst [smem:[#allocation44_spill]] %s5149_s4  ;;  %s5272_s9 = sld [smem:[#allocation11 + $0xd]] }
 0x13f   : > { %1129 = vmatpush1.bf16.msra.mxu1 %v3501_v32  ;;  %v4762_v32 = vstv %s608_s2  ;;  %s4250_s2 = smov 33   ;;  %7486 = sst [smem:[#allocation46_spill]] %s5189_s7 }
 0x140   : > { %497 = vadd.xlane.f32.xlu1 %v496_v33  ;;  %7489 = sst [smem:[#allocation47_spill]] %s5210_s8  ;;  %s4267_s15 = smov 125  }
 0x141   : > { %524 = vmax.xlane.f32.xlu0 %v523_v36  ;;  %7490 = sst [smem:[#allocation48_spill]] %s5212_s18  ;;  %s5289_s21 = sld [smem:[#allocation11 + $0x8d]] }
 0x142   : > { %3503 = vmatmul.mubr.msk.bf16.vlgmr.msra.gmra.mrb[0].mxu1 %vm894_vm0, %v3846_v37  ;;  %s5310_s13 = sld [smem:[#allocation11 + $0xe]]  ;;  %s5333_s7 = sld [smem:[#allocation11 + $0x8f]] }
 0x143   : > { %7491 = sst [smem:[#allocation49_spill]] %s5236_s24  ;;  %s5378_s18 = sld [smem:[#allocation11 + $0x90]] }
 0x144   : > { %500 = vadd.xlane.f32.xlu1 %v499_v38  ;;  %7495 = sst [smem:[#allocation51_spill]] %s5270_s30  ;;  %s4268_s4 = smov 115  }
 0x145   : > { %527 = vmax.xlane.f32.xlu0 %v526_v41  ;;  %s5380_s8 = sld [smem:[#allocation11 + $0x11]]  ;;  %s4269_s30 = smov 114  }
 0x146   : > { %s5411_s24 = sld [smem:[#allocation11 + $0x91]] }
 0x148   : > { %503 = vadd.xlane.f32.xlu1 %v502_v42 }
 0x149   : > { %530 = vmax.xlane.f32.xlu0 %v529_v45  ;;  %v4767_v45 = vstv %s3476_s16  ;;  %s4251_s16 = smov 32  }
 0x14b   : > { %7508 = sst [smem:[#allocation52_spill]] %s5380_s8  ;;  %s4270_s8 = smov 113  }
 0x14c   : > { %506 = vadd.xlane.f32.xlu1 %v505_v46 }
 0x14d   : > { %533 = vmax.xlane.f32.xlu0 %v532_v47  ;;  %v4769_v47 = vstv %s3477_s20  ;;  %s4252_s20 = smov 31  }
 0x150   : > { %539 = vmax.xlane.f32.xlu1 %v538_v48 }
 0x151   : > { %536 = vmax.xlane.f32.xlu0 %v535_v49 }
 0x161   : > { %741 = vperm.xlu1 %3837, %v727_v50  }
 0x165   : > { %792 = vperm.xlu1 %3837, %v782_v51  }
 0x167   : > { %736 = vperm.xlu0 %3836, %v726_v52  }
 0x169   : > { %797 = vperm.xlu1 %3837, %v783_v53  }
 0x16b   : > { %761 = vperm.xlu0 %3836, %v731_v54  }
 0x16d   : > { %746 = vperm.xlu1 %3837, %v728_v55  }
 0x16f   : > { %817 = vperm.xlu0 %3836, %v787_v56  }
 0x171   : > { %751 = vperm.xlu1 %3837, %v729_v57  }
 0x173   : > { %771 = vperm.xlu0 %3836, %v733_v58  }
 0x175   : > { %802 = vperm.xlu1 %3837, %v784_v59  }
 0x177   : > { %827 = vperm.xlu0 %3836, %v789_v60  }
 0x179   : > { %807 = vperm.xlu1 %3837, %v785_v61  }
 0x17b   : > { %1071 = vperm.xlu0 %3836, %v1063_v62  }
 0x17d   : > { %756 = vperm.xlu1 %3837, %v730_v63  }
 0x181   : > { %812 = vperm.xlu1 %3837, %v786_v0  }
 0x185   : > { %766 = vperm.xlu1 %3837, %v732_v1  }
 0x189   : > { %822 = vperm.xlu1 %3837, %v788_v2  }
 0x18d   : > { %1066 = vperm.xlu1 %3837, %v1062_v3  }
 0x1c1   : > { %v492_v4 = vpop.xlane.xlu1 %491 }
 0x1c2   : > { %v486_v7 = vpop.xlane.xlu0 %485  ;;  %v511_v26 = vmul.f32 0.00390625, %v492_v4 }
 0x1c3   : > { %v509_v12 = vmul.f32 0.00390625, %v486_v7 }
 0x1c5   : > { %v519_v11 = vpop.xlane.xlu1 %518 }
 0x1c6   : > { %v489_v13 = vpop.xlane.xlu0 %488  ;;  %v542_v14 = vsel %vm541_vm1, %v509_v12, %v519_v11 }
 0x1c7   : > { %v510_v17 = vmul.f32 0.00390625, %v489_v13  ;;  %v559_v23 = vrot.slane %v542_v14, 7  ;;  %v584_v37 = vrot.slane %v542_v14, 1  ;;  %v620_v56 = vmul.f32 %v4767_v45, %v542_v14 }
 0x1c9   : > { %v495_v18 = vpop.xlane.xlu1 %494  ;;  %v582_v33 = vsel %vm558_vm2, 0.0, %v559_v23 }
 0x1ca   : > { %v522_v20 = vpop.xlane.xlu0 %521  ;;  %v512_v46 = vmul.f32 0.00390625, %v495_v18  ;;  %v610_v49 = vmul.f32 %v4762_v32, %v582_v33 }
 0x1cb   : > { %v543_v24 = vsel %vm541_vm1, %v510_v17, %v522_v20 }
 0x1cc   : > { %v560_v25 = vrot.slane %v543_v24, 7  ;;  %v585_v28 = vrot.slane %v543_v24, 1  ;;  %v621_v57 = vmul.f32 %v4767_v45, %v543_v24  ;;  %v628_v1 = vadd.f32 %v620_v56, %v610_v49 }
 0x1cd   : > { %v498_v27 = vpop.xlane.xlu1 %497 }
 0x1ce   : > { %v525_v31 = vpop.xlane.xlu0 %524  ;;  %v561_v38 = vsel %vm558_vm2, %v559_v23, %v560_v25  ;;  %v586_v50 = vsel %vm583_vm3, %v584_v37, %v585_v28  ;;  %v513_v61 = vmul.f32 0.00390625, %v498_v27 }
 0x1cf   : > { %v544_v36 = vsel %vm541_vm1, %v511_v26, %v525_v31  ;;  %v611_v54 = vmul.f32 %v4762_v32, %v561_v38  ;;  %v638_v60 = vmul.f32 %v4769_v47, %v586_v50 }
 0x1d0   : > { %v562_v41 = vrot.slane %v544_v36, 7  ;;  %v587_v42 = vrot.slane %v544_v36, 1  ;;  %v622_v11 = vmul.f32 %v4767_v45, %v544_v36 }
 0x1d1   : > { %v501_v48 = vpop.xlane.xlu1 %500  ;;  %v629_v7 = vadd.f32 %v621_v57, %v611_v54  ;;  %v4788_v19 = vadd.f32 %v638_v60, %v628_v1 }
 0x1d2   : > { %v563_v51 = vsel %vm558_vm2, %v560_v25, %v562_v41  ;;  %v588_v52 = vsel %vm583_vm3, %v585_v28, %v587_v42  ;;  %v528_v53 = vpop.xlane.xlu0 %527  ;;  %v514_v23 = vmul.f32 0.00390625, %v501_v48 }
 0x1d3   : > { %v545_v55 = vsel %vm541_vm1, %v512_v46, %v528_v53  ;;  %v612_v62 = vmul.f32 %v4762_v32, %v563_v51  ;;  %v639_v63 = vmul.f32 %v4769_v47, %v588_v52  ;;  %v655_v52 = vsel %vm654_vm4, %v4788_v19, 0.0 }
 0x1d4   : > { %v564_v58 = vrot.slane %v545_v55, 7  ;;  %v589_v59 = vrot.slane %v545_v55, 1  ;;  %v623_v26 = vmul.f32 %v4767_v45, %v545_v55 }
 0x1d5   : > { %v504_v0 = vpop.xlane.xlu1 %503  ;;  %v630_v20 = vadd.f32 %v622_v11, %v612_v62  ;;  %v4790_v25 = vadd.f32 %v639_v63, %v629_v7 }
 0x1d6   : > { %v565_v2 = vsel %vm558_vm2, %v562_v41, %v564_v58  ;;  %v590_v3 = vsel %vm583_vm3, %v587_v42, %v589_v59  ;;  %v531_v4 = vpop.xlane.xlu0 %530  ;;  %v515_v49 = vmul.f32 0.00390625, %v504_v0 }
 0x1d7   : > { %v640_v12 = vmul.f32 %v4769_v47, %v590_v3  ;;  %v546_v13 = vsel %vm541_vm1, %v513_v61, %v531_v4  ;;  %v613_v14 = vmul.f32 %v4762_v32, %v565_v2  ;;  %v656_v53 = vsel %vm654_vm4, %v4790_v25, 0.0 }
 0x1d8   : > { %v566_v17 = vrot.slane %v546_v13, 7  ;;  %v591_v18 = vrot.slane %v546_v13, 1  ;;  %v624_v50 = vmul.f32 %v4767_v45, %v546_v13  ;;  %v657_v0 = vadd.f32 %v656_v53, %v655_v52 }
 0x1d9   : > { %v507_v24 = vpop.xlane.xlu1 %506  ;;  %v4795_v36 = vadd.f32 %v640_v12, %v630_v20  ;;  %v631_v42 = vadd.f32 %v623_v26, %v613_v14 }
 0x1da   : > { %v567_v27 = vsel %vm558_vm2, %v564_v58, %v566_v17  ;;  %v592_v28 = vsel %vm583_vm3, %v589_v59, %v591_v18  ;;  %v516_v31 = vmul.f32 0.00390625, %v507_v24  ;;  %v534_v33 = vpop.xlane.xlu0 %533 }
 0x1db   : > { %v614_v37 = vmul.f32 %v4762_v32, %v567_v27  ;;  %v641_v38 = vmul.f32 %v4769_v47, %v592_v28  ;;  %v547_v41 = vsel %vm541_vm1, %v514_v23, %v534_v33  ;;  %v658_v59 = vsel %vm654_vm4, %v4795_v36, 0.0 }
 0x1dc   : > { %v568_v46 = vrot.slane %v547_v41, 7  ;;  %v593_v48 = vrot.slane %v547_v41, 1  ;;  %v625_v13 = vmul.f32 %v4767_v45, %v547_v41  ;;  %v659_v14 = vadd.f32 %v658_v59, %v657_v0 }
 0x1dd   : > { %v540_v51 = vpop.xlane.xlu1 %539  ;;  %v4805_v54 = vadd.f32 %v641_v38, %v631_v42  ;;  %v632_v60 = vadd.f32 %v624_v50, %v614_v37 }
 0x1de   : > { %v569_v55 = vsel %vm558_vm2, %v566_v17, %v568_v46  ;;  %v594_v56 = vsel %vm583_vm3, %v591_v18, %v593_v48  ;;  %v549_v57 = vsel %vm541_vm1, %v516_v31, %v540_v51  ;;  %v537_v58 = vpop.xlane.xlu0 %536 }
 0x1df   : > { %v642_v61 = vmul.f32 %v4769_v47, %v594_v56  ;;  %v572_v62 = vrot.slane %v549_v57, 7  ;;  %v597_v63 = vrot.slane %v549_v57, 1  ;;  %v548_v1 = vsel %vm541_vm1, %v515_v49, %v537_v58 }
 0x1e0   : > { %v615_v2 = vmul.f32 %v4762_v32, %v569_v55  ;;  %v570_v4 = vrot.slane %v548_v1, 7  ;;  %v595_v7 = vrot.slane %v548_v1, 1  ;;  %v660_v12 = vsel %vm654_vm4, %v4805_v54, 0.0 }
 0x1e1   : > { %v650_v3 = vadd.f32 %v642_v61, %v632_v60  ;;  %v4815_v11 = vpop.permute.xlu1 %741  ;;  %v607_v17 = vsel %vm583_vm3, %v597_v63, 0.0  ;;  %v627_v18 = vmul.f32 %v4767_v45, %v549_v57  ;;  %v626_v28 = vmul.f32 %v4767_v45, %v548_v1 }
 0x1e2   : > { %v571_v20 = vsel %vm558_vm2, %v568_v46, %v570_v4  ;;  %v573_v23 = vsel %vm558_vm2, %v570_v4, %v572_v62  ;;  %v596_v24 = vsel %vm583_vm3, %v593_v48, %v595_v7  ;;  %v598_v26 = vsel %vm583_vm3, %v595_v7, %v597_v63 }
 0x1e3   : > { %v616_v27 = vmul.f32 %v4762_v32, %v571_v20  ;;  %v633_v31 = vadd.f32 %v625_v13, %v615_v2  ;;  %v662_v33 = vsel %vm654_vm4, %v650_v3, 0.0  ;;  %v617_v37 = vmul.f32 %v4762_v32, %v573_v23 }
 0x1e4   : > { %v643_v38 = vmul.f32 %v4769_v47, %v596_v24  ;;  %v661_v42 = vadd.f32 %v660_v12, %v659_v14  ;;  %v644_v49 = vmul.f32 %v4769_v47, %v598_v26  ;;  %v645_v48 = vmul.f32 %v4769_v47, %v607_v17 }
 0x1e5   : > { %v4831_v41 = vpop.permute.xlu1 %792  ;;  %v634_v46 = vadd.f32 %v626_v28, %v616_v27  ;;  %v635_v50 = vadd.f32 %v627_v18, %v617_v37 }
 0x1e6   : > { %v651_v51 = vadd.f32 %v643_v38, %v633_v31  ;;  %v663_v52 = vadd.f32 %v662_v33, %v661_v42  ;;  %v4846_v4 = vpop.permute.xlu0 %736 }
 0x1e7   : > { %v652_v53 = vadd.f32 %v644_v49, %v634_v46  ;;  %v653_v45 = vadd.f32 %v645_v48, %v635_v50 }
 0x1e8   : > { %v664_v55 = vsel %vm654_vm4, %v651_v51, 0.0 }
 0x1e9   : > { %v4836_v56 = vpop.permute.xlu1 %797  ;;  %v665_v32 = vadd.f32 %v664_v55, %v663_v52  ;;  %v666_v57 = vsel %vm654_vm4, %v652_v53, 0.0  ;;  %v668_v59 = vsel %vm654_vm4, %v653_v45, 0.0 }
 0x1ea   : > { %v4850_v17 = vpop.permute.xlu0 %761 }
 0x1eb   : > { %v667_v58 = vadd.f32 %v666_v57, %v665_v32 }
 0x1ed   : > { %v4840_v60 = vpop.permute.xlu1 %746  ;;  %v669_v61 = vadd.f32 %v668_v59, %v667_v58 }
 0x1ee   : > { %v4874_v33 = vpop.permute.xlu0 %817 }
 0x1ef   : > { %v670_v62 = vrot.slane %v669_v61, 4 }
 0x1f1   : > { %v4842_v47 = vpop.permute.xlu1 %751  ;;  %v671_v63 = vadd.f32 %v670_v62, %v669_v61 }
 0x1f2   : > { %v4894_v32 = vpop.permute.xlu0 %771 }
 0x1f3   : > { %v672_v0 = vrot.slane %v671_v63, 2 }
 0x1f5   : > { %v4844_v1 = vpop.permute.xlu1 %802  ;;  %v673_v2 = vadd.f32 %v672_v0, %v671_v63 }
 0x1f7   : > { %v674_v7 = vrot.slane %v673_v2, 1 }
 0x1f9   : > { %v4848_v12 = vpop.permute.xlu1 %807  ;;  %v675_v13 = vadd.f32 %v674_v7, %v673_v2  ;;  %v4905_v2 = vpop.permute.xlu0 %827 }
 0x1fb   : > { %v677_v14 = vmul.f32 0.015625, %v675_v13 }
 0x1fd   : > { %v4852_v18 = vpop.permute.xlu1 %756  ;;  %v4855_v20 = vsub.f32 %v4795_v36, %v677_v14  ;;  %v4858_v23 = vsub.f32 %v4805_v54, %v677_v14  ;;  %v4861_v24 = vsub.f32 %v4788_v19, %v677_v14  ;;  %v4864_v26 = vsub.f32 %v4790_v25, %v677_v14 }
 0x1fe   : > { %v4866_v27 = vsub.f32 %v650_v3, %v677_v14  ;;  %v4876_v54 = vsub.f32 %v651_v51, %v677_v14  ;;  %v4884_v42 = vsub.f32 %v652_v53, %v677_v14  ;;  %v4889_v50 = vsub.f32 %v653_v45, %v677_v14 }
 0x1ff   : > { %v686_v28 = vmul.f32 %v4861_v24, %v4861_v24  ;;  %v687_v31 = vmul.f32 %v4864_v26, %v4864_v26  ;;  %v688_v36 = vmul.f32 %v4855_v20, %v4855_v20  ;;  %v689_v19 = vmul.f32 %v4858_v23, %v4858_v23 }
 0x200   : > { %v690_v46 = vmul.f32 %v4866_v27, %v4866_v27  ;;  %v691_v51 = vmul.f32 %v4876_v54, %v4876_v54  ;;  %v692_v53 = vmul.f32 %v4884_v42, %v4884_v42  ;;  %v693_v45 = vmul.f32 %v4889_v50, %v4889_v50 }
 0x201   : > { %v694_v25 = vsel %vm654_vm4, %v686_v28, 0.0  ;;  %v695_v3 = vsel %vm654_vm4, %v687_v31, 0.0  ;;  %v4882_v37 = vpop.permute.xlu1 %812  ;;  %v697_v49 = vsel %vm654_vm4, %v688_v36, 0.0  ;;  %v699_v52 = vsel %vm654_vm4, %v689_v19, 0.0  ;;  %v1072_v36 = vpop.permute.xlu0 %1071 }
 0x202   : > { %v696_v38 = vadd.f32 %v695_v3, %v694_v25  ;;  %v701_v57 = vsel %vm654_vm4, %v690_v46, 0.0  ;;  %v703_v61 = vsel %vm654_vm4, %v691_v51, 0.0  ;;  %v705_v63 = vsel %vm654_vm4, %v692_v53, 0.0 }
 0x203   : > { %v707_v7 = vsel %vm654_vm4, %v693_v45, 0.0 }
 0x204   : > { %v698_v48 = vadd.f32 %v697_v49, %v696_v38 }
 0x205   : > { %v4899_v58 = vpop.permute.xlu1 %766 }
 0x206   : > { %v700_v55 = vadd.f32 %v699_v52, %v698_v48 }
 0x208   : > { %v702_v59 = vadd.f32 %v701_v57, %v700_v55 }
 0x209   : > { %v4908_v13 = vpop.permute.xlu1 %822 }
 0x20a   : > { %v704_v62 = vadd.f32 %v703_v61, %v702_v59 }
 0x20c   : > { %v706_v0 = vadd.f32 %v705_v63, %v704_v62 }
 0x20d   : > { %v1067_v19 = vpop.permute.xlu1 %1066 }
 0x20e   : > { %v708_v14 = vadd.f32 %v707_v7, %v706_v0 }
 0x210   : > { %v709_v28 = vrot.slane %v708_v14, 4 }
 0x212   : > { %v710_v31 = vadd.f32 %v709_v28, %v708_v14 }
 0x214   : > { %v711_v3 = vrot.slane %v710_v31, 2 }
 0x215   : > { %v1156_v25 = vpop.f32.mrb[0].mxu1 }
 0x216   : > { %v4910_v38 = vadd.f32 %v1156_v25, %v1067_v19  ;;  %v1158_v46 = vpop.f32.mrb[1].mxu1  ;;  %v712_v51 = vadd.f32 %v711_v3, %v710_v31 }
 0x217   : > { %v4912_v49 = vadd.f32 %v1158_v46, %v1067_v19  ;;  %v1160_v48 = vpop.f32.mrb[2].mxu1 }
 0x218   : > { %v3504_v52 = vmul.f32 -1.442695, %v4910_v38  ;;  %v4915_v55 = vadd.f32 %v1160_v48, %v1072_v36  ;;  %v1162_v53 = vpop.f32.mrb[3].mxu1  ;;  %v713_v45 = vrot.slane %v712_v51, 1 }
 0x219   : > { %v3505_v57 = vmul.f32 -1.442695, %v4912_v49  ;;  %v4918_v59 = vadd.f32 %v1162_v53, %v1072_v36 }
 0x21a   : > { %3851 = vpow2.f32 %v3504_v52  ;;  %v3506_v61 = vmul.f32 -1.442695, %v4915_v55  ;;  %v714_v63 = vadd.f32 %v713_v45, %v712_v51 }
 0x21b   : > { %3853 = vpow2.f32 %v3505_v57  ;;  %v3507_v62 = vmul.f32 -1.442695, %v4918_v59 }
 0x21c   : > { %3855 = vpow2.f32 %v3506_v61  ;;  %v715_v0 = vmul.f32 0.015625, %v714_v63 }
 0x21d   : > { %3857 = vpow2.f32 %v3507_v62 }
 0x21e   : > { %v716_v7 = vadd.f32 1e-05, %v715_v0 }
 0x220   : > { %3859 = vrsqrt.f32 %v716_v7 }
 0x224   : > { %v3852_v14 = vpop.eup %3851 }
 0x225   : > { %v3854_v28 = vpop.eup %3853  ;;  %v1177_v31 = vadd.f32 1.0, %v3852_v14 }
 0x226   : > { %v3856_v19 = vpop.eup %3855  ;;  %v1178_v25 = vadd.f32 1.0, %v3854_v28 }
 0x227   : > { %v3858_v36 = vpop.eup %3857  ;;  %3861 = vrcp.f32 %v1177_v31  ;;  %v1179_v3 = vadd.f32 1.0, %v3856_v19 }
 0x228   : > { %3863 = vrcp.f32 %v1178_v25  ;;  %v1180_v46 = vadd.f32 1.0, %v3858_v36 }
 0x229   : > { %3865 = vrcp.f32 %v1179_v3 }
 0x22a   : > { %3867 = vrcp.f32 %v1180_v46  ;;  %v3860_v48 = vpop.eup %3859 }
 0x22b   : > { %v719_v51 = vmul.f32 %v3860_v48, %v4864_v26  ;;  %v720_v52 = vmul.f32 %v3860_v48, %v4855_v20  ;;  %v721_v53 = vmul.f32 %v3860_v48, %v4858_v23  ;;  %v722_v57 = vmul.f32 %v3860_v48, %v4866_v27 }
 0x22c   : > { %v718_v45 = vmul.f32 %v3860_v48, %v4861_v24  ;;  %v723_v61 = vmul.f32 %v3860_v48, %v4876_v54  ;;  %v724_v62 = vmul.f32 %v3860_v48, %v4884_v42  ;;  %v725_v63 = vmul.f32 %v3860_v48, %v4889_v50 }
 0x22d   : > { %v775_v0 = vmul.f32 %v4815_v11, %v719_v51  ;;  %v776_v7 = vmul.f32 %v4840_v60, %v720_v52  ;;  %v777_v26 = vmul.f32 %v4842_v47, %v721_v53  ;;  %v778_v20 = vmul.f32 %v4852_v18, %v722_v57 }
 0x22e   : > { %v774_v23 = vmul.f32 %v4846_v4, %v718_v45  ;;  %v779_v27 = vmul.f32 %v4850_v17, %v723_v61  ;;  %v780_v24 = vmul.f32 %v4899_v58, %v724_v62  ;;  %v781_v54 = vmul.f32 %v4894_v32, %v725_v63 }
 0x22f   : > { %v831_v42 = vadd.f32 %v4836_v56, %v775_v0  ;;  %v832_v50 = vadd.f32 %v4844_v1, %v776_v7  ;;  %v833_v11 = vadd.f32 %v4848_v12, %v777_v26  ;;  %v834_v60 = vadd.f32 %v4882_v37, %v778_v20 }
 0x230   : > { %v835_v18 = vadd.f32 %v4874_v33, %v779_v27  ;;  %v830_v4 = vadd.f32 %v4831_v41, %v774_v23  ;;  %v836_v17 = vadd.f32 %v4908_v13, %v780_v24  ;;  %v837_v56 = vadd.f32 %v4905_v2, %v781_v54 }
 0x231   : > { %v3862_v14 = vpop.eup %3861  ;;  %v847_v31 = vmul.f32 0.3, %v831_v42  ;;  %vm840_vm5 = vcmp.ge.f32.partialorder %v832_v50, 0.0  ;;  %v848_v32 = vmul.f32 0.3, %v832_v50  ;;  %vm841_vm6 = vcmp.ge.f32.partialorder %v833_v11, 0.0 }
 0x232   : > { %v3864_v47 = vpop.eup %3863  ;;  %v849_v1 = vmul.f32 0.3, %v833_v11  ;;  %vm842_vm7 = vcmp.ge.f32.partialorder %v834_v60, 0.0  ;;  %v850_v12 = vmul.f32 0.3, %v834_v60  ;;  %v1189_v37 = vmul.f32 %v3862_v14, %v4910_v38 }
 0x233   : > { %v3866_v28 = vpop.eup %3865  ;;  %v851_v19 = vmul.f32 0.3, %v835_v18  ;;  %v1190_v33 = vmul.f32 %v3864_v47, %v4912_v49  ;;  %vm838_vm8 = vcmp.ge.f32.partialorder %v830_v4, 0.0  ;;  %vm839_vm9 = vcmp.ge.f32.partialorder %v831_v42, 0.0 }
 0x234   : > { %v3868_v58 = vpop.eup %3867  ;;  %v1191_v25 = vmul.f32 %v3866_v28, %v4915_v55  ;;  %v846_v13 = vmul.f32 0.3, %v830_v4  ;;  %v855_v46 = vsel %vm839_vm9, %v831_v42, %v847_v31  ;;  %v856_v2 = vsel %vm840_vm5, %v832_v50, %v848_v32 }
 0x235   : > { %v1192_v41 = vmul.f32 %v3868_v58, %v4918_v59  ;;  %v857_v53 = vsel %vm841_vm6, %v833_v11, %v849_v1  ;;  %vm843_vm10 = vcmp.ge.f32.partialorder %v835_v18, 0.0  ;;  %v852_v55 = vmul.f32 0.3, %v836_v17 }
 0x236   : > { %v1193_v36 = vadd.f32 %v1191_v25, %v1189_v37  ;;  %v1210_v3 = vmax.f32 %v1189_v37, %v1191_v25  ;;  %v854_v52 = vsel %vm838_vm8, %v830_v4, %v846_v13  ;;  %v853_v61 = vmul.f32 0.3, %v837_v56 }
 0x237   : > { %v1200_v48 = vadd.f32 %v1192_v41, %v1190_v33  ;;  %v1217_v51 = vmax.f32 %v1190_v33, %v1192_v41  ;;  %v870_v57 = vpack.c.bf16 %v855_v46, %v854_v52  ;;  %v871_v0 = vpack.c.bf16 %v857_v53, %v856_v2  ;;  %v5004_v46 = vld [vmem:[#allocation6] ss:$2 sm:$0x3]  ;;  %v5006_v2 = vld [vmem:[#allocation6 + $0x1] ss:$2 sm:$0x3] }
 0x238   : > { %v1194_v38 = vrot.slane %v1193_v36, 4  ;;  %v1211_v49 = vrot.slane %v1210_v3, 4  ;;  %v858_v20 = vsel %vm842_vm7, %v834_v60, %v850_v12  ;;  %v859_v23 = vsel %vm843_vm10, %v835_v18, %v851_v19 }
 0x239   : > { %v1201_v45 = vrot.slane %v1200_v48, 4  ;;  %v1218_v59 = vrot.slane %v1217_v51, 4  ;;  %3638 = vmatprep.subr.bf16.mxu0 %v870_v57  ;;  %vm844_vm11 = vcmp.ge.f32.partialorder %v836_v17, 0.0  ;;  %vm845_vm12 = vcmp.ge.f32.partialorder %v837_v56, 0.0 }
 0x23a   : > { %v1195_v62 = vadd.f32 %v1194_v38, %v1193_v36  ;;  %v1212_v63 = vmax.f32 %v1210_v3, %v1211_v49  ;;  %3639 = vmatpush3.bf16.msra.mxu0 %v870_v57  ;;  %v872_v11 = vpack.c.bf16 %v859_v23, %v858_v20  ;;  %v860_v4 = vsel %vm844_vm11, %v836_v17, %v852_v55  ;;  %v3848_v36 = vld [vmem:[#allocation17 + $0x8] sm:$0xff]   ;;  %v3850_v3 = vld [vmem:[#allocation17 + $0x18] sm:$0xff]  }
 0x23b   : > { %v1202_v7 = vadd.f32 %v1201_v45, %v1200_v48  ;;  %v1219_v26 = vmax.f32 %v1217_v51, %v1218_v59  ;;  %3640 = vmatprep.subr.bf16.mxu0 %v871_v0  ;;  %v861_v58 = vsel %vm845_vm12, %v837_v56, %v853_v61  ;;  %v3849_v56 = vld [vmem:[#allocation17 + $0x10] sm:$0xff]   ;;  %v1245_v48 = vlaneseq }
 0x23c   : > { %v1196_v27 = vrot.slane %v1195_v62, 2  ;;  %v1213_v24 = vrot.slane %v1212_v63, 2  ;;  %v873_v12 = vpack.c.bf16 %v861_v58, %v860_v4  ;;  %vm1229_vm13 = vcmp.ge.s32.totalorder %v5004_v46, 3 }
 0x23d   : > { %v1203_v54 = vrot.slane %v1202_v7, 2  ;;  %v1220_v14 = vrot.slane %v1219_v26, 2  ;;  %vm1235_vm14 = vcmp.ge.s32.totalorder %v5006_v2, 3  ;;  %v1253_v51 = vshrl.u32 %v1245_v48, 7 }
 0x23e   : > { %v1197_v42 = vadd.f32 %v1196_v27, %v1195_v62  ;;  %v1214_v50 = vmax.f32 %v1212_v63, %v1213_v24  ;;  %3641 = vmatpush3.bf16.msra.mxu0 %v871_v0  ;;  %vm1236_vm15 = vcmp.ge.s32.totalorder %v5006_v2, 2  ;;  %vm7409_vm1 = vcmp.ge.s32.totalorder %v5006_v2, 1 }
 0x23f   : > { %v1204_v47 = vadd.f32 %v1203_v54, %v1202_v7  ;;  %v1221_v28 = vmax.f32 %v1219_v26, %v1220_v14  ;;  %3642 = vmatprep.subr.bf16.mxu0 %v872_v11  ;;  %v5032_v52 = vsub.s32 0, %v1253_v51  ;;  %v5034_v53 = vsub.s32 1, %v1253_v51  ;;  %vm5048_vm3 = vmand %vm1229_vm13, %vm7409_vm1 }
 0x240   : > { %v1198_v31 = vrot.slane %v1197_v42, 1  ;;  %v1215_v32 = vrot.slane %v1214_v50, 1  ;;  %vm7396_vm4 = vcmp.lt.s32.totalorder %v5006_v2, 15  ;;  %vm7397_vm5 = vcmp.lt.s32.totalorder %v5006_v2, 14 }
 0x241   : > { %v1205_v60 = vrot.slane %v1204_v47, 1  ;;  %v1222_v18 = vrot.slane %v1221_v28, 1  ;;  %v5064_v45 = vand.u32 127, %v1245_v48  ;;  %v5083_v7 = vsel %vm5048_vm3, 1, %v7400_v8  ;;  %vm5089_vm6 = vmand %vm1229_vm13, %vm7396_vm4 }
 0x242   : > { %v1199_v1 = vadd.f32 %v1198_v31, %v1197_v42  ;;  %3643 = vmatpush3.bf16.msra.mxu0 %v872_v11  ;;  %v1216_v33 = vmax.f32 %v1214_v50, %v1215_v32  ;;  %vm1240_vm7 = vcmp.lt.s32.totalorder %v5006_v2, 13  ;;  %v5102_v20 = vsel %vm1229_vm13, 1, %v7400_v8  ;;  %vm5108_vm8 = vmand %vm1229_vm13, %vm7397_vm5 }
 0x243   : > { %v1206_v19 = vadd.f32 %v1205_v60, %v1204_v47  ;;  %3644 = vmatprep.subr.bf16.mxu0 %v873_v12  ;;  %v1223_v41 = vmax.f32 %v1221_v28, %v1222_v18  ;;  %vm1230_vm9 = vcmp.ge.s32.totalorder %v5004_v46, 2  ;;  %v1333_v47 = vrot.slane %v5083_v7, %v5032_v52  ;;  %vm5143_vm10 = vmand %vm1229_vm13, %vm1240_vm7 }
 0x244   : > { %v1208_v37 = vmul.f32 0.0625, %v1199_v1  ;;  %v5137_v28 = vsel %vm5089_vm6, 1, %v7400_v8  ;;  %v1337_v31 = vrot.slane %v5083_v7, %v5034_v53  ;;  %v1371_v32 = vrot.slane %v5102_v20, %v5032_v52  ;;  %vm5171_vm11 = vmand %vm1230_vm9, %vm1235_vm14 }
 0x245   : > { %v1209_v25 = vmul.f32 0.0625, %v1206_v19  ;;  %v1375_v60 = vrot.slane %v5102_v20, %v5034_v53  ;;  %v5165_v18 = vsel %vm5108_vm8, 1, %v7400_v8  ;;  %vm5185_vm12 = vmand %vm1230_vm9, %vm1236_vm15  ;;  %v5268_v23 = vsel %vm1230_vm9, 1, %v7400_v8 }
 0x246   : > { %v4955_v13 = vsel %vm558_vm2, %v1208_v37, %v1216_v33  ;;  %3645 = vmatpush3.bf16.msra.mxu0 %v873_v12  ;;  %v5246_v1 = vsel %vm5185_vm12, 1, %v7400_v8  ;;  %vm5285_vm3 = vmand %vm1230_vm9, %vm7397_vm5  ;;  %vm1247_vm8 = vcmp.lt.s32.totalorder %v5064_v45, 51  ;;  %v7544_v12 = vrot.slane %v5165_v18, %v5032_v52 }
 0x247   : > { %v4958_v17 = vsel %vm558_vm2, %v1209_v25, %v1223_v41  ;;  %1241 = vrot.lane.b32.xlu1 %v4955_v13, %s4241_s22  ;;  %vm1289_vm2 = vmand %vm1229_vm13, %vm1236_vm15  ;;  %v5232_v25 = vsel %vm5171_vm11, 1, %v7400_v8  ;;  %v7547_v37 = vrot.slane %v5165_v18, %v5034_v53 }
 0x248   : > { %1243 = vrot.lane.b32.xlu0 %v4958_v17, %s4241_s22  ;;  %s4253_s22 = smov 30   ;;  %v5069_v62 = vsel %vm1289_vm2, 1, %v7400_v8  ;;  %vm1231_vm2 = vcmp.ge.s32.totalorder %v5004_v46, 1  ;;  %vm5306_vm6 = vmand %vm1230_vm9, %vm1240_vm7 }
 0x249   : > { %3647 = vmatmul.mubr.msk.bf16.vlgmr.msra.gmra.mrb[0].mxu0 %vm894_vm0, %v3848_v36  ;;  %v1294_v54 = vrot.slane %v5069_v62, %v5032_v52  ;;  %v1298_v14 = vrot.slane %v5069_v62, %v5034_v53  ;;  %vm5362_vm12 = vmand %vm1231_vm2, %vm1236_vm15  ;;  %v5376_v49 = vsel %vm5306_vm6, 1, %v7400_v8  ;;  %v5456_v26 = vsel %vm1231_vm2, 1, %v7400_v8 }
 0x24a   : > { %3650 = vmatprep.mubr.msk.bf16.mxu0 %vm894_vm0, %v3849_v56 }
 0x24b   : > { %1282 = vrot.lane.b32.xlu1 %v4955_v13, %s4242_s28  ;;  %vm5426_vm6 = vcmp.eq.s32.totalorder %v1294_v54, 1 }
 0x24c   : > { %1284 = vrot.lane.b32.xlu0 %v4958_v17, %s4242_s28  ;;  %s4254_s28 = smov 29  }
 0x24f   : > { %1321 = vrot.lane.b32.xlu1 %v4955_v13, %s4243_s26 }
 0x250   : > { %1323 = vrot.lane.b32.xlu0 %v4958_v17, %s4243_s26  ;;  %s4255_s26 = smov 19  }
 0x251   : > { %3651 = vmatmul.mubr.msk.bf16.gmra.mrb[4].mxu0 %vm894_vm0, %v3850_v3  ;;  %vm1250_vm0 = vmand %vm1229_vm13, %vm1235_vm14  ;;  %v5200_v3 = vsel %vm5143_vm10, 1, %v7400_v8 }
 0x252   : > { %v5042_v38 = vsel %vm1250_vm0, 1, %v7400_v8  ;;  %vm5206_vm13 = vmand %vm1230_vm9, %vm7409_vm1  ;;  %v7557_v48 = vrot.slane %v5200_v3, %v5034_v53 }
 0x253   : > { %1360 = vrot.lane.b32.xlu1 %v4955_v13, %s4244_s23  ;;  %v1255_v63 = vrot.slane %v5042_v38, %v5032_v52  ;;  %v1259_v0 = vrot.slane %v5042_v38, %v5034_v53  ;;  %v5251_v4 = vsel %vm5206_vm13, 1, %v7400_v8  ;;  %vm5257_vm0 = vmand %vm1230_vm9, %vm7396_vm4  ;;  %v7531_v38 = vrot.slane %v5137_v28, %v5032_v52 }
 0x254   : > { %1362 = vrot.lane.b32.xlu0 %v4958_v17, %s4244_s23  ;;  %s4256_s23 = smov 18   ;;  %v5300_v33 = vsel %vm5257_vm0, 1, %v7400_v8  ;;  %vm5327_vm9 = vmand %vm1231_vm2, %vm1235_vm14  ;;  %vm1286_vm0 = vcmp.lt.s32.totalorder %v5064_v45, 50 }
 0x255   : > { %vm5338_vm10 = vcmp.eq.s32.totalorder %v1255_v63, 1  ;;  %vm5345_vm11 = vcmp.eq.s32.totalorder %v1259_v0, 1  ;;  %v5356_v63 = vsel %vm5285_vm3, 1, %v7400_v8  ;;  %v5389_v36 = vsel %vm5327_vm9, 1, %v7400_v8  ;;  %vm5395_vm13 = vmand %vm1231_vm2, %vm7409_vm1 }
 0x256   : > { %v5409_v0 = vsel %vm5362_vm12, 1, %v7400_v8  ;;  %vm5417_vm3 = vmand %vm1231_vm2, %vm7396_vm4  ;;  %vm5433_vm9 = vcmp.eq.s32.totalorder %v1298_v14, 1  ;;  %v5451_v14 = vsel %vm5395_vm13, 1, %v7400_v8  ;;  %vm1325_vm12 = vcmp.lt.s32.totalorder %v5064_v45, 49 }
 0x257   : > { %1398 = vrot.lane.b32.xlu1 %v4955_v13, %s4245_s1  ;;  %v5467_v41 = vsel %vm5417_vm3, 1, %v7400_v8  ;;  %vm5480_vm13 = vmand %vm1231_vm2, %vm7397_vm5  ;;  %vm5489_vm3 = vcmp.eq.s32.totalorder %v1333_v47, 1  ;;  %vm5496_vm4 = vcmp.eq.s32.totalorder %v1337_v31, 1 }
 0x258   : > { %1400 = vrot.lane.b32.xlu0 %v4958_v17, %s4245_s1  ;;  %s4257_s1 = smov 17   ;;  %vm5517_vm5 = vmand %vm1231_vm2, %vm1240_vm7  ;;  %v5531_v46 = vsel %vm5480_vm13, 1, %v7400_v8  ;;  %vm1364_vm2 = vcmp.lt.s32.totalorder %v5064_v45, 48 }
 0x25b   : > { %1437 = vrot.lane.b32.xlu1 %v4955_v13, %s4246_s14 }
 0x25c   : > { %1439 = vrot.lane.b32.xlu0 %v4958_v17, %s4246_s14  ;;  %s4258_s14 = smov 16  }
 0x25f   : > { %1476 = vrot.lane.b32.xlu1 %v4955_v13, %s4247_s25 }
 0x260   : > { %1478 = vrot.lane.b32.xlu0 %v4958_v17, %s4247_s25  ;;  %s4259_s25 = smov 15  }
 0x263   : > { %1515 = vrot.lane.b32.xlu1 %v4955_v13, %s4248_s29 }
 0x264   : > { %1517 = vrot.lane.b32.xlu0 %v4958_v17, %s4248_s29  ;;  %s4260_s29 = smov 14  }
 0x267   : > { %1554 = vrot.lane.b32.xlu1 %v4955_v13, %s4249_s17 }
 0x268   : > { %1556 = vrot.lane.b32.xlu0 %v4958_v17, %s4249_s17  ;;  %s4261_s17 = smov 13  }
 0x26b   : > { %1593 = vrot.lane.b32.xlu1 %v4955_v13, %s4250_s2 }
 0x26c   : > { %1595 = vrot.lane.b32.xlu0 %v4958_v17, %s4250_s2  ;;  %s5009_s2 = sld [smem:[#allocation11 + $0x18]] }
 0x26f   : > { %1632 = vrot.lane.b32.xlu1 %v4955_v13, %s4251_s16 }
 0x270   : > { %1634 = vrot.lane.b32.xlu0 %v4958_v17, %s4251_s16  ;;  %s5011_s16 = sld [smem:[#allocation11 + $0x98]] }
 0x272   : > { %v2174_v57 = vstv %s5009_s2  ;;  %s5093_s2 = sld [smem:[#allocation11 + $0x5]] }
 0x273   : > { %1670 = vrot.lane.b32.xlu1 %v4955_v13, %s4252_s20  ;;  %v5129_v50 = vmul.f32 %v2174_v57, %v4955_v13  ;;  %v5152_v58 = vmul.f32 %v2174_v57, %v4958_v17  ;;  %v7554_v57 = vrot.slane %v5200_v3, %v5032_v52 }
 0x274   : > { %1672 = vrot.lane.b32.xlu0 %v4958_v17, %s4252_s20  ;;  %s5015_s20 = sld [smem:[#allocation11]] }
 0x275   : > { %vm5680_vm13 = vcmp.eq.s32.totalorder %v7554_v57, 1 }
 0x276   : > { %v2180_v55 = vstv %s5011_s16  ;;  %s5095_s16 = sld [smem:[#allocation11 + $0x85]] }
 0x277   : > { %1709 = vrot.lane.b32.xlu1 %v4955_v13, %s4253_s22  ;;  %v5114_v27 = vmul.f32 %v2180_v55, %v4955_v13  ;;  %v5117_v24 = vmul.f32 %v2180_v55, %v4958_v17 }
 0x278   : > { %1711 = vrot.lane.b32.xlu0 %v4958_v17, %s4253_s22  ;;  %s5017_s22 = sld [smem:[#allocation11 + $0x80]] }
 0x27a   : > { %v1265_v59 = vstv %s5015_s20  ;;  %s4271_s20 = smov 112  }
 0x27b   : > { %1748 = vrot.lane.b32.xlu1 %v4955_v13, %s4254_s28 }
 0x27c   : > { %1750 = vrot.lane.b32.xlu0 %v4958_v17, %s4254_s28  ;;  %s4262_s28 = smov 3  }
 0x27e   : > { %v1271_v61 = vstv %s5017_s22  ;;  %s5613_s22 = sld [smem:[#allocation11 + $0x14]] }
 0x27f   : > { %1787 = vrot.lane.b32.xlu1 %v4955_v13, %s4255_s26 }
 0x280   : > { %1789 = vrot.lane.b32.xlu0 %v4958_v17, %s4255_s26  ;;  %s5026_s26 = sld [smem:[#allocation11 + $0x1]] }
 0x283   : > { %1826 = vrot.lane.b32.xlu1 %v4955_v13, %s4256_s23 }
 0x284   : > { %1828 = vrot.lane.b32.xlu0 %v4958_v17, %s4256_s23  ;;  %s5029_s23 = sld [smem:[#allocation11 + $0x81]] }
 0x286   : > { %v7529_v20 = vstv %s5026_s26  ;;  %s4272_s26 = smov 111  }
 0x287   : > { %1865 = vrot.lane.b32.xlu1 %v4955_v13, %s4257_s1 }
 0x288   : > { %1867 = vrot.lane.b32.xlu0 %v4958_v17, %s4257_s1  ;;  %s4263_s1 = smov 2  }
 0x28b   : > { %1904 = vrot.lane.b32.xlu1 %v4955_v13, %s4258_s14 }
 0x28c   : > { %1906 = vrot.lane.b32.xlu0 %v4958_v17, %s4258_s14  ;;  %s5052_s14 = sld [smem:[#allocation11 + $0x2]] }
 0x28f   : > { %1942 = vrot.lane.b32.xlu1 %v4955_v13, %s4259_s25 }
 0x290   : > { %1944 = vrot.lane.b32.xlu0 %v4958_v17, %s4259_s25  ;;  %s5054_s25 = sld [smem:[#allocation11 + $0x82]] }
 0x293   : > { %1981 = vrot.lane.b32.xlu1 %v4955_v13, %s4260_s29 }
 0x294   : > { %1983 = vrot.lane.b32.xlu0 %v4958_v17, %s4260_s29  ;;  %s5057_s29 = sld [smem:[#allocation11 + $0x3]] }
 0x297   : > { %2020 = vrot.lane.b32.xlu1 %v4955_v13, %s4261_s17 }
 0x298   : > { %2022 = vrot.lane.b32.xlu0 %v4958_v17, %s4261_s17  ;;  %s5059_s17 = sld [smem:[#allocation11 + $0x83]] }
 0x29b   : > { %2059 = vrot.lane.b32.xlu1 %v4955_v13, %s4262_s28 }
 0x29c   : > { %2061 = vrot.lane.b32.xlu0 %v4958_v17, %s4262_s28  ;;  %s5071_s28 = sld [smem:[#allocation11 + $0x4]] }
 0x29f   : > { %2097 = vrot.lane.b32.xlu1 %v4955_v13, %s4263_s1 }
 0x2a0   : > { %2099 = vrot.lane.b32.xlu0 %v4958_v17, %s4263_s1  ;;  %s5073_s1 = sld [smem:[#allocation11 + $0x84]] }
 0x2a3   : > { %2135 = vrot.lane.b32.xlu1 %v4955_v13, %s4264_s19 }
 0x2a4   : > { %2137 = vrot.lane.b32.xlu0 %v4958_v17, %s4264_s19  ;;  %s5124_s19 = sld [smem:[#allocation11 + $0x6]] }
 0x2a7   : > { %2191 = vrot.lane.b32.xlu1 %v4955_v13, %s7365_s5  ;;  %s5175_s5 = sld [smem:[#allocation11 + $0x8]] }
 0x2a8   : > { %2193 = vrot.lane.b32.xlu0 %v4958_v17, %s7483_s6  ;;  %s5312_s6 = sld [smem:[#allocation11 + $0x8e]] }
 0x2ab   : > { %2229 = vrot.lane.b32.xlu1 %v4955_v13, %s4266_s27 }
 0x2ac   : > { %2231 = vrot.lane.b32.xlu0 %v4958_v17, %s4266_s27  ;;  %s5261_s27 = sld [smem:[#allocation11 + $0xc]] }
 0x2ad   : > { %7482 = sst [smem:[#allocation45_spill]] %s5175_s5  ;;  %s5366_s5 = sld [smem:[#allocation11 + $0x10]] }
 0x2af   : > { %2267 = vrot.lane.b32.xlu1 %v4955_v13, %s4267_s15 }
 0x2b0   : > { %2269 = vrot.lane.b32.xlu0 %v4958_v17, %s4267_s15  ;;  %s5331_s15 = sld [smem:[#allocation11 + $0xf]] }
 0x2b2   : > { %7494 = sst [smem:[#allocation50_spill]] %s5261_s27  ;;  %s5443_s27 = sld [smem:[#allocation11 + $0x92]] }
 0x2b3   : > { %2305 = vrot.lane.b32.xlu1 %v4955_v13, %s4268_s4 }
 0x2b4   : > { %2307 = vrot.lane.b32.xlu0 %v4958_v17, %s4268_s4  ;;  %s5421_s4 = sld [smem:[#allocation11 + $0x12]] }
 0x2b7   : > { %2344 = vrot.lane.b32.xlu1 %v4955_v13, %s4269_s30 }
 0x2b8   : > { %2346 = vrot.lane.b32.xlu0 %v4958_v17, %s4269_s30  ;;  %s5484_s30 = sld [smem:[#allocation11 + $0x13]] }
 0x2b9   : > { %v1242_v62 = vpop.permute.xlu1 %1241 }
 0x2ba   : > { %v1244_v56 = vpop.permute.xlu0 %1243 }
 0x2bb   : > { %v1248_v47 = vsel %vm1247_vm8, %v1242_v62, %v1244_v56  ;;  %v1249_v7 = vsel %vm1247_vm8, %v1244_v56, %v1242_v62  ;;  %2383 = vrot.lane.b32.xlu1 %v4955_v13, %s4270_s8  ;;  %vm5548_vm8 = vcmp.eq.s32.totalorder %v1371_v32, 1 }
 0x2bc   : > { %v1262_v42 = vsel %vm5338_vm10, %v1249_v7, 0.0  ;;  %v1263_v56 = vsel %vm5345_vm11, %v1248_v47, 0.0  ;;  %2385 = vrot.lane.b32.xlu0 %v4958_v17, %s4270_s8  ;;  %vm5555_vm10 = vcmp.eq.s32.totalorder %v1375_v60, 1  ;;  %s5573_s8 = sld [smem:[#allocation11 + $0x93]]  ;;  %vm5596_vm11 = vcmp.eq.s32.totalorder %v7531_v38, 1 }
 0x2bd   : > { %v1272_v31 = vmul.f32 %v1271_v61, %v1262_v42  ;;  %v1273_v11 = vmul.f32 %v1271_v61, %v1263_v56  ;;  %v1283_v19 = vpop.permute.xlu1 %1282  ;;  %v5563_v61 = vsel %vm5517_vm5, 1, %v7400_v8  ;;  %v1266_v7 = vmul.f32 %v1265_v59, %v1262_v42 }
 0x2be   : > { %v1267_v32 = vmul.f32 %v1265_v59, %v1263_v56  ;;  %v1285_v54 = vpop.permute.xlu0 %1284  ;;  %vm1402_vm5 = vcmp.lt.s32.totalorder %v5064_v45, 47  ;;  %v7530_v8 = vmov %v7529_v20  ;;  %v7539_v38 = vmov 0  }
 0x2bf   : > { %v1276_v60 = vrot.slane %v1272_v31, 1  ;;  %v1277_v51 = vrot.slane %v1273_v11, 1  ;;  %v1287_v47 = vsel %vm1286_vm0, %v1283_v19, %v1285_v54  ;;  %v1288_v42 = vsel %vm1286_vm0, %v1285_v54, %v1283_v19  ;;  %2422 = vrot.lane.b32.xlu1 %v4955_v13, %s4271_s20 }
 0x2c0   : > { %v1301_v59 = vsel %vm5426_vm6, %v1288_v42, 0.0  ;;  %v1302_v56 = vsel %vm5433_vm9, %v1287_v47, 0.0  ;;  %2424 = vrot.lane.b32.xlu0 %v4958_v17, %s4271_s20  ;;  %v7534_v47 = vrot.slane %v5137_v28, %v5034_v53  ;;  %v5618_v28 = vsel %vm1235_vm14, 1, %v7539_v38  ;;  %s5881_s20 = sld [smem:[#allocation11 + $0x97]] }
 0x2c1   : > { %v1280_v54 = vadd.f32 %v1276_v60, %v1266_v7  ;;  %v1281_v19 = vadd.f32 %v1277_v51, %v1267_v32  ;;  %v1305_v62 = vmul.f32 %v7529_v20, %v1301_v59  ;;  %v1306_v44 = vmul.f32 %v7530_v8, %v1302_v56  ;;  %v1322_v43 = vpop.permute.xlu1 %1321 }
 0x2c2   : > { %vm5603_vm0 = vcmp.eq.s32.totalorder %v7534_v47, 1  ;;  %v7537_v7 = vstv %s5029_s23  ;;  %v1324_v8 = vpop.permute.xlu0 %1323  ;;  %vm1441_vm6 = vcmp.lt.s32.totalorder %v5064_v45, 46  ;;  %vm5642_vm9 = vcmp.eq.s32.totalorder %v7544_v12, 1  ;;  %s5654_s23 = sld [smem:[#allocation11 + $0x94]] }
 0x2c3   : > { %v1311_v32 = vmul.f32 %v7537_v7, %v1301_v59  ;;  %v7538_v20 = vmov %v7537_v7  ;;  %v1307_v47 = vadd.f32 %v1305_v62, %v1280_v54  ;;  %v1308_v11 = vadd.f32 %v1306_v44, %v1281_v19  ;;  %2460 = vrot.lane.b32.xlu1 %v4955_v13, %s4272_s26 }
 0x2c4   : > { %v1312_v60 = vmul.f32 %v7538_v20, %v1302_v56  ;;  %v1326_v59 = vsel %vm1325_vm12, %v1322_v43, %v1324_v8  ;;  %v1327_v56 = vsel %vm1325_vm12, %v1324_v8, %v1322_v43  ;;  %2462 = vrot.lane.b32.xlu0 %v4958_v17, %s4272_s26  ;;  %v7540_v44 = vstv %s5052_s14  ;;  %s4273_s14 = smov 110   ;;  %s7648_s26 = sld [smem:[#allocation51_spill]] }
 0x2c5   : > { %v1315_v7 = vrot.slane %v1311_v32, 1  ;;  %v1340_v51 = vsel %vm5489_vm3, %v1327_v56, 0.0  ;;  %v1341_v31 = vsel %vm5496_vm4, %v1326_v59, 0.0  ;;  %v7541_v54 = vmov %v7540_v44  ;;  %v1361_v39 = vpop.permute.xlu1 %1360 }
 0x2c6   : > { %v1316_v20 = vrot.slane %v1312_v60, 1  ;;  %v1344_v62 = vmul.f32 %v7540_v44, %v1340_v51  ;;  %v1345_v43 = vmul.f32 %v7541_v54, %v1341_v31  ;;  %v7542_v19 = vstv %s5054_s25  ;;  %s5726_s25 = sld [smem:[#allocation11 + $0x15]] }
 0x2c7   : > { %v1350_v8 = vmul.f32 %v7542_v19, %v1340_v51  ;;  %v7543_v40 = vmov %v7542_v19  ;;  %vm5649_vm4 = vcmp.eq.s32.totalorder %v7547_v37, 1  ;;  %v1319_v56 = vadd.f32 %v1315_v7, %v1307_v47  ;;  %v1363_v51 = vpop.permute.xlu0 %1362  ;;  %2499 = vrot.lane.b32.xlu1 %v4955_v13, %s4273_s14 }
 0x2c8   : > { %v1351_v32 = vmul.f32 %v7543_v40, %v1341_v31  ;;  %v1320_v44 = vadd.f32 %v1316_v20, %v1308_v11  ;;  %v1365_v18 = vsel %vm1364_vm2, %v1361_v39, %v1363_v51  ;;  %v1366_v47 = vsel %vm1364_vm2, %v1363_v51, %v1361_v39  ;;  %2501 = vrot.lane.b32.xlu0 %v4958_v17, %s4273_s14  ;;  %s5990_s14 = sld [smem:[#allocation11 + $0x99]] }
 0x2c9   : > { %v1354_v54 = vrot.slane %v1350_v8, 1  ;;  %v1346_v11 = vadd.f32 %v1344_v62, %v1319_v56  ;;  %v1378_v20 = vsel %vm5548_vm8, %v1366_v47, 0.0  ;;  %v1379_v12 = vsel %vm5555_vm10, %v1365_v18, 0.0  ;;  %v1399_v56 = vpop.permute.xlu1 %1398 }
 0x2ca   : > { %v1355_v19 = vrot.slane %v1351_v32, 1  ;;  %v1347_v7 = vadd.f32 %v1345_v43, %v1320_v44  ;;  %vm1480_vm12 = vcmp.lt.s32.totalorder %v5064_v45, 45  ;;  %v7550_v8 = vstv %s5057_s29  ;;  %s5764_s29 = sld [smem:[#allocation11 + $0x95]] }
 0x2cb   : > { %v1382_v32 = vmul.f32 %v7550_v8, %v1378_v20  ;;  %v7551_v37 = vmov %v7550_v8  ;;  %v7552_v51 = vstv %s5059_s17  ;;  %vm5687_vm3 = vcmp.eq.s32.totalorder %v7557_v48, 1  ;;  %v1401_v47 = vpop.permute.xlu0 %1400  ;;  %s5802_s17 = sld [smem:[#allocation11 + $0x16]] }
 0x2cc   : > { %v1383_v39 = vmul.f32 %v7551_v37, %v1379_v12  ;;  %v1388_v40 = vmul.f32 %v7552_v51, %v1378_v20  ;;  %v7553_v31 = vmov %v7552_v51  ;;  %v1358_v18 = vadd.f32 %v1354_v54, %v1346_v11 }
 0x2cd   : > { %v1389_v62 = vmul.f32 %v7553_v31, %v1379_v12  ;;  %v1359_v31 = vadd.f32 %v1355_v19, %v1347_v7  ;;  %v1403_v3 = vsel %vm1402_vm5, %v1399_v56, %v1401_v47  ;;  %v1404_v51 = vsel %vm1402_vm5, %v1401_v47, %v1399_v56  ;;  %v1438_v56 = vpop.permute.xlu1 %1437 }
 0x2ce   : > { %v1392_v8 = vrot.slane %v1388_v40, 1  ;;  %v1384_v57 = vadd.f32 %v1382_v32, %v1358_v18  ;;  %v1417_v54 = vsel %vm5596_vm11, %v1404_v51, 0.0  ;;  %v1418_v19 = vsel %vm5603_vm0, %v1403_v3, 0.0 }
 0x2cf   : > { %v1393_v37 = vrot.slane %v1389_v62, 1  ;;  %v1385_v48 = vadd.f32 %v1383_v39, %v1359_v31  ;;  %vm1519_vm2 = vcmp.lt.s32.totalorder %v5064_v45, 35  ;;  %v7560_v11 = vstv %s5071_s28  ;;  %s7602_s28 = sld [smem:[#allocation46_spill]] }
 0x2d0   : > { %v1421_v40 = vmul.f32 %v7560_v11, %v1417_v54  ;;  %v7561_v7 = vmov %v7560_v11  ;;  %v7562_v20 = vstv %s5073_s1  ;;  %v7564_v32 = vrot.slane %v5232_v25, %v5032_v52  ;;  %s5841_s1 = sld [smem:[#allocation11 + $0x96]] }
 0x2d1   : > { %v1422_v62 = vmul.f32 %v7561_v7, %v1418_v19  ;;  %v1427_v12 = vmul.f32 %v7562_v20, %v1417_v54  ;;  %v7563_v35 = vmov %v7562_v20  ;;  %v7567_v42 = vrot.slane %v5232_v25, %v5034_v53  ;;  %v1477_v30 = vpop.permute.xlu1 %1476 }
 0x2d2   : > { %v1428_v34 = vmul.f32 %v7563_v35, %v1418_v19  ;;  %vm5714_vm8 = vcmp.eq.s32.totalorder %v7564_v32, 1  ;;  %v1396_v18 = vadd.f32 %v1392_v8, %v1384_v57  ;;  %v1397_v31 = vadd.f32 %v1393_v37, %v1385_v48  ;;  %v1440_v35 = vpop.permute.xlu0 %1439 }
 0x2d3   : > { %vm5721_vm10 = vcmp.eq.s32.totalorder %v7567_v42, 1  ;;  %v5731_v20 = vsel %vm1236_vm15, 1, %v7539_v38  ;;  %v1431_v25 = vrot.slane %v1427_v12, 1  ;;  %v1442_v51 = vsel %vm1441_vm6, %v1438_v56, %v1440_v35 }
 0x2d4   : > { %v1432_v3 = vrot.slane %v1428_v34, 1  ;;  %v1443_v8 = vsel %vm1441_vm6, %v1440_v35, %v1438_v56  ;;  %v1423_v37 = vadd.f32 %v1421_v40, %v1396_v18  ;;  %v1424_v57 = vadd.f32 %v1422_v62, %v1397_v31 }
 0x2d5   : > { %v1456_v48 = vsel %vm5642_vm9, %v1443_v8, 0.0  ;;  %v1457_v54 = vsel %vm5649_vm4, %v1442_v51, 0.0  ;;  %vm1558_vm5 = vcmp.lt.s32.totalorder %v5064_v45, 34  ;;  %v7570_v19 = vstv %s5093_s2  ;;  %s5845_s2 = sld [smem:[#allocation11 + $0x17]] }
 0x2d6   : > { %v1460_v11 = vmul.f32 %v7570_v19, %v1456_v48  ;;  %v7571_v12 = vmov %v7570_v19  ;;  %v7572_v7 = vstv %s5095_s16  ;;  %v7574_v40 = vrot.slane %v5246_v1, %v5032_v52  ;;  %v1479_v31 = vpop.permute.xlu0 %1478  ;;  %s7613_s16 = sld [smem:[#allocation47_spill]] }
 0x2d7   : > { %v1461_v34 = vmul.f32 %v7571_v12, %v1457_v54  ;;  %v1466_v32 = vmul.f32 %v7572_v7, %v1456_v48  ;;  %v7573_v42 = vmov %v7572_v7  ;;  %v7577_v59 = vrot.slane %v5246_v1, %v5034_v53 }
 0x2d8   : > { %v1467_v47 = vmul.f32 %v7573_v42, %v1457_v54  ;;  %vm5753_vm11 = vcmp.eq.s32.totalorder %v7574_v40, 1  ;;  %v1435_v56 = vadd.f32 %v1431_v25, %v1423_v37  ;;  %v1436_v18 = vadd.f32 %v1432_v3, %v1424_v57 }
 0x2d9   : > { %vm5760_vm0 = vcmp.eq.s32.totalorder %v7577_v59, 1  ;;  %v2108_v35 = vrot.slane %v5731_v20, %v5032_v52  ;;  %v2112_v51 = vrot.slane %v5731_v20, %v5034_v53  ;;  %v1470_v1 = vrot.slane %v1466_v32, 1 }
 0x2da   : > { %v1471_v8 = vrot.slane %v1467_v47, 1  ;;  %v1481_v48 = vsel %vm1480_vm12, %v1477_v30, %v1479_v31  ;;  %v1482_v25 = vsel %vm1480_vm12, %v1479_v31, %v1477_v30  ;;  %v1462_v3 = vadd.f32 %v1460_v11, %v1435_v56  ;;  %v1516_v30 = vpop.permute.xlu1 %1515  ;;  %v1518_v31 = vpop.permute.xlu0 %1517 }
 0x2db   : > { %v1463_v37 = vadd.f32 %v1461_v34, %v1436_v18  ;;  %v1495_v57 = vsel %vm5680_vm13, %v1482_v25, 0.0  ;;  %v1496_v54 = vsel %vm5687_vm3, %v1481_v48, 0.0  ;;  %vm1597_vm6 = vcmp.lt.s32.totalorder %v5064_v45, 33 }
 0x2dc   : > { %v7580_v19 = vstv %s5124_s19  ;;  %v7582_v32 = vstv %s5126_s0  ;;  %v7584_v11 = vrot.slane %v5251_v4, %v5032_v52  ;;  %v7587_v44 = vrot.slane %v5251_v4, %v5034_v53  ;;  %s7590_s0 = sld [smem:[#allocation44_spill]]  ;;  %s7614_s19 = sld [smem:[#allocation48_spill]] }
 0x2dd   : > { %v1499_v12 = vmul.f32 %v7580_v19, %v1495_v57  ;;  %v7581_v47 = vmov %v7580_v19  ;;  %v1505_v42 = vmul.f32 %v7582_v32, %v1495_v57  ;;  %v7583_v40 = vmov %v7582_v32 }
 0x2de   : > { %v1500_v7 = vmul.f32 %v7581_v47, %v1496_v54  ;;  %v1506_v59 = vmul.f32 %v7583_v40, %v1496_v54  ;;  %vm5790_vm9 = vcmp.eq.s32.totalorder %v7584_v11, 1  ;;  %vm5797_vm4 = vcmp.eq.s32.totalorder %v7587_v44, 1 }
 0x2df   : > { %v1474_v56 = vadd.f32 %v1470_v1, %v1462_v3  ;;  %v1475_v18 = vadd.f32 %v1471_v8, %v1463_v37  ;;  %v5807_v25 = vsel %vm7409_vm1, 1, %v7539_v38  ;;  %v1509_v4 = vrot.slane %v1505_v42, 1 }
 0x2e0   : > { %v1510_v57 = vrot.slane %v1506_v59, 1  ;;  %v1520_v54 = vsel %vm1519_vm2, %v1516_v30, %v1518_v31  ;;  %v1521_v1 = vsel %vm1519_vm2, %v1518_v31, %v1516_v30  ;;  %vm1636_vm12 = vcmp.lt.s32.totalorder %v5064_v45, 32  ;;  %v1555_v30 = vpop.permute.xlu1 %1554  ;;  %v1557_v31 = vpop.permute.xlu0 %1556 }
 0x2e1   : > { %v1501_v8 = vadd.f32 %v1499_v12, %v1474_v56  ;;  %v1502_v3 = vadd.f32 %v1500_v7, %v1475_v18  ;;  %v1534_v37 = vsel %vm5714_vm8, %v1521_v1, 0.0  ;;  %v1535_v19 = vsel %vm5721_vm10, %v1520_v54, 0.0 }
 0x2e2   : > { %v7591_v47 = vstv %s5147_s3  ;;  %v7593_v59 = vstv %s7590_s0  ;;  %v7595_v12 = vrot.slane %v5268_v23, %v5032_v52  ;;  %v7598_v39 = vrot.slane %v5268_v23, %v5034_v53  ;;  %s7601_s3 = sld [smem:[#allocation45_spill]]  ;;  %s6029_s0 = sld [smem:[#allocation11 + $0x1a]] }
 0x2e3   : > { %v1538_v32 = vmul.f32 %v7591_v47, %v1534_v37  ;;  %v7592_v42 = vmov %v7591_v47  ;;  %v1544_v11 = vmul.f32 %v7593_v59, %v1534_v37  ;;  %v7594_v44 = vmov %v7593_v59 }
 0x2e4   : > { %v1539_v40 = vmul.f32 %v7592_v42, %v1535_v19  ;;  %v1545_v48 = vmul.f32 %v7594_v44, %v1535_v19  ;;  %vm5829_vm13 = vcmp.eq.s32.totalorder %v7595_v12, 1  ;;  %vm5836_vm3 = vcmp.eq.s32.totalorder %v7598_v39, 1 }
 0x2e5   : > { %v1513_v56 = vadd.f32 %v1509_v4, %v1501_v8  ;;  %v1514_v18 = vadd.f32 %v1510_v57, %v1502_v3  ;;  %v2146_v1 = vrot.slane %v5807_v25, %v5032_v52  ;;  %v1548_v23 = vrot.slane %v1544_v11, 1 }
 0x2e6   : > { %v1549_v37 = vrot.slane %v1545_v48, 1  ;;  %v1559_v19 = vsel %vm1558_vm5, %v1555_v30, %v1557_v31  ;;  %v1560_v4 = vsel %vm1558_vm5, %v1557_v31, %v1555_v30  ;;  %vm1674_vm2 = vcmp.lt.s32.totalorder %v5064_v45, 31  ;;  %v1594_v30 = vpop.permute.xlu1 %1593  ;;  %v1596_v31 = vpop.permute.xlu0 %1595 }
 0x2e7   : > { %v1540_v57 = vadd.f32 %v1538_v32, %v1513_v56  ;;  %v1541_v8 = vadd.f32 %v1539_v40, %v1514_v18  ;;  %v1573_v3 = vsel %vm5753_vm11, %v1560_v4, 0.0  ;;  %v1574_v47 = vsel %vm5760_vm0, %v1559_v19, 0.0 }
 0x2e8   : > { %v7603_v42 = vstv %s7601_s3  ;;  %v7605_v44 = vstv %s7602_s28  ;;  %v7607_v32 = vrot.slane %v5300_v33, %v5032_v52  ;;  %v7610_v62 = vrot.slane %v5300_v33, %v5034_v53  ;;  %s4276_s3 = smov 98   ;;  %s6726_s28 = sld [smem:[#allocation11 + $0x21]] }
 0x2e9   : > { %v1577_v59 = vmul.f32 %v7603_v42, %v1573_v3  ;;  %v7604_v48 = vmov %v7603_v42  ;;  %v1583_v12 = vmul.f32 %v7605_v44, %v1573_v3  ;;  %v7606_v39 = vmov %v7605_v44 }
 0x2ea   : > { %v1578_v11 = vmul.f32 %v7604_v48, %v1574_v47  ;;  %v1584_v54 = vmul.f32 %v7606_v39, %v1574_v47  ;;  %vm5867_vm8 = vcmp.eq.s32.totalorder %v7607_v32, 1  ;;  %vm5874_vm10 = vcmp.eq.s32.totalorder %v7610_v62, 1 }
 0x2eb   : > { %v1552_v56 = vadd.f32 %v1548_v23, %v1540_v57  ;;  %v1553_v18 = vadd.f32 %v1549_v37, %v1541_v8  ;;  %v2150_v4 = vrot.slane %v5807_v25, %v5034_v53  ;;  %v1587_v3 = vrot.slane %v1583_v12, 1 }
 0x2ec   : > { %v1588_v47 = vrot.slane %v1584_v54, 1  ;;  %v1598_v33 = vsel %vm1597_vm6, %v1594_v30, %v1596_v31  ;;  %v1599_v42 = vsel %vm1597_vm6, %v1596_v31, %v1594_v30  ;;  %vm1713_vm5 = vcmp.lt.s32.totalorder %v5064_v45, 30  ;;  %v1633_v31 = vpop.permute.xlu1 %1632 }
 0x2ed   : > { %v1579_v23 = vadd.f32 %v1577_v59, %v1552_v56  ;;  %v1580_v37 = vadd.f32 %v1578_v11, %v1553_v18  ;;  %v1612_v57 = vsel %vm5790_vm9, %v1599_v42, 0.0  ;;  %v1613_v8 = vsel %vm5797_vm4, %v1598_v33, 0.0  ;;  %v1635_v33 = vpop.permute.xlu0 %1634 }
 0x2ee   : > { %v7615_v48 = vstv %s7613_s16  ;;  %v7617_v39 = vstv %s7614_s19  ;;  %v7619_v59 = vrot.slane %v5356_v63, %v5032_v52  ;;  %v7622_v34 = vrot.slane %v5356_v63, %v5034_v53  ;;  %s4279_s16 = smov 95   ;;  %s4280_s19 = smov 94  }
 0x2ef   : > { %v1616_v54 = vmul.f32 %v7615_v48, %v1612_v57  ;;  %v7616_v44 = vmov %v7615_v48  ;;  %v1622_v32 = vmul.f32 %v7617_v39, %v1612_v57  ;;  %v7618_v62 = vmov %v7617_v39 }
 0x2f0   : > { %v1617_v12 = vmul.f32 %v7616_v44, %v1613_v8  ;;  %v1623_v30 = vmul.f32 %v7618_v62, %v1613_v8  ;;  %vm5903_vm11 = vcmp.eq.s32.totalorder %v7619_v59, 1  ;;  %vm5910_vm0 = vcmp.eq.s32.totalorder %v7622_v34, 1 }
 0x2f1   : > { %v1591_v56 = vadd.f32 %v1587_v3, %v1579_v23  ;;  %v1592_v18 = vadd.f32 %v1588_v47, %v1580_v37  ;;  %v1626_v8 = vrot.slane %v1622_v32, 1  ;;  %v1637_v44 = vsel %vm1636_vm12, %v1633_v31, %v1635_v33 }
 0x2f2   : > { %v1627_v48 = vrot.slane %v1623_v30, 1  ;;  %v1638_v63 = vsel %vm1636_vm12, %v1635_v33, %v1633_v31  ;;  %v1651_v47 = vsel %vm5836_vm3, %v1637_v44, 0.0  ;;  %vm1752_vm6 = vcmp.lt.s32.totalorder %v5064_v45, 29  ;;  %v1671_v31 = vpop.permute.xlu1 %1670  ;;  %v1673_v33 = vpop.permute.xlu0 %1672 }
 0x2f3   : > { %v1618_v39 = vadd.f32 %v1616_v54, %v1591_v56  ;;  %v1619_v62 = vadd.f32 %v1617_v12, %v1592_v18  ;;  %v1650_v3 = vsel %vm5829_vm13, %v1638_v63, 0.0  ;;  %v7625_v23 = vstv %s5220_s11  ;;  %s5953_s11 = sld [smem:[#allocation11 + $0x19]] }
 0x2f4   : > { %v1654_v37 = vmul.f32 %v7625_v23, %v1650_v3  ;;  %v7626_v32 = vmov %v7625_v23  ;;  %v7627_v59 = vstv %s5222_s10  ;;  %v7629_v54 = vrot.slane %v5376_v49, %v5032_v52  ;;  %s7635_s10 = sld [smem:[#allocation49_spill]] }
 0x2f5   : > { %v1655_v30 = vmul.f32 %v7626_v32, %v1651_v47  ;;  %v1660_v34 = vmul.f32 %v7627_v59, %v1650_v3  ;;  %v7628_v57 = vmov %v7627_v59  ;;  %v7632_v7 = vrot.slane %v5376_v49, %v5034_v53 }
 0x2f6   : > { %v1661_v42 = vmul.f32 %v7628_v57, %v1651_v47  ;;  %vm5936_vm9 = vcmp.eq.s32.totalorder %v7629_v54, 1  ;;  %v1630_v56 = vadd.f32 %v1626_v8, %v1618_v39  ;;  %v1631_v18 = vadd.f32 %v1627_v48, %v1619_v62  ;;  %v1710_v19 = vpop.permute.xlu1 %1709 }
 0x2f7   : > { %vm5943_vm4 = vcmp.eq.s32.totalorder %v7632_v7, 1  ;;  %vm7636_vm12 = vcmp.lt.s32.totalorder %v5006_v2, 15  ;;  %v1664_v49 = vrot.slane %v1660_v34, 1  ;;  %v1675_v3 = vsel %vm1674_vm2, %v1671_v31, %v1673_v33 }
 0x2f8   : > { %v5951_v44 = vsel %vm7636_vm12, 1, %v7539_v38  ;;  %v1665_v63 = vrot.slane %v1661_v42, 1  ;;  %v1676_v8 = vsel %vm1674_vm2, %v1673_v33, %v1671_v31  ;;  %v1656_v48 = vadd.f32 %v1654_v37, %v1630_v56 }
 0x2f9   : > { %v1657_v39 = vadd.f32 %v1655_v30, %v1631_v18  ;;  %v1689_v62 = vsel %vm5867_vm8, %v1676_v8, 0.0  ;;  %v1690_v47 = vsel %vm5874_vm10, %v1675_v3, 0.0  ;;  %vm1791_vm13 = vcmp.lt.s32.totalorder %v5064_v45, 19  ;;  %v1712_v18 = vpop.permute.xlu0 %1711 }
 0x2fa   : > { %v7637_v23 = vstv %s5234_s12  ;;  %v7639_v34 = vstv %s7635_s10  ;;  %v7641_v37 = vrot.slane %v5389_v36, %v5032_v52  ;;  %v7644_v40 = vrot.slane %v5389_v36, %v5034_v53  ;;  %s7647_s12 = sld [smem:[#allocation50_spill]]  ;;  %s4282_s10 = smov 83  }
 0x2fb   : > { %v1693_v32 = vmul.f32 %v7637_v23, %v1689_v62  ;;  %v7638_v59 = vmov %v7637_v23  ;;  %v1699_v54 = vmul.f32 %v7639_v34, %v1689_v62  ;;  %v7640_v7 = vmov %v7639_v34 }
 0x2fc   : > { %v1694_v42 = vmul.f32 %v7638_v59, %v1690_v47  ;;  %v1700_v57 = vmul.f32 %v7640_v7, %v1690_v47  ;;  %vm5975_vm3 = vcmp.eq.s32.totalorder %v7641_v37, 1  ;;  %vm5982_vm2 = vcmp.eq.s32.totalorder %v7644_v40, 1 }
 0x2fd   : > { %v1668_v31 = vadd.f32 %v1664_v49, %v1656_v48  ;;  %v1669_v56 = vadd.f32 %v1665_v63, %v1657_v39  ;;  %v2202_v33 = vrot.slane %v5951_v44, %v5032_v52  ;;  %v2206_v3 = vrot.slane %v5951_v44, %v5034_v53 }
 0x2fe   : > { %v1703_v36 = vrot.slane %v1699_v54, 1  ;;  %v1704_v8 = vrot.slane %v1700_v57, 1  ;;  %v1714_v62 = vsel %vm1713_vm5, %v1710_v19, %v1712_v18  ;;  %v1715_v49 = vsel %vm1713_vm5, %v1712_v18, %v1710_v19  ;;  %v1749_v19 = vpop.permute.xlu1 %1748  ;;  %v1751_v18 = vpop.permute.xlu0 %1750 }
 0x2ff   : > { %v1695_v63 = vadd.f32 %v1693_v32, %v1668_v31  ;;  %v1696_v48 = vadd.f32 %v1694_v42, %v1669_v56  ;;  %v1728_v39 = vsel %vm5903_vm11, %v1715_v49, 0.0  ;;  %v1729_v47 = vsel %vm5910_vm0, %v1714_v62, 0.0 }
 0x300   : > { %vm1830_vm8 = vcmp.lt.s32.totalorder %v5064_v45, 18  ;;  %v7649_v23 = vstv %s7647_s12  ;;  %v7651_v54 = vstv %s7648_s26  ;;  %v7653_v32 = vrot.slane %v5409_v0, %v5032_v52  ;;  %s4284_s12 = smov 81   ;;  %s4285_s26 = smov 80  }
 0x301   : > { %v1732_v59 = vmul.f32 %v7649_v23, %v1728_v39  ;;  %v7650_v57 = vmov %v7649_v23  ;;  %v1738_v7 = vmul.f32 %v7651_v54, %v1728_v39  ;;  %v7652_v37 = vmov %v7651_v54 }
 0x302   : > { %v1733_v34 = vmul.f32 %v7650_v57, %v1729_v47  ;;  %v1739_v40 = vmul.f32 %v7652_v37, %v1729_v47  ;;  %vm6012_vm10 = vcmp.eq.s32.totalorder %v7653_v32, 1  ;;  %v7656_v11 = vrot.slane %v5409_v0, %v5034_v53 }
 0x303   : > { %v1707_v31 = vadd.f32 %v1703_v36, %v1695_v63  ;;  %v1708_v56 = vadd.f32 %v1704_v8, %v1696_v48  ;;  %vm7659_vm11 = vcmp.lt.s32.totalorder %v5006_v2, 14  ;;  %v1742_v0 = vrot.slane %v1738_v7, 1 }
 0x304   : > { %vm6019_vm5 = vcmp.eq.s32.totalorder %v7656_v11, 1  ;;  %v6027_v49 = vsel %vm7659_vm11, 1, %v7539_v38  ;;  %v1743_v39 = vrot.slane %v1739_v40, 1  ;;  %v1753_v47 = vsel %vm1752_vm6, %v1749_v19, %v1751_v18 }
 0x305   : > { %v1754_v36 = vsel %vm1752_vm6, %v1751_v18, %v1749_v19  ;;  %v1734_v8 = vadd.f32 %v1732_v59, %v1707_v31  ;;  %v1735_v63 = vadd.f32 %v1733_v34, %v1708_v56  ;;  %v1768_v23 = vsel %vm5943_vm4, %v1753_v47, 0.0  ;;  %v1788_v19 = vpop.permute.xlu1 %1787  ;;  %v1790_v18 = vpop.permute.xlu0 %1789 }
 0x306   : > { %v1767_v48 = vsel %vm5936_vm9, %v1754_v36, 0.0  ;;  %vm1869_vm0 = vcmp.lt.s32.totalorder %v5064_v45, 17  ;;  %v7660_v57 = vstv %s5272_s9  ;;  %v7662_v40 = vstv %s5289_s21  ;;  %s6065_s9 = sld [smem:[#allocation11 + $0x9a]]  ;;  %s6294_s21 = sld [smem:[#allocation11 + $0x9c]] }
 0x307   : > { %v1771_v54 = vmul.f32 %v7660_v57, %v1767_v48  ;;  %v7661_v7 = vmov %v7660_v57  ;;  %v1777_v32 = vmul.f32 %v7662_v40, %v1767_v48  ;;  %v7663_v11 = vmov %v7662_v40 }
 0x308   : > { %v1772_v37 = vmul.f32 %v7661_v7, %v1768_v23  ;;  %v1778_v62 = vmul.f32 %v7663_v11, %v1768_v23  ;;  %v7664_v59 = vrot.slane %v5451_v14, %v5032_v52  ;;  %v7667_v12 = vrot.slane %v5451_v14, %v5034_v53 }
 0x309   : > { %v1746_v31 = vadd.f32 %v1742_v0, %v1734_v8  ;;  %v1747_v56 = vadd.f32 %v1743_v39, %v1735_v63  ;;  %v2240_v36 = vrot.slane %v6027_v49, %v5032_v52  ;;  %v1781_v48 = vrot.slane %v1777_v32, 1 }
 0x30a   : > { %vm6051_vm6 = vcmp.eq.s32.totalorder %v7664_v59, 1  ;;  %vm6058_vm9 = vcmp.eq.s32.totalorder %v7667_v12, 1  ;;  %v1782_v23 = vrot.slane %v1778_v62, 1  ;;  %v1792_v14 = vsel %vm1791_vm13, %v1788_v19, %v1790_v18 }
 0x30b   : > { %v1793_v57 = vsel %vm1791_vm13, %v1790_v18, %v1788_v19  ;;  %v1773_v0 = vadd.f32 %v1771_v54, %v1746_v31  ;;  %v1774_v39 = vadd.f32 %v1772_v37, %v1747_v56  ;;  %v1807_v63 = vsel %vm5982_vm2, %v1792_v14, 0.0  ;;  %v1827_v19 = vpop.permute.xlu1 %1826  ;;  %v1829_v18 = vpop.permute.xlu0 %1828 }
 0x30c   : > { %v1806_v8 = vsel %vm5975_vm3, %v1793_v57, 0.0  ;;  %vm1908_vm4 = vcmp.lt.s32.totalorder %v5064_v45, 16  ;;  %v7670_v7 = vstv %s5310_s13  ;;  %v7672_v11 = vstv %s5312_s6  ;;  %s6138_s6 = sld [smem:[#allocation11 + $0x1b]]  ;;  %s6408_s13 = sld [smem:[#allocation11 + $0x9d]] }
 0x30d   : > { %v1810_v40 = vmul.f32 %v7670_v7, %v1806_v8  ;;  %v7671_v62 = vmov %v7670_v7  ;;  %v1816_v59 = vmul.f32 %v7672_v11, %v1806_v8  ;;  %v7673_v12 = vmov %v7672_v11 }
 0x30e   : > { %v1811_v32 = vmul.f32 %v7671_v62, %v1807_v63  ;;  %v1817_v47 = vmul.f32 %v7673_v12, %v1807_v63  ;;  %v7674_v54 = vrot.slane %v5456_v26, %v5032_v52  ;;  %v7677_v30 = vrot.slane %v5456_v26, %v5034_v53 }
 0x30f   : > { %v1785_v31 = vadd.f32 %v1781_v48, %v1773_v0  ;;  %v1786_v56 = vadd.f32 %v1782_v23, %v1774_v39  ;;  %v1820_v8 = vrot.slane %v1816_v59, 1  ;;  %v1831_v26 = vsel %vm1830_vm8, %v1827_v19, %v1829_v18 }
 0x310   : > { %vm6087_vm12 = vcmp.eq.s32.totalorder %v7674_v54, 1  ;;  %vm6094_vm13 = vcmp.eq.s32.totalorder %v7677_v30, 1  ;;  %v1821_v63 = vrot.slane %v1817_v47, 1  ;;  %v1832_v7 = vsel %vm1830_vm8, %v1829_v18, %v1827_v19  ;;  %v1866_v19 = vpop.permute.xlu1 %1865  ;;  %v1868_v18 = vpop.permute.xlu0 %1867 }
 0x311   : > { %v1812_v62 = vadd.f32 %v1810_v40, %v1785_v31  ;;  %v1813_v11 = vadd.f32 %v1811_v32, %v1786_v56  ;;  %v1845_v48 = vsel %vm6012_vm10, %v1832_v7, 0.0  ;;  %v1846_v23 = vsel %vm6019_vm5, %v1831_v26, 0.0 }
 0x312   : > { %vm1946_vm3 = vcmp.lt.s32.totalorder %v5064_v45, 15  ;;  %v7680_v0 = vstv %s5331_s15  ;;  %v7682_v12 = vstv %s5333_s7  ;;  %v7684_v40 = vrot.slane %v5467_v41, %v5032_v52  ;;  %s6173_s7 = sld [smem:[#allocation11 + $0x9b]]  ;;  %s6415_s15 = sld [smem:[#allocation11 + $0x9e]] }
 0x313   : > { %v1849_v39 = vmul.f32 %v7680_v0, %v1845_v48  ;;  %v7681_v47 = vmov %v7680_v0  ;;  %v1855_v54 = vmul.f32 %v7682_v12, %v1845_v48  ;;  %v7683_v30 = vmov %v7682_v12 }
 0x314   : > { %v1850_v59 = vmul.f32 %v7681_v47, %v1846_v23  ;;  %v1856_v57 = vmul.f32 %v7683_v30, %v1846_v23  ;;  %vm6121_vm2 = vcmp.eq.s32.totalorder %v7684_v40, 1  ;;  %v7687_v42 = vrot.slane %v5467_v41, %v5034_v53  ;;  %v1905_v14 = vpop.permute.xlu1 %1904 }
 0x315   : > { %v1824_v31 = vadd.f32 %v1820_v8, %v1812_v62  ;;  %v1825_v56 = vadd.f32 %v1821_v63, %v1813_v11  ;;  %v6136_v7 = vsel %vm1240_vm7, 1, %v7539_v38  ;;  %v1859_v41 = vrot.slane %v1855_v54, 1 }
 0x316   : > { %vm6128_vm8 = vcmp.eq.s32.totalorder %v7687_v42, 1  ;;  %v1860_v48 = vrot.slane %v1856_v57, 1  ;;  %v1870_v23 = vsel %vm1869_vm0, %v1866_v19, %v1868_v18  ;;  %v1871_v8 = vsel %vm1869_vm0, %v1868_v18, %v1866_v19 }
 0x317   : > { %v1851_v63 = vadd.f32 %v1849_v39, %v1824_v31  ;;  %v1852_v62 = vadd.f32 %v1850_v59, %v1825_v56  ;;  %v1884_v11 = vsel %vm6051_vm6, %v1871_v8, 0.0  ;;  %v1885_v0 = vsel %vm6058_vm9, %v1870_v23, 0.0  ;;  %v1907_v56 = vpop.permute.xlu0 %1906  ;;  %v6175_v23 = vld [vmem:[#allocation6] ss:$2 sm:$0x3] }
 0x318   : > { %vm1985_vm10 = vcmp.lt.s32.totalorder %v5064_v45, 14  ;;  %v7690_v47 = vstv %s5366_s5  ;;  %v7692_v30 = vstv %s5378_s18  ;;  %v7694_v39 = vrot.slane %v5531_v46, %v5032_v52  ;;  %s7700_s5 = sld [smem:[#allocation52_spill]]  ;;  %s6257_s18 = sld [smem:[#allocation11 + $0x1c]] }
 0x319   : > { %v1888_v12 = vmul.f32 %v7690_v47, %v1884_v11  ;;  %v7691_v54 = vmov %v7690_v47  ;;  %v1894_v40 = vmul.f32 %v7692_v30, %v1884_v11  ;;  %v7693_v42 = vmov %v7692_v30 }
 0x31a   : > { %v1889_v57 = vmul.f32 %v7691_v54, %v1885_v0  ;;  %v1895_v26 = vmul.f32 %v7693_v42, %v1885_v0  ;;  %vm6160_vm5 = vcmp.eq.s32.totalorder %v7694_v39, 1  ;;  %v7697_v34 = vrot.slane %v5531_v46, %v5034_v53 }
 0x31b   : > { %v1863_v19 = vadd.f32 %v1859_v41, %v1851_v63  ;;  %v1864_v31 = vadd.f32 %v1860_v48, %v1852_v62  ;;  %v2278_v18 = vrot.slane %v6136_v7, %v5032_v52  ;;  %vm1232_vm0 = vcmp.lt.s32.totalorder %v6175_v23, 15 }
 0x31c   : > { %vm6167_vm11 = vcmp.eq.s32.totalorder %v7697_v34, 1  ;;  %v1898_v46 = vrot.slane %v1894_v40, 1  ;;  %v1899_v8 = vrot.slane %v1895_v26, 1  ;;  %v1909_v41 = vsel %vm1908_vm4, %v1905_v14, %v1907_v56 }
 0x31d   : > { %v1910_v48 = vsel %vm1908_vm4, %v1907_v56, %v1905_v14  ;;  %v1890_v63 = vadd.f32 %v1888_v12, %v1863_v19  ;;  %v1891_v62 = vadd.f32 %v1889_v57, %v1864_v31  ;;  %v1923_v0 = vsel %vm6094_vm13, %v1909_v41, 0.0  ;;  %v1943_v14 = vpop.permute.xlu1 %1942  ;;  %v1945_v56 = vpop.permute.xlu0 %1944 }
 0x31e   : > { %v1922_v11 = vsel %vm6087_vm12, %v1910_v48, 0.0  ;;  %vm2024_vm6 = vcmp.lt.s32.totalorder %v5064_v45, 13  ;;  %v7701_v47 = vstv %s7700_s5  ;;  %v7703_v40 = vstv %s5411_s24  ;;  %vm6220_vm12 = vmand %vm1232_vm0, %vm1235_vm14  ;;  %s6341_s24 = sld [smem:[#allocation11 + $0x1d]]  ;;  %s6795_s5 = sld [smem:[#allocation11 + $0xa2]] }
 0x31f   : > { %v1926_v54 = vmul.f32 %v7701_v47, %v1922_v11  ;;  %v7702_v26 = vmov %v7701_v47  ;;  %v1932_v42 = vmul.f32 %v7703_v40, %v1922_v11  ;;  %v7704_v39 = vmov %v7703_v40 }
 0x320   : > { %v1927_v30 = vmul.f32 %v7702_v26, %v1923_v0  ;;  %v1933_v34 = vmul.f32 %v7704_v39, %v1923_v0  ;;  %v7705_v12 = vrot.slane %v5563_v61, %v5032_v52  ;;  %v7708_v37 = vrot.slane %v5563_v61, %v5034_v53 }
 0x321   : > { %v1902_v19 = vadd.f32 %v1898_v46, %v1890_v63  ;;  %v1903_v31 = vadd.f32 %v1899_v8, %v1891_v62  ;;  %v1936_v11 = vrot.slane %v1932_v42, 1  ;;  %v1947_v61 = vsel %vm1946_vm3, %v1943_v14, %v1945_v56  ;;  %v1982_v48 = vpop.permute.xlu1 %1981 }
 0x322   : > { %vm6198_vm9 = vcmp.eq.s32.totalorder %v7705_v12, 1  ;;  %vm6205_vm4 = vcmp.eq.s32.totalorder %v7708_v37, 1  ;;  %v1937_v0 = vrot.slane %v1933_v34, 1  ;;  %v1948_v47 = vsel %vm1946_vm3, %v1945_v56, %v1943_v14 }
 0x323   : > { %v1928_v8 = vadd.f32 %v1926_v54, %v1902_v19  ;;  %v1929_v63 = vadd.f32 %v1927_v30, %v1903_v31  ;;  %v1961_v62 = vsel %vm6121_vm2, %v1948_v47, 0.0  ;;  %v1962_v26 = vsel %vm6128_vm8, %v1947_v61, 0.0  ;;  %v1984_v61 = vpop.permute.xlu0 %1983 }
 0x324   : > { %vm2063_vm13 = vcmp.lt.s32.totalorder %v5064_v45, 3  ;;  %v7713_v40 = vstv %s5421_s4  ;;  %v7715_v14 = vstv %s5443_s27  ;;  %v7717_v54 = vrot.slane %v5618_v28, %v5032_v52  ;;  %s6410_s27 = sld [smem:[#allocation11 + $0x1e]]  ;;  %s6456_s4 = sld [smem:[#allocation11 + $0x1f]] }
 0x325   : > { %v1965_v42 = vmul.f32 %v7713_v40, %v1961_v62  ;;  %v7714_v39 = vmov %v7713_v40  ;;  %v1971_v12 = vmul.f32 %v7715_v14, %v1961_v62  ;;  %v7716_v37 = vmov %v7715_v14  ;;  %v2021_v41 = vpop.permute.xlu1 %2020 }
 0x326   : > { %v1966_v34 = vmul.f32 %v7714_v39, %v1962_v26  ;;  %v1972_v56 = vmul.f32 %v7716_v37, %v1962_v26  ;;  %vm6240_vm3 = vcmp.eq.s32.totalorder %v7717_v54, 1  ;;  %v7720_v32 = vrot.slane %v5618_v28, %v5034_v53 }
 0x327   : > { %v1940_v19 = vadd.f32 %v1936_v11, %v1928_v8  ;;  %v1941_v31 = vadd.f32 %v1937_v0, %v1929_v63  ;;  %v6255_v62 = vsel %vm6220_vm12, 1, %v7539_v38  ;;  %v1975_v28 = vrot.slane %v1971_v12, 1 }
 0x328   : > { %vm6247_vm2 = vcmp.eq.s32.totalorder %v7720_v32, 1  ;;  %v1976_v26 = vrot.slane %v1972_v56, 1  ;;  %v1986_v40 = vsel %vm1985_vm10, %v1982_v48, %v1984_v61  ;;  %v1987_v11 = vsel %vm1985_vm10, %v1984_v61, %v1982_v48 }
 0x329   : > { %v1967_v0 = vadd.f32 %v1965_v42, %v1940_v19  ;;  %v1968_v8 = vadd.f32 %v1966_v34, %v1941_v31  ;;  %v2000_v63 = vsel %vm6160_vm5, %v1987_v11, 0.0  ;;  %v2001_v46 = vsel %vm6167_vm11, %v1986_v40, 0.0  ;;  %v2023_v34 = vpop.permute.xlu0 %2022  ;;  %vm6304_vm11 = vmand %vm1232_vm0, %vm1236_vm15 }
 0x32a   : > { %vm2101_vm8 = vcmp.lt.s32.totalorder %v5064_v45, 2  ;;  %v7723_v39 = vstv %s5484_s30  ;;  %v7725_v56 = vstv %s5573_s8  ;;  %vm6279_vm10 = vcmp.eq.s32.totalorder %v2108_v35, 1  ;;  %s6499_s30 = sld [smem:[#allocation11 + $0x9f]]  ;;  %s7773_s8 = smov 127  }
 0x32b   : > { %v2004_v14 = vmul.f32 %v7723_v39, %v2000_v63  ;;  %v7724_v12 = vmov %v7723_v39  ;;  %v2010_v54 = vmul.f32 %v7725_v56, %v2000_v63  ;;  %v7726_v32 = vmov %v7725_v56 }
 0x32c   : > { %v2005_v37 = vmul.f32 %v7724_v12, %v2001_v46  ;;  %v2011_v47 = vmul.f32 %v7726_v32, %v2001_v46  ;;  %vm6286_vm5 = vcmp.eq.s32.totalorder %v2112_v51, 1  ;;  %v1979_v48 = vadd.f32 %v1975_v28, %v1967_v0 }
 0x32d   : > { %v1980_v42 = vadd.f32 %v1976_v26, %v1968_v8  ;;  %v2317_v19 = vrot.slane %v6255_v62, %v5032_v52  ;;  %v2321_v35 = vrot.slane %v6255_v62, %v5034_v53  ;;  %v2014_v20 = vrot.slane %v2010_v54, 1  ;;  %v2060_v54 = vpop.permute.xlu1 %2059  ;;  %v2062_v32 = vpop.permute.xlu0 %2061 }
 0x32e   : > { %v2015_v51 = vrot.slane %v2011_v47, 1  ;;  %v2025_v31 = vsel %vm2024_vm6, %v2021_v41, %v2023_v34  ;;  %v2026_v61 = vsel %vm2024_vm6, %v2023_v34, %v2021_v41  ;;  %v2006_v26 = vadd.f32 %v2004_v14, %v1979_v48 }
 0x32f   : > { %v2007_v40 = vadd.f32 %v2005_v37, %v1980_v42  ;;  %v2039_v47 = vsel %vm6198_vm9, %v2026_v61, 0.0  ;;  %v2040_v11 = vsel %vm6205_vm4, %v2025_v31, 0.0  ;;  %vm2139_vm12 = vcmp.lt.s32.totalorder %v5064_v45, 1 }
 0x330   : > { %v7733_v41 = vstv %s5613_s22  ;;  %v7735_v46 = vstv %s5654_s23  ;;  %vm6324_vm6 = vcmp.eq.s32.totalorder %v2146_v1, 1  ;;  %vm6331_vm9 = vcmp.eq.s32.totalorder %v2150_v4, 1  ;;  %s6597_s22 = sld [smem:[#allocation11 + $0xa0]]  ;;  %s4274_s23 = smov 109  }
 0x331   : > { %v2043_v0 = vmul.f32 %v7733_v41, %v2039_v47  ;;  %v7734_v8 = vmov %v7733_v41  ;;  %v2049_v39 = vmul.f32 %v7735_v46, %v2039_v47  ;;  %v7736_v12 = vmov %v7735_v46 }
 0x332   : > { %v2044_v63 = vmul.f32 %v7734_v8, %v2040_v11  ;;  %v2050_v56 = vmul.f32 %v7736_v12, %v2040_v11  ;;  %v2018_v14 = vadd.f32 %v2014_v20, %v2006_v26  ;;  %v2019_v37 = vadd.f32 %v2015_v51, %v2007_v40  ;;  %v2100_v12 = vpop.permute.xlu0 %2099 }
 0x333   : > { %v2327_v48 = vstv %s6257_s18  ;;  %v6339_v1 = vsel %vm6304_vm11, 1, %v7539_v38  ;;  %v2053_v25 = vrot.slane %v2049_v39, 1  ;;  %v2064_v42 = vsel %vm2063_vm13, %v2060_v54, %v2062_v32  ;;  %v2098_v39 = vpop.permute.xlu1 %2097  ;;  %s6801_s18 = sld [smem:[#allocation11 + $0xa3]] }
 0x334   : > { %v2054_v4 = vrot.slane %v2050_v56, 1  ;;  %v2065_v34 = vsel %vm2063_vm13, %v2062_v32, %v2060_v54  ;;  %v2045_v20 = vadd.f32 %v2043_v0, %v2018_v14  ;;  %v2046_v51 = vadd.f32 %v2044_v63, %v2019_v37 }
 0x335   : > { %v2077_v31 = vsel %vm6240_vm3, %v2065_v34, 0.0  ;;  %v2078_v61 = vsel %vm6247_vm2, %v2064_v42, 0.0  ;;  %vm2195_vm4 = vcmp.lt.s32.totalorder %v5064_v45, 127  ;;  %v7741_v28 = vstv %s5726_s25  ;;  %s6691_s25 = sld [smem:[#allocation11 + $0x20]] }
 0x336   : > { %v2081_v26 = vmul.f32 %v7741_v28, %v2077_v31  ;;  %v7742_v40 = vmov %v7741_v28  ;;  %v7743_v11 = vstv %s5764_s29  ;;  %vm6363_vm13 = vcmp.eq.s32.totalorder %v2202_v33, 1  ;;  %s4275_s29 = smov 99  }
 0x337   : > { %v2082_v47 = vmul.f32 %v7742_v40, %v2078_v61  ;;  %v2087_v41 = vmul.f32 %v7743_v11, %v2077_v31  ;;  %v7744_v8 = vmov %v7743_v11  ;;  %vm6370_vm3 = vcmp.eq.s32.totalorder %v2206_v3, 1  ;;  %v2136_v11 = vpop.permute.xlu1 %2135 }
 0x338   : > { %v2088_v46 = vmul.f32 %v7744_v8, %v2078_v61  ;;  %v2057_v0 = vadd.f32 %v2053_v25, %v2045_v20  ;;  %v2058_v63 = vadd.f32 %v2054_v4, %v2046_v51  ;;  %v2333_v56 = vstv %s6294_s21  ;;  %v2138_v8 = vpop.permute.xlu0 %2137  ;;  %s6807_s21 = sld [smem:[#allocation11 + $0x24]] }
 0x339   : > { %v2356_v33 = vrot.slane %v6339_v1, %v5032_v52  ;;  %v2091_v54 = vrot.slane %v2087_v41, 1  ;;  %v2102_v44 = vsel %vm2101_vm8, %v2098_v39, %v2100_v12  ;;  %v2103_v3 = vsel %vm2101_vm8, %v2100_v12, %v2098_v39  ;;  %v6477_v12 = vpop.f32.mrb[0].mxu0 }
 0x33a   : > { %v2092_v14 = vrot.slane %v2088_v46, 1  ;;  %v2083_v37 = vadd.f32 %v2081_v26, %v2057_v0  ;;  %v2084_v32 = vadd.f32 %v2082_v47, %v2058_v63  ;;  %v2115_v25 = vsel %vm6279_vm10, %v2103_v3, 0.0  ;;  %984 = vrot.lane.b32.xlu1 %v6477_v12, %s7773_s8 }
 0x33b   : > { %v2116_v4 = vsel %vm6286_vm5, %v2102_v44, 0.0  ;;  %vm2233_vm2 = vcmp.lt.s32.totalorder %v5064_v45, 126  ;;  %v7749_v42 = vstv %s5802_s17  ;;  %v7751_v31 = vstv %s5841_s1  ;;  %vm6425_vm5 = vmand %vm1232_vm0, %vm7409_vm1  ;;  %s6715_s17 = sld [smem:[#allocation11 + $0xa1]]  ;;  %s4277_s1 = smov 97  }
 0x33c   : > { %v2119_v34 = vmul.f32 %v7749_v42, %v2115_v25  ;;  %v7750_v20 = vmov %v7749_v42  ;;  %v2125_v61 = vmul.f32 %v7751_v31, %v2115_v25  ;;  %v7752_v28 = vmov %v7751_v31 }
 0x33d   : > { %v2120_v51 = vmul.f32 %v7750_v20, %v2116_v4  ;;  %v2126_v40 = vmul.f32 %v7752_v28, %v2116_v4  ;;  %vm6397_vm8 = vcmp.eq.s32.totalorder %v2240_v36, 1  ;;  %v7755_v59 = vrot.slane %v6027_v49, %v5034_v53  ;;  %v2192_v28 = vpop.permute.xlu1 %2191 }
 0x33e   : > { %v2095_v47 = vadd.f32 %v2091_v54, %v2083_v37  ;;  %v2096_v41 = vadd.f32 %v2092_v14, %v2084_v32  ;;  %v2360_v36 = vrot.slane %v6339_v1, %v5034_v53  ;;  %v2366_v46 = vstv %s6341_s24  ;;  %s6809_s24 = sld [smem:[#allocation11 + $0xa4]] }
 0x33f   : > { %vm6404_vm10 = vcmp.eq.s32.totalorder %v7755_v59, 1  ;;  %v2129_v49 = vrot.slane %v2125_v61, 1  ;;  %v2130_v39 = vrot.slane %v2126_v40, 1  ;;  %v2140_v0 = vsel %vm2139_vm12, %v2136_v11, %v2138_v8 }
 0x340   : > { %v2141_v63 = vsel %vm2139_vm12, %v2138_v8, %v2136_v11  ;;  %v2121_v54 = vadd.f32 %v2119_v34, %v2095_v47  ;;  %v2122_v14 = vadd.f32 %v2120_v51, %v2096_v41  ;;  %v2154_v3 = vsel %vm6331_vm9, %v2140_v0, 0.0  ;;  %v2194_v11 = vpop.permute.xlu0 %2193 }
 0x341   : > { %v2153_v44 = vsel %vm6324_vm6, %v2141_v63, 0.0  ;;  %vm2271_vm11 = vcmp.lt.s32.totalorder %v5064_v45, 125  ;;  %v7760_v37 = vstv %s5845_s2  ;;  %v7762_v42 = vstv %s5881_s20  ;;  %s4278_s2 = smov 96   ;;  %s4281_s20 = smov 93  }
 0x342   : > { %v2157_v32 = vmul.f32 %v7760_v37, %v2153_v44  ;;  %v7761_v25 = vmov %v7760_v37  ;;  %v2163_v20 = vmul.f32 %v7762_v42, %v2153_v44  ;;  %v7763_v31 = vmov %v7762_v42 }
 0x343   : > { %v2158_v4 = vmul.f32 %v7761_v25, %v2154_v3  ;;  %v2164_v61 = vmul.f32 %v7763_v31, %v2154_v3  ;;  %vm6445_vm12 = vcmp.eq.s32.totalorder %v2278_v18, 1  ;;  %v7766_v57 = vrot.slane %v6136_v7, %v5034_v53  ;;  %v6501_v25 = vpop.f32.mrb[1].mxu0 }
 0x344   : > { %v2133_v51 = vadd.f32 %v2129_v49, %v2121_v54  ;;  %v2134_v40 = vadd.f32 %v2130_v39, %v2122_v14  ;;  %v6461_v18 = vsel %vm6425_vm5, 1, %v7539_v38  ;;  %v6466_v59 = vsel %vm1232_vm0, 1, %v7539_v38  ;;  %v2230_v54 = vpop.permute.xlu1 %2229  ;;  %v2232_v62 = vpop.permute.xlu0 %2231  ;;  %980 = vrot.lane.b32.xlu1 %v6501_v25, %s7773_s8 }
 0x345   : > { %vm6452_vm6 = vcmp.eq.s32.totalorder %v7766_v57, 1  ;;  %v2167_v7 = vrot.slane %v2163_v20, 1  ;;  %v2168_v47 = vrot.slane %v2164_v61, 1  ;;  %v2196_v41 = vsel %vm2195_vm4, %v2192_v28, %v2194_v11  ;;  %v6508_v42 = vpop.f32.mrb[2].mxu0 }
 0x346   : > { %v2197_v8 = vsel %vm2195_vm4, %v2194_v11, %v2192_v28  ;;  %v2159_v49 = vadd.f32 %v2157_v32, %v2133_v51  ;;  %v2160_v39 = vadd.f32 %v2158_v4, %v2134_v40  ;;  %v2209_v0 = vsel %vm6363_vm13, %v2196_v41, 0.0  ;;  %986 = vrot.lane.b32.xlu0 %v6508_v42, %s7773_s8 }
 0x347   : > { %v2210_v63 = vsel %vm6370_vm3, %v2197_v8, 0.0  ;;  %vm2309_vm9 = vcmp.lt.s32.totalorder %v5064_v45, 115  ;;  %vm6482_vm5 = vcmp.eq.s32.totalorder %v2317_v19, 1  ;;  %vm6489_vm4 = vcmp.eq.s32.totalorder %v2321_v35, 1 }
 0x348   : > { %v2372_v30 = vstv %s6408_s13  ;;  %v2395_v44 = vrot.slane %v6461_v18, %v5032_v52  ;;  %v2399_v3 = vrot.slane %v6461_v18, %v5034_v53  ;;  %v2405_v37 = vstv %s6410_s27  ;;  %v6520_v18 = vpop.f32.mrb[3].mxu0  ;;  %s6814_s13 = sld [smem:[#allocation11 + $0x25]] }
 0x349   : > { %v2171_v19 = vadd.f32 %v2167_v7, %v2159_v49  ;;  %v2172_v32 = vadd.f32 %v2168_v47, %v2160_v39  ;;  %v2411_v35 = vstv %s6415_s15  ;;  %v2433_v4 = vrot.slane %v6466_v59, %v5032_v52  ;;  %s6816_s27 = sld [smem:[#allocation11 + $0xa5]]  ;;  %s6828_s15 = sld [smem:[#allocation11 + $0x26]] }
 0x34a   : > { %v7774_v20 = vstv %s5990_s14  ;;  %v2234_v57 = vsel %vm2233_vm2, %v2230_v54, %v2232_v62  ;;  %v2235_v51 = vsel %vm2233_vm2, %v2232_v62, %v2230_v54  ;;  %vm2348_vm13 = vcmp.lt.s32.totalorder %v5064_v45, 114  ;;  %982 = vrot.lane.b32.xlu0 %v6520_v18, %s7773_s8  ;;  %s4286_s14 = smov 79  }
 0x34b   : > { %v2219_v31 = vmul.f32 %v7774_v20, %v2209_v0  ;;  %v7775_v61 = vmov %v7774_v20  ;;  %v2177_v40 = vadd.f32 %v5129_v50, %v2171_v19  ;;  %v2178_v11 = vadd.f32 %v5152_v58, %v2172_v32  ;;  %v2268_v58 = vpop.permute.xlu1 %2267  ;;  %v2270_v20 = vpop.permute.xlu0 %2269 }
 0x34c   : > { %v2220_v28 = vmul.f32 %v7775_v61, %v2210_v63  ;;  %v2247_v7 = vsel %vm6397_vm8, %v2234_v57, 0.0  ;;  %v2248_v47 = vsel %vm6404_vm10, %v2235_v51, 0.0  ;;  %v7776_v41 = vstv %s5953_s11  ;;  %s4283_s11 = smov 82  }
 0x34d   : > { %v2213_v8 = vmul.f32 %v7776_v41, %v2209_v0  ;;  %v7777_v50 = vmov %v7776_v41  ;;  %vm6536_vm3 = vcmp.eq.s32.totalorder %v2356_v33, 1  ;;  %vm6543_vm2 = vcmp.eq.s32.totalorder %v2360_v36, 1 }
 0x34e   : > { %v2214_v49 = vmul.f32 %v7777_v50, %v2210_v63  ;;  %v2437_v26 = vrot.slane %v6466_v59, %v5034_v53  ;;  %v2443_v0 = vstv %s6456_s4  ;;  %v7782_v63 = vrot.slane %v5114_v27, 1  ;;  %s6845_s4 = sld [smem:[#allocation11 + $0xa6]] }
 0x34f   : > { %v7783_v19 = vrot.slane %v5117_v24, 1  ;;  %v7784_v32 = vstv %s6065_s9  ;;  %vm7786_vm8 = vcmp.lt.s32.totalorder %v5006_v2, 15  ;;  %v2223_v24 = vrot.slane %v2219_v31, 1  ;;  %s4288_s9 = smov 77  }
 0x350   : > { %v2189_v54 = vadd.f32 %v7782_v63, %v2177_v40  ;;  %v2257_v1 = vmul.f32 %v7784_v32, %v2247_v7  ;;  %v7785_v36 = vmov %v7784_v32  ;;  %vm6564_vm10 = vmand %vm1232_vm0, %vm7786_vm8  ;;  %v2224_v61 = vrot.slane %v2220_v28, 1  ;;  %v6583_v32 = vpop.f32.mrb[4].mxu0 }
 0x351   : > { %v2190_v33 = vadd.f32 %v7783_v19, %v2178_v11  ;;  %v2258_v62 = vmul.f32 %v7785_v36, %v2248_v47  ;;  %v2272_v57 = vsel %vm2271_vm11, %v2268_v58, %v2270_v20  ;;  %v2273_v51 = vsel %vm2271_vm11, %v2270_v20, %v2268_v58  ;;  %992 = vrot.lane.b32.xlu1 %v6583_v32, %s7773_s8 }
 0x352   : > { %v2215_v40 = vadd.f32 %v2213_v8, %v2189_v54  ;;  %v2285_v41 = vsel %vm6445_vm12, %v2272_v57, 0.0  ;;  %v2286_v50 = vsel %vm6452_vm6, %v2273_v51, 0.0  ;;  %vm2387_vm8 = vcmp.lt.s32.totalorder %v5064_v45, 113  ;;  %v2306_v8 = vpop.permute.xlu1 %2305 }
 0x353   : > { %v2216_v11 = vadd.f32 %v2214_v49, %v2190_v33  ;;  %v7789_v31 = vstv %s6029_s0  ;;  %vm6585_vm11 = vcmp.eq.s32.totalorder %v2395_v44, 1  ;;  %vm6589_vm1 = vcmp.eq.s32.totalorder %v2399_v3, 1  ;;  %v6599_v44 = vpop.f32.mrb[5].mxu0  ;;  %v2308_v3 = vpop.permute.xlu0 %2307  ;;  %s4287_s0 = smov 78  }
 0x354   : > { %v2251_v28 = vmul.f32 %v7789_v31, %v2247_v7  ;;  %v7790_v63 = vmov %v7789_v31  ;;  %v2449_v34 = vstv %s6499_s30  ;;  %v2468_v7 = vsel %vm6564_vm10, 1, %v7539_v38  ;;  %v6603_v36 = vpop.f32.mrb[6].mxu0  ;;  %s6847_s30 = sld [smem:[#allocation11 + $0x27]] }
 0x355   : > { %v2252_v19 = vmul.f32 %v7790_v63, %v2248_v47  ;;  %v2227_v47 = vadd.f32 %v2223_v24, %v2215_v40  ;;  %v2228_v58 = vadd.f32 %v2224_v61, %v2216_v11  ;;  %v2261_v54 = vrot.slane %v2257_v1, 1  ;;  %v6613_v40 = vpop.f32.mrb[7].mxu0  ;;  %994 = vrot.lane.b32.xlu0 %v6603_v36, %s7773_s8  ;;  %988 = vrot.lane.b32.xlu1 %v6599_v44, %s7773_s8 }
 0x356   : > { %v2262_v33 = vrot.slane %v2258_v62, 1  ;;  %v7795_v20 = vstv %s6173_s7  ;;  %v2310_v24 = vsel %vm2309_vm9, %v2306_v8, %v2308_v3  ;;  %v2311_v1 = vsel %vm2309_vm9, %v2308_v3, %v2306_v8  ;;  %s6797_s7 = sld [smem:[#allocation11 + $0x23]] }
 0x357   : > { %v2295_v57 = vmul.f32 %v7795_v20, %v2285_v41  ;;  %v7796_v27 = vmov %v7795_v20  ;;  %v2253_v62 = vadd.f32 %v2251_v28, %v2227_v47  ;;  %v2254_v61 = vadd.f32 %v2252_v19, %v2228_v58  ;;  %v2345_v19 = vpop.permute.xlu1 %2344 }
 0x358   : > { %v2296_v51 = vmul.f32 %v7796_v27, %v2286_v50  ;;  %v2324_v11 = vsel %vm6482_vm5, %v2310_v24, 0.0  ;;  %v2325_v31 = vsel %vm6489_vm4, %v2311_v1, 0.0  ;;  %vm2426_vm12 = vcmp.lt.s32.totalorder %v5064_v45, 112 }
 0x359   : > { %v7797_v63 = vstv %s6138_s6  ;;  %vm6629_vm6 = vcmp.eq.s32.totalorder %v2433_v4, 1  ;;  %vm6633_vm9 = vcmp.eq.s32.totalorder %v2437_v26, 1  ;;  %v2472_v43 = vrot.slane %v2468_v7, %v5032_v52  ;;  %990 = vrot.lane.b32.xlu0 %v6613_v40, %s7773_s8  ;;  %2538 = vrot.lane.b32.xlu1 %v4955_v13, %s4274_s23  ;;  %s6792_s6 = sld [smem:[#allocation11 + $0x22]]  ;;  %s6861_s8 = sld [smem:[#allocation11 + $0xa7]] }
 0x35a   : > { %v2289_v20 = vmul.f32 %v7797_v63, %v2285_v41  ;;  %v7798_v8 = vmov %v7797_v63  ;;  %v2476_v58 = vrot.slane %v2468_v7, %v5034_v53  ;;  %v2265_v3 = vadd.f32 %v2261_v54, %v2253_v62 }
 0x35b   : > { %v2290_v28 = vmul.f32 %v7798_v8, %v2286_v50  ;;  %v2266_v41 = vadd.f32 %v2262_v33, %v2254_v61  ;;  %v2334_v59 = vmul.f32 %v2333_v56, %v2324_v11  ;;  %v2335_v4 = vmul.f32 %v2333_v56, %v2325_v31  ;;  %v2347_v50 = vpop.permute.xlu0 %2346  ;;  %v2384_v62 = vpop.permute.xlu1 %2383 }
 0x35c   : > { %v2299_v26 = vrot.slane %v2295_v57, 1  ;;  %v2300_v27 = vrot.slane %v2296_v51, 1  ;;  %v2349_v24 = vsel %vm2348_vm13, %v2345_v19, %v2347_v50  ;;  %v2350_v7 = vsel %vm2348_vm13, %v2347_v50, %v2345_v19 }
 0x35d   : > { %v2291_v54 = vadd.f32 %v2289_v20, %v2265_v3  ;;  %v2292_v33 = vadd.f32 %v2290_v28, %v2266_v41  ;;  %v2363_v1 = vsel %vm6536_vm3, %v2349_v24, 0.0  ;;  %v2364_v56 = vsel %vm6543_vm2, %v2350_v7, 0.0  ;;  %2540 = vrot.lane.b32.xlu0 %v4958_v17, %s4274_s23  ;;  %2577 = vrot.lane.b32.xlu1 %v4955_v13, %s4275_s29  ;;  %s6887_s23 = sld [smem:[#allocation11 + $0xa8]] }
 0x35e   : > { %vm2464_vm5 = vcmp.lt.s32.totalorder %v5064_v45, 111  ;;  %v2328_v57 = vmul.f32 %v2327_v48, %v2324_v11  ;;  %v2329_v51 = vmul.f32 %v2327_v48, %v2325_v31  ;;  %vm6660_vm4 = vcmp.eq.s32.totalorder %v2472_v43, 1 }
 0x35f   : > { %vm6664_vm13 = vcmp.eq.s32.totalorder %v2476_v58, 1  ;;  %v2488_v39 = vstv %s6597_s22  ;;  %v2303_v55 = vadd.f32 %v2299_v26, %v2291_v54  ;;  %v2304_v20 = vadd.f32 %v2300_v27, %v2292_v33  ;;  %v2386_v48 = vpop.permute.xlu0 %2385  ;;  %v2423_v50 = vpop.permute.xlu1 %2422  ;;  %s6879_s22 = sld [smem:[#allocation11 + $0x28]] }
 0x360   : > { %v2338_v8 = vrot.slane %v2334_v59, 1  ;;  %v2339_v28 = vrot.slane %v2335_v4, 1  ;;  %vm7807_vm3 = vcmp.lt.s32.totalorder %v5006_v2, 14  ;;  %v2373_v11 = vmul.f32 %v2372_v30, %v2363_v1 }
 0x361   : > { %vm2506_vm2 = vmand %vm1232_vm0, %vm7807_vm3  ;;  %v2374_v31 = vmul.f32 %v2372_v30, %v2364_v56  ;;  %v2388_v19 = vsel %vm2387_vm8, %v2384_v62, %v2386_v48  ;;  %v2389_v43 = vsel %vm2387_vm8, %v2386_v48, %v2384_v62  ;;  %v2330_v58 = vadd.f32 %v2328_v57, %v2303_v55  ;;  %2579 = vrot.lane.b32.xlu0 %v4958_v17, %s4275_s29  ;;  %s7131_s29 = sld [smem:[#allocation11 + $0xa9]] }
 0x362   : > { %v2331_v3 = vadd.f32 %v2329_v51, %v2304_v20  ;;  %v2402_v41 = vsel %vm6585_vm11, %v2388_v19, 0.0  ;;  %v2403_v59 = vsel %vm6589_vm1, %v2389_v43, 0.0  ;;  %v2367_v30 = vmul.f32 %v2366_v46, %v2363_v1  ;;  %2616 = vrot.lane.b32.xlu1 %v4955_v13, %s4276_s3  ;;  %vm2545_vm11 = vmand %vm1232_vm0, %vm1240_vm7 }
 0x363   : > { %v2368_v4 = vmul.f32 %v2366_v46, %v2364_v56  ;;  %vm2503_vm10 = vcmp.lt.s32.totalorder %v5064_v45, 110  ;;  %v2507_v26 = vsel %vm2506_vm2, 1, %v7539_v38  ;;  %v2342_v27 = vadd.f32 %v2338_v8, %v2330_v58  ;;  %v2425_v7 = vpop.permute.xlu0 %2424  ;;  %v2461_v20 = vpop.permute.xlu1 %2460 }
 0x364   : > { %v2343_v24 = vadd.f32 %v2339_v28, %v2331_v3  ;;  %v2412_v49 = vmul.f32 %v2411_v35, %v2402_v41  ;;  %v2413_v60 = vmul.f32 %v2411_v35, %v2403_v59  ;;  %v2377_v46 = vrot.slane %v2373_v11, 1 }
 0x365   : > { %v2378_v54 = vrot.slane %v2374_v31, 1  ;;  %v2427_v33 = vsel %vm2426_vm12, %v2423_v50, %v2425_v7  ;;  %v2428_v1 = vsel %vm2426_vm12, %v2425_v7, %v2423_v50  ;;  %v2369_v56 = vadd.f32 %v2367_v30, %v2342_v27  ;;  %2618 = vrot.lane.b32.xlu0 %v4958_v17, %s4276_s3  ;;  %s7178_s3 = sld [smem:[#allocation11 + $0xaa]] }
 0x366   : > { %v2370_v57 = vadd.f32 %v2368_v4, %v2343_v24  ;;  %v2440_v51 = vsel %vm6629_vm6, %v2427_v33, 0.0  ;;  %v2441_v35 = vsel %vm6633_vm9, %v2428_v1, 0.0  ;;  %v2406_v62 = vmul.f32 %v2405_v37, %v2402_v41  ;;  %2655 = vrot.lane.b32.xlu1 %v4955_v13, %s4277_s1 }
 0x367   : > { %v2407_v55 = vmul.f32 %v2405_v37, %v2403_v59  ;;  %v2511_v8 = vrot.slane %v2507_v26, %v5032_v52  ;;  %v2515_v28 = vrot.slane %v2507_v26, %v5034_v53  ;;  %v2381_v48 = vadd.f32 %v2377_v46, %v2369_v56  ;;  %v2463_v14 = vpop.permute.xlu0 %2462  ;;  %v2500_v4 = vpop.permute.xlu1 %2499 }
 0x368   : > { %v2382_v11 = vadd.f32 %v2378_v54, %v2370_v57  ;;  %v2416_v47 = vrot.slane %v2412_v49, 1  ;;  %v2417_v31 = vrot.slane %v2413_v60, 1  ;;  %v2450_v19 = vmul.f32 %v2449_v34, %v2440_v51 }
 0x369   : > { %v2451_v37 = vmul.f32 %v2449_v34, %v2441_v35  ;;  %v2465_v43 = vsel %vm2464_vm5, %v2461_v20, %v2463_v14  ;;  %v2466_v58 = vsel %vm2464_vm5, %v2463_v14, %v2461_v20  ;;  %v2408_v3 = vadd.f32 %v2406_v62, %v2381_v48  ;;  %2657 = vrot.lane.b32.xlu0 %v4958_v17, %s4277_s1  ;;  %s7194_s1 = sld [smem:[#allocation11 + $0xab]] }
 0x36a   : > { %v2409_v41 = vadd.f32 %v2407_v55, %v2382_v11  ;;  %v2479_v59 = vsel %vm6660_vm4, %v2465_v43, 0.0  ;;  %v2480_v34 = vsel %vm6664_vm13, %v2466_v58, 0.0  ;;  %v2482_v30 = vstv %s6691_s25  ;;  %2694 = vrot.lane.b32.xlu1 %v4955_v13, %s4278_s2  ;;  %s7117_s25 = sld [smem:[#allocation11 + $0x29]] }
 0x36b   : > { %vm6734_vm1 = vcmp.eq.s32.totalorder %v2511_v8, 1  ;;  %vm6738_vm8 = vcmp.eq.s32.totalorder %v2515_v28, 1  ;;  %v2420_v27 = vadd.f32 %v2416_v47, %v2408_v3  ;;  %v2444_v49 = vmul.f32 %v2443_v0, %v2440_v51  ;;  %v2502_v63 = vpop.permute.xlu0 %2501 }
 0x36c   : > { %v2421_v24 = vadd.f32 %v2417_v31, %v2409_v41  ;;  %v2445_v61 = vmul.f32 %v2443_v0, %v2441_v35  ;;  %v2489_v60 = vmul.f32 %v2488_v39, %v2479_v59  ;;  %v2490_v7 = vmul.f32 %v2488_v39, %v2480_v34 }
 0x36d   : > { %v2504_v46 = vsel %vm2503_vm10, %v2500_v4, %v2502_v63  ;;  %v2505_v54 = vsel %vm2503_vm10, %v2502_v63, %v2500_v4  ;;  %v2446_v33 = vadd.f32 %v2444_v49, %v2420_v27  ;;  %v2454_v56 = vrot.slane %v2450_v19, 1  ;;  %2696 = vrot.lane.b32.xlu0 %v4958_v17, %s4278_s2  ;;  %s7205_s2 = sld [smem:[#allocation11 + $0x2c]] }
 0x36e   : > { %v2447_v1 = vadd.f32 %v2445_v61, %v2421_v24  ;;  %v2455_v57 = vrot.slane %v2451_v37, 1  ;;  %v2527_v0 = vstv %s6715_s17  ;;  %v2518_v51 = vsel %vm6734_vm1, %v2504_v46, 0.0  ;;  %2732 = vrot.lane.b32.xlu1 %v4955_v13, %s4279_s16  ;;  %s7173_s17 = sld [smem:[#allocation11 + $0x2a]] }
 0x36f   : > { %v2519_v39 = vsel %vm6738_vm8, %v2505_v54, 0.0  ;;  %v2458_v35 = vadd.f32 %v2454_v56, %v2446_v33  ;;  %v2483_v55 = vmul.f32 %v2482_v30, %v2479_v59  ;;  %v2484_v20 = vmul.f32 %v2482_v30, %v2480_v34 }
 0x370   : > { %v2459_v62 = vadd.f32 %v2455_v57, %v2447_v1  ;;  %v2493_v8 = vrot.slane %v2489_v60, 1  ;;  %v2494_v28 = vrot.slane %v2490_v7, 1  ;;  %v2521_v48 = vstv %s6726_s28  ;;  %s7191_s28 = sld [smem:[#allocation11 + $0x2b]] }
 0x371   : > { %v2485_v11 = vadd.f32 %v2483_v55, %v2458_v35  ;;  %v2528_v31 = vmul.f32 %v2527_v0, %v2518_v51  ;;  %v2529_v14 = vmul.f32 %v2527_v0, %v2519_v39  ;;  %v2522_v43 = vmul.f32 %v2521_v48, %v2518_v51  ;;  %2734 = vrot.lane.b32.xlu0 %v4958_v17, %s4279_s16  ;;  %s7208_s16 = sld [smem:[#allocation11 + $0xac]] }
 0x372   : > { %v2486_v47 = vadd.f32 %v2484_v20, %v2459_v62  ;;  %v2523_v58 = vmul.f32 %v2521_v48, %v2519_v39  ;;  %2771 = vrot.lane.b32.xlu1 %v4955_v13, %s4280_s19  ;;  %vm1233_vm12 = vcmp.lt.s32.totalorder %v6175_v23, 14  ;;  %v2560_v1 = vstv %s6792_s6 }
 0x373   : > { %v2497_v19 = vadd.f32 %v2493_v8, %v2485_v11  ;;  %v2532_v59 = vrot.slane %v2528_v31, 1  ;;  %v2533_v34 = vrot.slane %v2529_v14, 1  ;;  %vm2584_vm0 = vmand %vm1233_vm12, %vm1235_vm14  ;;  %vm7814_vm9 = vcmp.ge.s32.totalorder %v5006_v2, 1 }
 0x374   : > { %v2498_v37 = vadd.f32 %v2494_v28, %v2486_v47  ;;  %v2585_v7 = vsel %vm2584_vm0, 1, %v7539_v38  ;;  %vm6824_vm6 = vmand %vm1233_vm12, %vm1236_vm15  ;;  %vm2542_vm4 = vcmp.lt.s32.totalorder %v5064_v45, 109  ;;  %v2566_v57 = vstv %s6795_s5 }
 0x375   : > { %v2524_v3 = vadd.f32 %v2522_v43, %v2497_v19  ;;  %2773 = vrot.lane.b32.xlu0 %v4958_v17, %s4280_s19  ;;  %vm6836_vm5 = vmand %vm1233_vm12, %vm7814_vm9  ;;  %v2589_v0 = vrot.slane %v2585_v7, %v5032_v52  ;;  %v2599_v51 = vstv %s6797_s7  ;;  %v2624_v20 = vsel %vm6824_vm6, 1, %v7539_v38  ;;  %s7217_s19 = sld [smem:[#allocation11 + $0x2d]]  ;;  %s7865_s7 = sld [smem:[#allocation31_spill]] }
 0x376   : > { %v2525_v41 = vadd.f32 %v2523_v58, %v2498_v37  ;;  %2810 = vrot.lane.b32.xlu1 %v4955_v13, %s4281_s20  ;;  %v2605_v28 = vstv %s6801_s18  ;;  %v2638_v48 = vstv %s6807_s21  ;;  %v6869_v11 = vsel %vm6836_vm5, 1, %v7539_v38  ;;  %s7870_s18 = sld [smem:[#allocation34_spill]] }
 0x377   : > { %v6766_v30 = vadd.f32 %v2532_v59, %v2524_v3  ;;  %vm7821_vm2 = vcmp.lt.s32.totalorder %v5006_v2, 15  ;;  %v6885_v19 = vsel %vm1233_vm12, 1, %v7539_v38  ;;  %v2628_v43 = vrot.slane %v2624_v20, %v5032_v52 }
 0x378   : > { %v6768_v4 = vadd.f32 %v2533_v34, %v2525_v41  ;;  %vm6875_vm10 = vmand %vm1233_vm12, %vm7821_vm2  ;;  %v2632_v58 = vrot.slane %v2624_v20, %v5034_v53  ;;  %v2677_v3 = vstv %s6814_s13  ;;  %v2683_v41 = vstv %s6816_s27 }
 0x379   : > { %2812 = vrot.lane.b32.xlu0 %v4958_v17, %s4281_s20  ;;  %vm2581_vm1 = vcmp.lt.s32.totalorder %v5064_v45, 99  ;;  %vm6900_vm8 = vcmp.eq.s32.totalorder %v2589_v0, 1  ;;  %vm7828_vm0 = vcmp.lt.s32.totalorder %v5006_v2, 14  ;;  %vm2620_vm9 = vcmp.lt.s32.totalorder %v5064_v45, 98  ;;  %s7220_s20 = sld [smem:[#allocation11 + $0xad]] }
 0x37a   : > { %2849 = vrot.lane.b32.xlu1 %v4955_v13, %s4282_s10  ;;  %vm6922_vm6 = vmand %vm1233_vm12, %vm7828_vm0  ;;  %v2760_v0 = vstv %s6861_s8  ;;  %vm6934_vm5 = vcmp.eq.s32.totalorder %v2628_v43, 1  ;;  %vm6938_vm2 = vcmp.eq.s32.totalorder %v2632_v58, 1 }
 0x37b   : > { %s3629_s21 = sshll.u32 %s7865_s7, 10 }
 0x37c   : > { %p7874_p8 = scmp.ne.s32.totalorder %s7870_s18, 0 }
 0x37d   : > { %2851 = vrot.lane.b32.xlu0 %v4958_v17, %s4282_s10  ;;  %s7231_s10 = sld [smem:[#allocation11 + $0x2e]] }
 0x37e   : > { %2888 = vrot.lane.b32.xlu1 %v4955_v13, %s4283_s11 }
 0x381   : > { %2890 = vrot.lane.b32.xlu0 %v4958_v17, %s4283_s11  ;;  %s7234_s11 = sld [smem:[#allocation11 + $0xae]] }
 0x382   : > { %2927 = vrot.lane.b32.xlu1 %v4955_v13, %s4284_s12 }
 0x385   : > { %2929 = vrot.lane.b32.xlu0 %v4958_v17, %s4284_s12  ;;  %s7245_s12 = sld [smem:[#allocation11 + $0x2f]] }
 0x386   : > { %2966 = vrot.lane.b32.xlu1 %v4955_v13, %s4285_s26 }
 0x389   : > { %2968 = vrot.lane.b32.xlu0 %v4958_v17, %s4285_s26  ;;  %s7248_s26 = sld [smem:[#allocation11 + $0xaf]] }
 0x38a   : > { %3004 = vrot.lane.b32.xlu1 %v4955_v13, %s4286_s14 }
 0x38d   : > { %3006 = vrot.lane.b32.xlu0 %v4958_v17, %s4286_s14  ;;  %s7259_s14 = sld [smem:[#allocation11 + $0x30]] }
 0x38e   : > { %3043 = vrot.lane.b32.xlu1 %v4955_v13, %s4287_s0 }
 0x391   : > { %3045 = vrot.lane.b32.xlu0 %v4958_v17, %s4287_s0  ;;  %s3604_s0 = sld [smem:[#allocation11 + $0xb0]] }
 0x392   : > { %3082 = vrot.lane.b32.xlu1 %v4955_v13, %s4288_s9  ;;  %v2546_v13 = vsel %vm2545_vm11, 1, %v7539_v38 }
 0x393   : > { %v2554_v61 = vrot.slane %v2546_v13, %v5034_v53 }
 0x395   : > { %3084 = vrot.lane.b32.xlu0 %v4958_v17, %s4288_s9  ;;  %vm6854_vm3 = vcmp.eq.s32.totalorder %v2554_v61, 1  ;;  %s7862_s9 = sld [smem:[#allocation36_spill]] }
 0x39b   : > { %s7863_s6 = sshll.u32 %s7862_s9, 6 }
 0x39c   : > { %s7274_s5 = scalar_lea.vmem [#allocation18], %s7863_s6 }
 0x3ac   : > { %v985_v50 = vpop.permute.xlu1 %984 }
 0x3ad   : > { %v1006_v26 = vadd.f32 %v6477_v12, %v985_v50  ;;  %v2550_v12 = vrot.slane %v2546_v13, %v5032_v52 }
 0x3af   : > { %v3488_v27 = vmul.f32 -1.442695, %v1006_v26  ;;  %vm6850_vm13 = vcmp.eq.s32.totalorder %v2550_v12, 1 }
 0x3b1   : > { %3869 = vpow2.f32 %v3488_v27  ;;  %v2705_v27 = vrot.slane %v6885_v19, %v5032_v52 }
 0x3b6   : > { %v981_v49 = vpop.permute.xlu1 %980 }
 0x3b7   : > { %v1004_v60 = vadd.f32 %v981_v49, %v6501_v25 }
 0x3b8   : > { %v987_v17 = vpop.permute.xlu0 %986 }
 0x3b9   : > { %v1007_v24 = vadd.f32 %v6508_v42, %v987_v17  ;;  %v3486_v54 = vmul.f32 -1.442695, %v1004_v60  ;;  %v2671_v17 = vrot.slane %v6869_v11, %v5034_v53  ;;  %v2721_v42 = vstv %s6845_s4 }
 0x3bb   : > { %v3489_v63 = vmul.f32 -1.442695, %v1007_v24  ;;  %v2715_v24 = vstv %s6828_s15  ;;  %v3870_v49 = vpop.eup %3869  ;;  %s7873_s15 = sld [smem:[#allocation62_spill]] }
 0x3bc   : > { %v983_v46 = vpop.permute.xlu0 %982 }
 0x3bd   : > { %3871 = vpow2.f32 %v3489_v63  ;;  %v1005_v33 = vadd.f32 %v983_v46, %v6520_v18  ;;  %v2593_v18 = vrot.slane %v2585_v7, %v5034_v53  ;;  %v2709_v63 = vrot.slane %v6885_v19, %v5034_v53 }
 0x3be   : > { %3873 = vpow2.f32 %v3486_v54  ;;  %v1038_v7 = vadd.f32 1.0, %v3870_v49  ;;  %v2754_v54 = vstv %s6847_s30  ;;  %s3286_s30 = scalar_lea.sflag [#allocation4], %s7862_s9 }
 0x3bf   : > { %v3487_v39 = vmul.f32 -1.442695, %v1005_v33  ;;  %vm6904_vm11 = vcmp.eq.s32.totalorder %v2593_v18, 1 }
 0x3c1   : > { %3875 = vpow2.f32 %v3487_v39  ;;  %s7299_s4 = scalar_lea.hbm %s7873_s15, %s3629_s21 }
 0x3c3   : > { %v993_v56 = vpop.permute.xlu1 %992 }
 0x3c4   : > { %v1010_v35 = vadd.f32 %v6583_v32, %v993_v56  ;;  %v2644_v32 = vstv %s6809_s24  ;;  %s3299_s24 = sshll.u32 %s7274_s5, 4  ;;  %s7301_s24 = int_to_ptr.vmem [resolvable:$true] %s3299_s24 }
 0x3c5   : > { %s4135_s8 = scalar_lea.vmem %s7301_s24, 1024 }
 0x3c6   : > { %v3492_v31 = vmul.f32 -1.442695, %v1010_v35  ;;  %v7047_v35 = vld [vmem:[#allocation6] ss:$2 sm:$0x3]  ;;  %p4136_p4 = scmp.ne.s32.totalorder %s7301_s24, %s4135_s8 }
 0x3c7   : > { %v995_v8 = vpop.permute.xlu0 %994  ;;  %v989_v37 = vpop.permute.xlu1 %988 }
 0x3c8   : > { %v1011_v14 = vadd.f32 %v6603_v36, %v995_v8  ;;  %3877 = vpow2.f32 %v3492_v31  ;;  %v1008_v34 = vadd.f32 %v989_v37, %v6599_v44  ;;  %v6898_v36 = vsel %vm6875_vm10, 1, %v7539_v38  ;;  %v3872_v33 = vpop.eup %3871  ;;  %vm6984_vm10 = vmand %vm1233_vm12, %vm1240_vm7  ;;  %p4137_p11 = pnand %p4136_p4, %p7874_p8 }
 0x3c9   : > { %v2667_v44 = vrot.slane %v6869_v11, %v5032_v52  ;;  %v2748_v56 = vrot.slane %v6898_v36, %v5034_v53  ;;  %v1039_v18 = vadd.f32 1.0, %v3872_v33  ;;  %v6945_v8 = vsel %vm6922_vm6, 1, %v7539_v38  ;;  %v3874_v47 = vpop.eup %3873 }
 0x3ca   : > { %v3493_v59 = vmul.f32 -1.442695, %v1011_v14  ;;  %v3490_v12 = vmul.f32 -1.442695, %v1008_v34  ;;  %v2793_v11 = vstv %s6879_s22  ;;  %v2799_v37 = vstv %s6887_s23  ;;  %p4138_p12 = pneg %p4137_p11  ;;  %s4289_s22 = smov [#allocation18]  }
 0x3cb   : > { %v991_v50 = vpop.permute.xlu0 %990  ;;  %v2539_v46 = vpop.permute.xlu1 %2538  ;;  %v1036_v43 = vadd.f32 1.0, %v3874_v47  ;;  %v2783_v62 = vrot.slane %v6945_v8, %v5032_v52  ;;  %v2787_v55 = vrot.slane %v6945_v8, %v5034_v53  ;;  %vm2698_vm12 = vcmp.lt.s32.totalorder %v5064_v45, 96  ;;  %s4139_s23 = sshll.u32 %s4289_s22, 4  ;;  %s4140_s23 = int_to_ptr.vmem [resolvable:$false] %s4139_s23 }
 0x3cc   : > { %3879 = vpow2.f32 %v3493_v59  ;;  %v1009_v61 = vadd.f32 %v991_v50, %v6613_v40  ;;  %v2744_v40 = vrot.slane %v6898_v36, %v5032_v52  ;;  %v3876_v50 = vpop.eup %3875  ;;  %v7018_v13 = vsel %vm6984_vm10, 1, %v7539_v38  ;;  %p4142_p13 = scmp.lt.s32.totalorder %s7301_s24, %s4140_s23 }
 0x3cd   : > { %3881 = vpow2.f32 %v3490_v12  ;;  %vm7043_vm6 = vcmp.eq.s32.totalorder %v2748_v56, 1 }
 0x3ce   : > { %v3491_v25 = vmul.f32 -1.442695, %v1009_v61  ;;  %3883 = vrcp.f32 %v1038_v7  ;;  %v1037_v7 = vadd.f32 1.0, %v3876_v50  ;;  %vm7036_vm0 = vcmp.eq.s32.totalorder %v2744_v40, 1 }
 0x3cf   : > { %v2541_v39 = vpop.permute.xlu0 %2540  ;;  %v2578_v34 = vpop.permute.xlu1 %2577 }
 0x3d0   : > { %3885 = vpow2.f32 %v3491_v25  ;;  %v2543_v31 = vsel %vm2542_vm4, %v2539_v46, %v2541_v39  ;;  %v2544_v14 = vsel %vm2542_vm4, %v2541_v39, %v2539_v46  ;;  %vm2659_vm4 = vcmp.lt.s32.totalorder %v5064_v45, 97 }
 0x3d1   : > { %3887 = vrcp.f32 %v1039_v18  ;;  %v2557_v58 = vsel %vm6850_vm13, %v2543_v31, 0.0  ;;  %v2558_v59 = vsel %vm6854_vm3, %v2544_v14, 0.0  ;;  %vm6972_vm13 = vcmp.eq.s32.totalorder %v2667_v44, 1 }
 0x3d2   : > { %v2561_v49 = vmul.f32 %v2560_v1, %v2557_v58  ;;  %v2562_v12 = vmul.f32 %v2560_v1, %v2558_v59  ;;  %v2567_v61 = vmul.f32 %v2566_v57, %v2557_v58  ;;  %v2568_v60 = vmul.f32 %v2566_v57, %v2558_v59  ;;  %v3878_v33 = vpop.eup %3877 }
 0x3d3   : > { %3889 = vrcp.f32 %v1036_v43  ;;  %v2580_v46 = vpop.permute.xlu0 %2579  ;;  %vm6976_vm3 = vcmp.eq.s32.totalorder %v2671_v17, 1  ;;  %v2826_v57 = vrot.slane %v7018_v13, %v5034_v53 }
 0x3d4   : > { %v2563_v25 = vadd.f32 %v2561_v49, %v6766_v30  ;;  %v2564_v1 = vadd.f32 %v2562_v12, %v6768_v4  ;;  %v2571_v18 = vrot.slane %v2567_v61, 1  ;;  %v2572_v39 = vrot.slane %v2568_v60, 1  ;;  %v2617_v17 = vpop.permute.xlu1 %2616 }
 0x3d5   : > { %3891 = vrcp.f32 %v1037_v7  ;;  %v1042_v4 = vadd.f32 1.0, %v3878_v33  ;;  %v2582_v44 = vsel %vm2581_vm1, %v2578_v34, %v2580_v46  ;;  %v2583_v31 = vsel %vm2581_vm1, %v2580_v46, %v2578_v34 }
 0x3d6   : > { %v3880_v14 = vpop.eup %3879  ;;  %v2575_v43 = vadd.f32 %v2571_v18, %v2563_v25  ;;  %v2576_v58 = vadd.f32 %v2572_v39, %v2564_v1  ;;  %v2596_v23 = vsel %vm6900_vm8, %v2582_v44, 0.0  ;;  %v2597_v59 = vsel %vm6904_vm11, %v2583_v31, 0.0 }
 0x3d7   : > { %3893 = vrcp.f32 %v1042_v4  ;;  %v2600_v50 = vmul.f32 %v2599_v51, %v2596_v23  ;;  %v2601_v49 = vmul.f32 %v2599_v51, %v2597_v59  ;;  %v2619_v34 = vpop.permute.xlu0 %2618  ;;  %vm7004_vm1 = vcmp.eq.s32.totalorder %v2705_v27, 1  ;;  %v3882_v51 = vpop.eup %3881 }
 0x3d8   : > { %vm7011_vm8 = vcmp.eq.s32.totalorder %v2709_v63, 1  ;;  %v2606_v61 = vmul.f32 %v2605_v28, %v2596_v23  ;;  %v2607_v27 = vmul.f32 %v2605_v28, %v2597_v59  ;;  %v2621_v60 = vsel %vm2620_vm9, %v2617_v17, %v2619_v34  ;;  %v3884_v63 = vpop.eup %3883  ;;  %v2656_v1 = vpop.permute.xlu1 %2655 }
 0x3d9   : > { %v2622_v19 = vsel %vm2620_vm9, %v2619_v34, %v2617_v17  ;;  %v1043_v7 = vadd.f32 1.0, %v3880_v14  ;;  %v1040_v46 = vadd.f32 1.0, %v3882_v51  ;;  %v2602_v33 = vadd.f32 %v2600_v50, %v2575_v43  ;;  %3145 = vperm.xlu1 %3837, %v3884_v63  }
 0x3da   : > { %v2603_v25 = vadd.f32 %v2601_v49, %v2576_v58  ;;  %vm2736_vm11 = vcmp.lt.s32.totalorder %v5064_v45, 95  ;;  %v3886_v18 = vpop.eup %3885  ;;  %v2610_v39 = vrot.slane %v2606_v61, 1  ;;  %v2611_v30 = vrot.slane %v2607_v27, 1 }
 0x3db   : > { %v2635_v28 = vsel %vm6934_vm5, %v2621_v60, 0.0  ;;  %v2636_v4 = vsel %vm6938_vm2, %v2622_v19, 0.0  ;;  %vm1234_vm9 = vcmp.lt.s32.totalorder %v7047_v35, 13  ;;  %v3888_v20 = vpop.eup %3887  ;;  %3895 = vrcp.f32 %v1040_v46  ;;  %v2658_v43 = vpop.permute.xlu0 %2657 }
 0x3dc   : > { %v1041_v17 = vadd.f32 1.0, %v3886_v18  ;;  %v2639_v14 = vmul.f32 %v2638_v48, %v2635_v28  ;;  %v2640_v40 = vmul.f32 %v2638_v48, %v2636_v4  ;;  %v2614_v58 = vadd.f32 %v2610_v39, %v2602_v33  ;;  %3150 = vperm.xlu0 %3836, %v3888_v20   ;;  %v2695_v34 = vpop.permute.xlu1 %2694 }
 0x3dd   : > { %v2615_v23 = vadd.f32 %v2611_v30, %v2603_v25  ;;  %v2645_v36 = vmul.f32 %v2644_v32, %v2635_v28  ;;  %v2646_v56 = vmul.f32 %v2644_v32, %v2636_v4  ;;  %v3890_v59 = vpop.eup %3889  ;;  %v2660_v50 = vsel %vm2659_vm4, %v2656_v1, %v2658_v43 }
 0x3de   : > { %3897 = vrcp.f32 %v1041_v17  ;;  %v2661_v49 = vsel %vm2659_vm4, %v2658_v43, %v2656_v1  ;;  %vm2775_vm5 = vcmp.lt.s32.totalorder %v5064_v45, 94  ;;  %v2822_v48 = vrot.slane %v7018_v13, %v5032_v52  ;;  %3135 = vperm.xlu1 %3837, %v3890_v59  }
 0x3df   : > { %v2641_v51 = vadd.f32 %v2639_v14, %v2614_v58  ;;  %v2642_v61 = vadd.f32 %v2640_v40, %v2615_v23  ;;  %v2649_v32 = vrot.slane %v2645_v36, 1  ;;  %v2650_v27 = vrot.slane %v2646_v56, 1  ;;  %v3892_v60 = vpop.eup %3891  ;;  %v2697_v46 = vpop.permute.xlu0 %2696 }
 0x3e0   : > { %3899 = vrcp.f32 %v1043_v7  ;;  %v2674_v19 = vsel %vm6972_vm13, %v2660_v50, 0.0  ;;  %v2675_v63 = vsel %vm6976_vm3, %v2661_v49, 0.0  ;;  %vm7072_vm2 = vcmp.eq.s32.totalorder %v2783_v62, 1  ;;  %3140 = vperm.xlu0 %3836, %v3892_v60   ;;  %v2733_v28 = vpop.permute.xlu1 %2732  ;;  %vm7123_vm13 = vmand %vm1234_vm9, %vm1235_vm14 }
 0x3e1   : > { %vm7079_vm4 = vcmp.eq.s32.totalorder %v2787_v55, 1  ;;  %v2653_v47 = vadd.f32 %v2649_v32, %v2641_v51  ;;  %v2654_v7 = vadd.f32 %v2650_v27, %v2642_v61  ;;  %v2678_v1 = vmul.f32 %v2677_v3, %v2674_v19  ;;  %v3894_v18 = vpop.eup %3893 }
 0x3e2   : > { %v2679_v62 = vmul.f32 %v2677_v3, %v2675_v63  ;;  %v2684_v8 = vmul.f32 %v2683_v41, %v2674_v19  ;;  %v2685_v55 = vmul.f32 %v2683_v41, %v2675_v63  ;;  %v2699_v39 = vsel %vm2698_vm12, %v2695_v34, %v2697_v46 }
 0x3e3   : > { %v2700_v30 = vsel %vm2698_vm12, %v2697_v46, %v2695_v34  ;;  %v2680_v4 = vadd.f32 %v2678_v1, %v2653_v47  ;;  %v2712_v3 = vsel %vm7004_vm1, %v2699_v39, 0.0  ;;  %v2735_v58 = vpop.permute.xlu0 %2734  ;;  %vm2814_vm14 = vcmp.lt.s32.totalorder %v5064_v45, 93  ;;  %vm2895_vm1 = vmand %vm1234_vm9, %vm1236_vm15 }
 0x3e4   : > { %v2681_v20 = vadd.f32 %v2679_v62, %v2654_v7  ;;  %v2713_v17 = vsel %vm7011_vm8, %v2700_v30, 0.0  ;;  %v2688_v14 = vrot.slane %v2684_v8, 1  ;;  %v2689_v40 = vrot.slane %v2685_v55, 1  ;;  %v2772_v34 = vpop.permute.xlu1 %2771 }
 0x3e5   : > { %v2716_v43 = vmul.f32 %v2715_v24, %v2712_v3  ;;  %v2717_v41 = vmul.f32 %v2715_v24, %v2713_v17  ;;  %v2722_v23 = vmul.f32 %v2721_v42, %v2712_v3  ;;  %v2723_v36 = vmul.f32 %v2721_v42, %v2713_v17  ;;  %v3896_v56 = vpop.eup %3895 }
 0x3e6   : > { %v2737_v12 = vsel %vm2736_vm11, %v2733_v28, %v2735_v58  ;;  %v2738_v26 = vsel %vm2736_vm11, %v2735_v58, %v2733_v28  ;;  %v2692_v59 = vadd.f32 %v2688_v14, %v2680_v4  ;;  %v2693_v50 = vadd.f32 %v2689_v40, %v2681_v20  ;;  %3155 = vperm.xlu1 %3837, %v3896_v56  }
 0x3e7   : > { %v2751_v24 = vsel %vm7036_vm0, %v2737_v12, 0.0  ;;  %v2752_v49 = vsel %vm7043_vm6, %v2738_v26, 0.0  ;;  %v2726_v51 = vrot.slane %v2722_v23, 1  ;;  %v2727_v61 = vrot.slane %v2723_v36, 1  ;;  %v2774_v46 = vpop.permute.xlu0 %2773 }
 0x3e8   : > { %v2755_v44 = vmul.f32 %v2754_v54, %v2751_v24  ;;  %v2756_v32 = vmul.f32 %v2754_v54, %v2752_v49  ;;  %v3898_v31 = vpop.eup %3897  ;;  %v2718_v27 = vadd.f32 %v2716_v43, %v2692_v59  ;;  %v2719_v60 = vadd.f32 %v2717_v41, %v2693_v50 }
 0x3e9   : > { %v2761_v19 = vmul.f32 %v2760_v0, %v2751_v24  ;;  %v2762_v63 = vmul.f32 %v2760_v0, %v2752_v49  ;;  %v2776_v47 = vsel %vm2775_vm5, %v2772_v34, %v2774_v46  ;;  %v2777_v7 = vsel %vm2775_vm5, %v2774_v46, %v2772_v34  ;;  %3160 = vperm.xlu0 %3836, %v3898_v31  }
 0x3ea   : > { %v2857_v54 = vsel %vm7123_vm13, 1, %v7539_v38  ;;  %v3900_v1 = vpop.eup %3899  ;;  %v2730_v62 = vadd.f32 %v2726_v51, %v2718_v27  ;;  %v2731_v0 = vadd.f32 %v2727_v61, %v2719_v60  ;;  %v2790_v39 = vsel %vm7072_vm2, %v2776_v47, 0.0  ;;  %3165 = vperm.xlu1 %3837, %v3894_v18   ;;  %v2811_v18 = vpop.permute.xlu1 %2810 }
 0x3eb   : > { %v2765_v8 = vrot.slane %v2761_v19, 1  ;;  %v2766_v55 = vrot.slane %v2762_v63, 1  ;;  %v2791_v30 = vsel %vm7079_vm4, %v2777_v7, 0.0  ;;  %vm7152_vm3 = vcmp.eq.s32.totalorder %v2822_v48, 1  ;;  %v2813_v17 = vpop.permute.xlu0 %2812 }
 0x3ec   : > { %vm7156_vm10 = vcmp.eq.s32.totalorder %v2826_v57, 1  ;;  %v2757_v20 = vadd.f32 %v2755_v44, %v2730_v62  ;;  %v2758_v3 = vadd.f32 %v2756_v32, %v2731_v0  ;;  %v2794_v33 = vmul.f32 %v2793_v11, %v2790_v39 }
 0x3ed   : > { %v2795_v25 = vmul.f32 %v2793_v11, %v2791_v30  ;;  %v2800_v13 = vmul.f32 %v2799_v37, %v2790_v39  ;;  %v2801_v48 = vmul.f32 %v2799_v37, %v2791_v30  ;;  %v2815_v14 = vsel %vm2814_vm14, %v2811_v18, %v2813_v17  ;;  %3170 = vperm.xlu0 %3836, %v3900_v1  }
 0x3ee   : > { %v2816_v57 = vsel %vm2814_vm14, %v2813_v17, %v2811_v18  ;;  %v2769_v40 = vadd.f32 %v2765_v8, %v2757_v20  ;;  %v2770_v43 = vadd.f32 %v2766_v55, %v2758_v3  ;;  %v2832_v41 = vstv %s7117_s25  ;;  %v2850_v44 = vpop.permute.xlu1 %2849  ;;  %s4141_s25 = scalar_lea.vmem %s4140_s23, 2048 }
 0x3ef   : > { %v2804_v58 = vrot.slane %v2800_v13, 1  ;;  %v2805_v11 = vrot.slane %v2801_v48, 1  ;;  %v2838_v23 = vstv %s7131_s29  ;;  %v2829_v36 = vsel %vm7152_vm3, %v2815_v14, 0.0  ;;  %v2852_v50 = vpop.permute.xlu0 %2851  ;;  %p4143_p5 = scmp.lt.s32.totalorder %s4141_s25, %s4135_s8 }
 0x3f0   : > { %v2796_v37 = vadd.f32 %v2794_v33, %v2769_v40  ;;  %v2797_v12 = vadd.f32 %v2795_v25, %v2770_v43  ;;  %v2830_v26 = vsel %vm7156_vm10, %v2816_v57, 0.0  ;;  %v2861_v56 = vrot.slane %v2857_v54, %v5032_v52 }
 0x3f1   : > { %vm2853_vm12 = vcmp.lt.s32.totalorder %v5064_v45, 83  ;;  %v2865_v59 = vrot.slane %v2857_v54, %v5034_v53  ;;  %v2833_v49 = vmul.f32 %v2832_v41, %v2829_v36  ;;  %v2839_v34 = vmul.f32 %v2838_v23, %v2829_v36  ;;  %p4144_p1 = por %p4143_p5, %p4142_p13 }
 0x3f2   : > { %v2808_v24 = vadd.f32 %v2804_v58, %v2796_v37  ;;  %v2809_v42 = vadd.f32 %v2805_v11, %v2797_v12  ;;  %v2834_v51 = vmul.f32 %v2832_v41, %v2830_v26  ;;  %v2840_v61 = vmul.f32 %v2838_v23, %v2830_v26  ;;  %v2889_v3 = vpop.permute.xlu1 %2888 }
 0x3f3   : > { %vm2866_vm8 = vcmp.eq.s32.totalorder %v2861_v56, 1  ;;  %v2854_v32 = vsel %vm2853_vm12, %v2850_v44, %v2852_v50  ;;  %vm2867_vm11 = vcmp.eq.s32.totalorder %v2865_v59, 1  ;;  %v2855_v31 = vsel %vm2853_vm12, %v2852_v50, %v2850_v44  ;;  %v2891_v8 = vpop.permute.xlu0 %2890  ;;  %p4145_p3 = pnand %p4144_p1, %p4138_p12 }
 0x3f4   : > { %v2896_v27 = vsel %vm2895_vm1, 1, %v7539_v38  ;;  %v2835_v60 = vadd.f32 %v2833_v49, %v2808_v24  ;;  %v2843_v19 = vrot.slane %v2839_v34, 1  ;;  %v2871_v63 = vstv %s7173_s17 }
 0x3f5   : > { %v2836_v46 = vadd.f32 %v2834_v51, %v2809_v42  ;;  %v2844_v47 = vrot.slane %v2840_v61, 1  ;;  %v2877_v7 = vstv %s7178_s3  ;;  %v2868_v54 = vsel %vm2866_vm8, %v2854_v32, 0.0 }
 0x3f6   : > { %v2869_v1 = vsel %vm2867_vm11, %v2855_v31, 0.0  ;;  %v2900_v62 = vrot.slane %v2896_v27, %v5032_v52  ;;  %vm2892_vm15 = vcmp.lt.s32.totalorder %v5064_v45, 82  ;;  %v2904_v0 = vrot.slane %v2896_v27, %v5034_v53  ;;  %v2928_v50 = vpop.permute.xlu1 %2927 }
 0x3f7   : > { %v2847_v55 = vadd.f32 %v2843_v19, %v2835_v60  ;;  %v2872_v39 = vmul.f32 %v2871_v63, %v2868_v54  ;;  %v2878_v30 = vmul.f32 %v2877_v7, %v2868_v54  ;;  %vm7859_vm0 = vcmp.ge.s32.totalorder %v5006_v2, 1  ;;  %v2930_v23 = vpop.permute.xlu0 %2929 }
 0x3f8   : > { %vm2934_vm6 = vmand %vm1234_vm9, %vm7859_vm0  ;;  %v2848_v28 = vadd.f32 %v2844_v47, %v2836_v46  ;;  %v2873_v4 = vmul.f32 %v2871_v63, %v2869_v1  ;;  %v2879_v20 = vmul.f32 %v2877_v7, %v2869_v1  ;;  %vm2905_vm5 = vcmp.eq.s32.totalorder %v2900_v62, 1 }
 0x3f9   : > { %v2893_v33 = vsel %vm2892_vm15, %v2889_v3, %v2891_v8  ;;  %vm2906_vm2 = vcmp.eq.s32.totalorder %v2904_v0, 1  ;;  %v2894_v25 = vsel %vm2892_vm15, %v2891_v8, %v2889_v3  ;;  %v2935_v18 = vsel %vm2934_vm6, 1, %v7539_v38 }
 0x3fa   : > { %v2874_v17 = vadd.f32 %v2872_v39, %v2847_v55  ;;  %v2882_v13 = vrot.slane %v2878_v30, 1  ;;  %v2910_v48 = vstv %s7191_s28  ;;  %v2875_v14 = vadd.f32 %v2873_v4, %v2848_v28  ;;  %v2967_v8 = vpop.permute.xlu1 %2966 }
 0x3fb   : > { %v2883_v57 = vrot.slane %v2879_v20, 1  ;;  %v2916_v40 = vstv %s7194_s1  ;;  %v2907_v43 = vsel %vm2905_vm5, %v2893_v33, 0.0  ;;  %v2908_v41 = vsel %vm2906_vm2, %v2894_v25, 0.0  ;;  %v2969_v46 = vpop.permute.xlu0 %2968 }
 0x3fc   : > { %v2939_v58 = vrot.slane %v2935_v18, %v5032_v52  ;;  %vm2931_vm4 = vcmp.lt.s32.totalorder %v5064_v45, 81  ;;  %v2943_v11 = vrot.slane %v2935_v18, %v5034_v53  ;;  %v2886_v36 = vadd.f32 %v2882_v13, %v2874_v17 }
 0x3fd   : > { %v2911_v37 = vmul.f32 %v2910_v48, %v2907_v43  ;;  %v2917_v12 = vmul.f32 %v2916_v40, %v2907_v43  ;;  %v2887_v26 = vadd.f32 %v2883_v57, %v2875_v14  ;;  %v2912_v56 = vmul.f32 %v2910_v48, %v2908_v41 }
 0x3fe   : > { %v2918_v59 = vmul.f32 %v2916_v40, %v2908_v41  ;;  %vm2944_vm13 = vcmp.eq.s32.totalorder %v2939_v58, 1  ;;  %v2932_v24 = vsel %vm2931_vm4, %v2928_v50, %v2930_v23  ;;  %vm2945_vm14 = vcmp.eq.s32.totalorder %v2943_v11, 1 }
 0x3ff   : > { %v2933_v49 = vsel %vm2931_vm4, %v2930_v23, %v2928_v50  ;;  %v2973_v34 = vsel %vm1234_vm9, 1, %v7539_v38  ;;  %v2913_v42 = vadd.f32 %v2911_v37, %v2886_v36  ;;  %v2921_v51 = vrot.slane %v2917_v12, 1  ;;  %v3007_v14 = vpop.permute.xlu0 %3006  ;;  %v3005_v23 = vpop.permute.xlu1 %3004  ;;  %vm3089_vm4 = vmand %vm1234_vm9, %vm1240_vm7 }
 0x400   : > { %v2949_v61 = vstv %s7205_s2  ;;  %v2914_v44 = vadd.f32 %v2912_v56, %v2887_v26  ;;  %v2922_v32 = vrot.slane %v2918_v59, 1  ;;  %v2955_v31 = vstv %s7208_s16 }
 0x401   : > { %v2946_v27 = vsel %vm2944_vm13, %v2932_v24, 0.0  ;;  %v2947_v60 = vsel %vm2945_vm14, %v2933_v49, 0.0  ;;  %v2977_v19 = vrot.slane %v2973_v34, %v5032_v52  ;;  %vm2970_vm3 = vcmp.lt.s32.totalorder %v5064_v45, 80 }
 0x402   : > { %v2981_v63 = vrot.slane %v2973_v34, %v5034_v53  ;;  %v2925_v47 = vadd.f32 %v2921_v51, %v2913_v42  ;;  %v2950_v7 = vmul.f32 %v2949_v61, %v2946_v27  ;;  %v2956_v54 = vmul.f32 %v2955_v31, %v2946_v27 }
 0x403   : > { %vm7860_vm10 = vcmp.lt.s32.totalorder %v5006_v2, 15  ;;  %v2926_v1 = vadd.f32 %v2922_v32, %v2914_v44  ;;  %v2951_v62 = vmul.f32 %v2949_v61, %v2947_v60  ;;  %v2957_v0 = vmul.f32 %v2955_v31, %v2947_v60  ;;  %v3046_v44 = vpop.permute.xlu0 %3045 }
 0x404   : > { %vm3011_vm12 = vmand %vm1234_vm9, %vm7860_vm10  ;;  %vm2982_vm1 = vcmp.eq.s32.totalorder %v2977_v19, 1  ;;  %v2971_v55 = vsel %vm2970_vm3, %v2967_v8, %v2969_v46  ;;  %vm2983_vm8 = vcmp.eq.s32.totalorder %v2981_v63, 1  ;;  %v2972_v39 = vsel %vm2970_vm3, %v2969_v46, %v2967_v8  ;;  %v3044_v46 = vpop.permute.xlu1 %3043 }
 0x405   : > { %v3012_v30 = vsel %vm3011_vm12, 1, %v7539_v38  ;;  %v2952_v28 = vadd.f32 %v2950_v7, %v2925_v47  ;;  %v2960_v4 = vrot.slane %v2956_v54, 1  ;;  %v2987_v20 = vstv %s7217_s19 }
 0x406   : > { %v2953_v3 = vadd.f32 %v2951_v62, %v2926_v1  ;;  %v2961_v33 = vrot.slane %v2957_v0, 1  ;;  %v2993_v25 = vstv %s7220_s20  ;;  %v2984_v18 = vsel %vm2982_vm1, %v2971_v55, 0.0 }
 0x407   : > { %v2985_v17 = vsel %vm2983_vm8, %v2972_v39, 0.0  ;;  %v3016_v13 = vrot.slane %v3012_v30, %v5032_v52  ;;  %vm3008_vm11 = vcmp.lt.s32.totalorder %v5064_v45, 79  ;;  %v3020_v48 = vrot.slane %v3012_v30, %v5034_v53 }
 0x408   : > { %v2964_v57 = vadd.f32 %v2960_v4, %v2952_v28  ;;  %v2988_v40 = vmul.f32 %v2987_v20, %v2984_v18  ;;  %v2994_v43 = vmul.f32 %v2993_v25, %v2984_v18  ;;  %vm7861_vm15 = vcmp.lt.s32.totalorder %v5006_v2, 14  ;;  %v3085_v4 = vpop.permute.xlu0 %3084 }
 0x409   : > { %vm3050_vm0 = vmand %vm1234_vm9, %vm7861_vm15  ;;  %v2965_v41 = vadd.f32 %v2961_v33, %v2953_v3  ;;  %v2989_v58 = vmul.f32 %v2987_v20, %v2985_v17  ;;  %v2995_v11 = vmul.f32 %v2993_v25, %v2985_v17  ;;  %vm3021_vm6 = vcmp.eq.s32.totalorder %v3016_v13, 1  ;;  %v3083_v17 = vpop.permute.xlu1 %3082 }
 0x40a   : > { %v3009_v36 = vsel %vm3008_vm11, %v3005_v23, %v3007_v14  ;;  %vm3022_vm5 = vcmp.eq.s32.totalorder %v3020_v48, 1  ;;  %v3010_v37 = vsel %vm3008_vm11, %v3007_v14, %v3005_v23  ;;  %v3051_v12 = vsel %vm3050_vm0, 1, %v7539_v38 }
 0x40b   : > { %v2990_v26 = vadd.f32 %v2988_v40, %v2964_v57  ;;  %v2998_v56 = vrot.slane %v2994_v43, 1  ;;  %v3026_v59 = vstv %s7231_s10  ;;  %v2991_v50 = vadd.f32 %v2989_v58, %v2965_v41 }
 0x40c   : > { %v2999_v24 = vrot.slane %v2995_v11, 1  ;;  %v3032_v49 = vstv %s7234_s11  ;;  %v3023_v34 = vsel %vm3021_vm6, %v3009_v36, 0.0  ;;  %v3024_v42 = vsel %vm3022_vm5, %v3010_v37, 0.0 }
 0x40d   : > { %v3055_v51 = vrot.slane %v3051_v12, %v5032_v52  ;;  %vm3047_vm2 = vcmp.lt.s32.totalorder %v5064_v45, 78  ;;  %v3059_v61 = vrot.slane %v3051_v12, %v5034_v53  ;;  %v3002_v32 = vadd.f32 %v2998_v56, %v2990_v26 }
 0x40e   : > { %v3027_v31 = vmul.f32 %v3026_v59, %v3023_v34  ;;  %v3033_v27 = vmul.f32 %v3032_v49, %v3023_v34  ;;  %v3003_v60 = vadd.f32 %v2999_v24, %v2991_v50  ;;  %v3028_v19 = vmul.f32 %v3026_v59, %v3024_v42 }
 0x40f   : > { %v3034_v63 = vmul.f32 %v3032_v49, %v3024_v42  ;;  %vm3060_vm13 = vcmp.eq.s32.totalorder %v3055_v51, 1  ;;  %v3048_v47 = vsel %vm3047_vm2, %v3044_v46, %v3046_v44  ;;  %vm3061_vm14 = vcmp.eq.s32.totalorder %v3059_v61, 1 }
 0x410   : > { %v3049_v7 = vsel %vm3047_vm2, %v3046_v44, %v3044_v46  ;;  %v3090_v54 = vsel %vm3089_vm4, 1, %v7539_v38  ;;  %v3029_v1 = vadd.f32 %v3027_v31, %v3002_v32  ;;  %v3037_v62 = vrot.slane %v3033_v27, 1 }
 0x411   : > { %v3065_v0 = vstv %s7245_s12  ;;  %v3030_v2 = vadd.f32 %v3028_v19, %v3003_v60  ;;  %v3038_v8 = vrot.slane %v3034_v63, 1  ;;  %v3071_v35 = vstv %s7248_s26 }
 0x412   : > { %v3062_v55 = vsel %vm3060_vm13, %v3048_v47, 0.0  ;;  %v3063_v39 = vsel %vm3061_vm14, %v3049_v7, 0.0  ;;  %v3094_v30 = vrot.slane %v3090_v54, %v5032_v52  ;;  %vm3086_vm7 = vcmp.lt.s32.totalorder %v5064_v45, 77 }
 0x413   : > { %v3098_v28 = vrot.slane %v3090_v54, %v5034_v53  ;;  %v3041_v38 = vadd.f32 %v3037_v62, %v3029_v1  ;;  %v3066_v20 = vmul.f32 %v3065_v0, %v3062_v55  ;;  %v3072_v3 = vmul.f32 %v3071_v35, %v3062_v55 }
 0x414   : > { %v3042_v33 = vadd.f32 %v3038_v8, %v3030_v2  ;;  %v3067_v25 = vmul.f32 %v3065_v0, %v3063_v39  ;;  %v3073_v18 = vmul.f32 %v3071_v35, %v3063_v39  ;;  %vm3099_vm9 = vcmp.eq.s32.totalorder %v3094_v30, 1 }
 0x415   : > { %v3087_v13 = vsel %vm3086_vm7, %v3083_v17, %v3085_v4  ;;  %vm3100_vm3 = vcmp.eq.s32.totalorder %v3098_v28, 1  ;;  %v3088_v48 = vsel %vm3086_vm7, %v3085_v4, %v3083_v17  ;;  %v3068_v14 = vadd.f32 %v3066_v20, %v3041_v38 }
 0x416   : > { %v3076_v57 = vrot.slane %v3072_v3, 1  ;;  %v3104_v40 = vstv %s7259_s14  ;;  %v3069_v43 = vadd.f32 %v3067_v25, %v3042_v33  ;;  %v3077_v45 = vrot.slane %v3073_v18, 1 }
 0x417   : > { %v3110_v41 = vstv %s3604_s0  ;;  %v3101_v58 = vsel %vm3099_vm9, %v3087_v13, 0.0  ;;  %v3102_v53 = vsel %vm3100_vm3, %v3088_v48, 0.0 }
 0x418   : > { %v3080_v11 = vadd.f32 %v3076_v57, %v3068_v14  ;;  %v3105_v23 = vmul.f32 %v3104_v40, %v3101_v58  ;;  %v3111_v36 = vmul.f32 %v3110_v41, %v3101_v58  ;;  %v3081_v37 = vadd.f32 %v3077_v45, %v3069_v43 }
 0x419   : > { %v3106_v12 = vmul.f32 %v3104_v40, %v3102_v53  ;;  %v3112_v26 = vmul.f32 %v3110_v41, %v3102_v53 }
 0x41a   : > { %v3107_v56 = vadd.f32 %v3105_v23, %v3080_v11  ;;  %v3115_v59 = vrot.slane %v3111_v36, 1 }
 0x41b   : > { %v3108_v50 = vadd.f32 %v3106_v12, %v3081_v37  ;;  %v3116_v24 = vrot.slane %v3112_v26, 1  ;;  %v7864_v37 = vld [vmem:[#allocation37_spill] sm:$0xff] }
 0x41c   : > { %v3119_v49 = vadd.f32 %v3115_v59, %v3107_v56 }
 0x41d   : > { %v3120_v34 = vadd.f32 %v3116_v24, %v3108_v50  ;;  %v7866_v24 = vld [vmem:[#allocation38_spill] sm:$0xff] }
 0x41e   : > { %v3605_v42 = vmul.f32 -1.442695, %v3119_v49 }
 0x41f   : > { %v3606_v51 = vmul.f32 -1.442695, %v3120_v34  ;;  %v7867_v34 = vld [vmem:[#allocation39_spill] sm:$0xff] }
 0x420   : > { %3901 = vpow2.f32 %v3605_v42 }
 0x421   : > { %3903 = vpow2.f32 %v3606_v51 }
 0x42a   : > { %v3902_v61 = vpop.eup %3901 }
 0x42b   : > { %v3904_v44 = vpop.eup %3903  ;;  %v3127_v32 = vadd.f32 1.0, %v3902_v61 }
 0x42c   : > { %v3128_v31 = vadd.f32 1.0, %v3904_v44 }
 0x42d   : > { %3905 = vrcp.f32 %v3127_v32 }
 0x42e   : > { %3907 = vrcp.f32 %v3128_v31 }
 0x437   : > { %v3906_v27 = vpop.eup %3905 }
 0x438   : > { %v3908_v60 = vpop.eup %3907  ;;  %v3176_v19 = vrot.slane %v3906_v27, %v5032_v52  ;;  %v7868_v27 = vld [vmem:[#allocation40_spill] sm:$0xff] }
 0x439   : > { %v3180_v63 = vrot.slane %v3908_v60, %v5032_v52 }
 0x458   : > { %v3146_v46 = vpop.permute.xlu1 %3145 }
 0x459   : > { %v3185_v47 = vmul.f32 %v3176_v19, %v3146_v46  ;;  %v3186_v7 = vmul.f32 %v3180_v63, %v3146_v46  ;;  %v7869_v46 = vld [vmem:[#allocation41_spill] sm:$0xff] }
 0x45b   : > { %v3151_v54 = vpop.permute.xlu0 %3150  ;;  %v3201_v1 = vadd.f32 1.0, %v3185_v47  ;;  %v3202_v62 = vadd.f32 1.0, %v3186_v7 }
 0x45c   : > { %v3187_v0 = vmul.f32 %v3176_v19, %v3151_v54  ;;  %v3188_v2 = vmul.f32 %v3180_v63, %v3151_v54  ;;  %v7871_v54 = vld [vmem:[#allocation42_spill] sm:$0xff] }
 0x45d   : > { %v3136_v8 = vpop.permute.xlu1 %3135  ;;  %v3217_v35 = vmul.f32 %v3201_v1, %v4686_v5  ;;  %v3218_v55 = vmul.f32 %v3202_v62, %v4688_v6  ;;  %v7872_v62 = vld [vmem:[#allocation43_spill] sm:$0xff] }
 0x45e   : > { %v3203_v39 = vadd.f32 1.0, %v3187_v0  ;;  %v3204_v30 = vadd.f32 1.0, %v3188_v2  ;;  %v3181_v28 = vmul.f32 %v3176_v19, %v3136_v8  ;;  %v3182_v4 = vmul.f32 %v3180_v63, %v3136_v8 }
 0x45f   : > { %v3141_v38 = vpop.permute.xlu0 %3140  ;;  %v3623_v52 = vpack.c.bf16 %v3218_v55, %v3217_v35 }
 0x460   : > { %v3219_v20 = vmul.f32 %v3203_v39, %v4710_v21  ;;  %v3220_v3 = vmul.f32 %v3204_v30, %v4712_v22  ;;  %v3183_v33 = vmul.f32 %v3176_v19, %v3141_v38  ;;  %v3197_v25 = vadd.f32 1.0, %v3181_v28 }
 0x461   : > { %v3198_v18 = vadd.f32 1.0, %v3182_v4  ;;  %v3184_v17 = vmul.f32 %v3180_v63, %v3141_v38  ;;  %3279 = vst [vmem:[%s7274_s5 + $0x10] sm:$0xff] %v3623_v52 }
 0x462   : > { %v3624_v5 = vpack.c.bf16 %v3220_v3, %v3219_v20  ;;  %v3199_v6 = vadd.f32 1.0, %v3183_v33  ;;  %v3213_v13 = vmul.f32 %v3197_v25, %v4693_v9 }
 0x463   : > { %v3214_v48 = vmul.f32 %v3198_v18, %v4695_v10  ;;  %v3200_v21 = vadd.f32 1.0, %v3184_v17 }
 0x464   : > { %3280 = vst [vmem:[%s7274_s5 + $0x18] sm:$0xff] %v3624_v5  ;;  %v3215_v22 = vmul.f32 %v3199_v6, %v4702_v15 }
 0x465   : > { %v3621_v14 = vpack.c.bf16 %v3214_v48, %v3213_v13  ;;  %v3216_v57 = vmul.f32 %v3200_v21, %v4704_v16  ;;  %v3156_v40 = vpop.permute.xlu1 %3155 }
 0x466   : > { %v3189_v43 = vmul.f32 %v3176_v19, %v3156_v40  ;;  %v3190_v45 = vmul.f32 %v3180_v63, %v3156_v40 }
 0x467   : > { %3277 = vst [vmem:[%s7274_s5] sm:$0xff] %v3621_v14  ;;  %v3622_v41 = vpack.c.bf16 %v3216_v57, %v3215_v22 }
 0x468   : > { %v3161_v58 = vpop.permute.xlu0 %3160  ;;  %v3205_v53 = vadd.f32 1.0, %v3189_v43  ;;  %v3206_v11 = vadd.f32 1.0, %v3190_v45 }
 0x469   : > { %v3191_v23 = vmul.f32 %v3176_v19, %v3161_v58  ;;  %v3192_v9 = vmul.f32 %v3180_v63, %v3161_v58  ;;  %3278 = vst [vmem:[%s7274_s5 + $0x8] sm:$0xff] %v3622_v41  ;;  %v3166_v10 = vpop.permute.xlu1 %3165 }
 0x46a   : > { %v3221_v36 = vmul.f32 %v3205_v53, %v4720_v29  ;;  %v3222_v15 = vmul.f32 %v3206_v11, %v7864_v37  ;;  %v3193_v16 = vmul.f32 %v3176_v19, %v3166_v10  ;;  %v3194_v56 = vmul.f32 %v3180_v63, %v3166_v10 }
 0x46b   : > { %v3207_v12 = vadd.f32 1.0, %v3191_v23  ;;  %v3208_v26 = vadd.f32 1.0, %v3192_v9 }
 0x46c   : > { %v3171_v59 = vpop.permute.xlu0 %3170  ;;  %v3625_v50 = vpack.c.bf16 %v3222_v15, %v3221_v36  ;;  %v3209_v61 = vadd.f32 1.0, %v3193_v16  ;;  %v3210_v44 = vadd.f32 1.0, %v3194_v56 }
 0x46d   : > { %v3223_v49 = vmul.f32 %v3207_v12, %v7866_v24  ;;  %v3224_v42 = vmul.f32 %v3208_v26, %v7867_v34  ;;  %v3195_v51 = vmul.f32 %v3176_v19, %v3171_v59  ;;  %v3196_v29 = vmul.f32 %v3180_v63, %v3171_v59 }
 0x46e   : > { %3281 = vst [vmem:[%s7274_s5 + $0x20] sm:$0xff] %v3625_v50  ;;  %v3225_v60 = vmul.f32 %v3209_v61, %v7868_v27  ;;  %v3226_v47 = vmul.f32 %v3210_v44, %v7869_v46 }
 0x46f   : > { %v3626_v32 = vpack.c.bf16 %v3224_v42, %v3223_v49  ;;  %v3211_v31 = vadd.f32 1.0, %v3195_v51  ;;  %v3212_v7 = vadd.f32 1.0, %v3196_v29 }
 0x470   : > { %v3627_v1 = vpack.c.bf16 %v3226_v47, %v3225_v60 }
 0x471   : > { %3282 = vst [vmem:[%s7274_s5 + $0x28] sm:$0xff] %v3626_v32  ;;  %v3227_v19 = vmul.f32 %v3211_v31, %v7871_v54  ;;  %v3228_v0 = vmul.f32 %v3212_v7, %v7872_v62 }
 0x472   : > { %3283 = vst [vmem:[%s7274_s5 + $0x30] sm:$0xff] %v3627_v1 }
 0x473   : > { %v3628_v63 = vpack.c.bf16 %v3228_v0, %v3227_v19 }
 0x475   : > { %3284 = vst [vmem:[%s7274_s5 + $0x38] sm:$0xff] %v3628_v63 }
 0x476   : > { %4148 = shalt.err (!%p4145_p3)
}
 0x477   : > { %s4149_s29 = scalar_lea.hbm %s7299_s4, 1024  ;;  %s4153_s28 = scalar_lea.hbm %s7873_s15, 2048 }
 0x478   : > { %p4150_p6 = scmp.ne.s32.totalorder %s7299_s4, %s4149_s29  ;;  %p4154_p2 = scmp.lt.u32.totalorder %s7299_s4, %s7873_s15 }
 0x479   : > { %p4155_p7 = scmp.lt.u32.totalorder %s4153_s28, %s4149_s29  ;;  %p4157_p4 = scmp.lt.u32.totalorder %s4149_s29, %s7299_s4 }
 0x47a   : > { %p4151_p10 = pnand %p4150_p6, %p7874_p8 }
 0x47b   : > { %p4156_p9 = por %p4155_p7, %p4154_p2 }
 0x47c   : > { %p4152_p0 = pneg %p4151_p10 }
 0x47d   : > { %p4158_p11 = por %p4157_p4, %p4156_p9 }
 0x47f   : > { %p4159_p12 = pnand %p4158_p11, %p4152_p0 }
 0x481   : > { %4162 = shalt.err (!%p4159_p12)
}
 0x482   : > { %s4290_s16 = smov 128   ;;  %s4291_s19 = smov 8  }
 0x483   : > { %3688 = dma.vmem_to_hbm [thread:$0]  (%p7874_p8), %s7301_s24, 1024, %s7299_s4, %s3286_s30, %s4290_s16, %s4290_s16, %s4291_s19  }
 0x484 PF: > { %s7875_s20 = sld [smem:[#allocation27_spill]]  ;;  %s7876_s10 = sld [smem:[#allocation35_spill]] }
 0x485   : > { %s7877_s11 = sld [smem:[#allocation30_spill]] }
 0x48a   : > { %s3314_s12 = sand.u32 1, %s7875_s20   ;;  %p7878_p13 = scmp.ne.s32.totalorder %s7876_s10, 0 }
 0x48b   : > { %p7879_p5 = scmp.ge.s32.totalorder %s7877_s11, 2  ;;  %s3315_s26 = scalar_lea.sflag [#allocation4], %s3314_s12 }
 0x48d   : > { %p3720_p1 = pnand %p7879_p5, %p7878_p13 }
 0x48f   : > { %4208 = dma.done.wait (!%p3720_p1), %s3315_s26, 1024  }
 0x490   : > { %4210 = vsyncadd (!%p3720_p1), %s3315_s26, 4294966272  ;;  %s7880_s12 = sld [smem:[#allocation32_spill]]  ;;  %s7881_s30 = sld [smem:[#allocation28_spill]] }
 0x491   : > { %s7882_s10 = sld [smem:[#allocation29_spill]]  ;;  %s7883_s11 = sld [smem:[#allocation33_spill]] }
 0x496   : > { %p27_p3 = scmp.ge.s32.totalorder %s7880_s12, 4  }
 0x498   :  { %29 = sbr.rel (!%p27_p3) target bundleno = 21 (0x15), region = 135 }
 0x49f   :  { %3320 = vsyncpa [#allocation3], 1 }
 0x4a0   :  { %3322 = vsyncpa [#allocation3 + $0x1], 1 }
 0x4a1   :  { %3323 = vsyncpa [#allocation7], 1 }
 0x4a2   :  { %3324 = vsyncpa [#allocation10], 1 }
 0x4a3   :  { %3325 = vsyncpa [#allocation16], 1 }
 0x4a4   :  { %3326 = vsyncpa [#allocation4], 1 }
 0x4a5   :  { %3328 = vsyncpa [#allocation4 + $0x1], 1 }
 0x4a6   :  { %3329 = vsyncpa [#allocation5], 1 }
 0x4a7   :  { %3331 = vsyncpa [#allocation5 + $0x1], 1 }
 0x4a8   :  { %3332 = vsyncpa [#allocation13], 1 }

</bundles_post_ra>
